<compile_context>
chip_gen: v7x
topology: tpu7x:2x2x1
jax: 0.10.0
libtpu: 0.0.40
codegen_flags: <defaults>
</compile_context>

<pallas_src>
import jax
import jax.numpy as jnp
from jax.experimental import pallas as pl
from jax.experimental.pallas import tpu as pltpu

EPS = 1e-5
N_BLOCKS = 2  # channel blocks (864 = 2 * 432); parallel grid axis (v7x megacore)


# ----------------------------------------------------------------------------
# Fused kernel (one channel block per grid step):
#   x_ref   : (H*W, Cin)       flattened NHWC input (same block every step)
#   w1_ref  : (1, Cin, Cb)     1x1-conv weights for this channel block
#   g1,b1   : (1, 1, Cb)       BN1 affine params
#   wdw_ref : (1, 9, Cb)       depthwise 3x3 taps (tap-major, C on lanes)
#   g2,b2   : (1, 1, Cb)       BN2 affine params
#   o_ref   : (1, H, W, Cb)    output block
#   xpad_ref: (H+2, W+2, Cb)   VMEM scratch holding the zero-padded stage-1 act
# ----------------------------------------------------------------------------
def fused_kernel(x_ref, w1_ref, g1_ref, b1_ref, wdw_ref, g2_ref, b2_ref,
                 o_ref, xpad_ref):
    H, W, Cb = o_ref.shape[1], o_ref.shape[2], o_ref.shape[3]

    # ---- stage 1: 1x1 conv as a single matmul (Cout block on lane axis) ----
    z = jnp.dot(x_ref[...], w1_ref[0],
                preferred_element_type=jnp.float32)            # (H*W, Cb)

    # ---- BN1 (batch stats, centered variance) folded scale/offset + ReLU ----
    mean1 = jnp.mean(z, axis=0, keepdims=True)                 # (1, Cb)
    d1 = z - mean1
    var1 = jnp.mean(d1 * d1, axis=0, keepdims=True)
    s1 = jax.lax.rsqrt(var1 + EPS) * g1_ref[0]                 # (1, Cb)
    y = jnp.maximum(d1 * s1 + b1_ref[0], 0.0)                  # (H*W, Cb)

    # ---- in-kernel zero padding: write y into interior of VMEM scratch ----
    xpad_ref[...] = jnp.zeros_like(xpad_ref)
    for h in range(H):
        xpad_ref[h + 1, 1:1 + W, :] = y[h * W:(h + 1) * W, :]

    # ---- stage 2: depthwise 3x3 conv = 9 shifted multiply-adds ----
    xpad = xpad_ref[...]                                       # (H+2, W+2, Cb)
    wdw = wdw_ref[0]                                           # (9, Cb)
    acc = jnp.zeros((H, W, Cb), jnp.float32)
    for dh in range(3):
        for dw in range(3):
            acc = acc + xpad[dh:dh + H, dw:dw + W, :] * wdw[dh * 3 + dw, :]

    # ---- BN2 (batch stats, centered variance) folded scale/offset ----
    mean2 = jnp.mean(acc, axis=(0, 1), keepdims=True)          # (1, 1, Cb)
    d2 = acc - mean2
    var2 = jnp.mean(d2 * d2, axis=(0, 1), keepdims=True)
    s2 = jax.lax.rsqrt(var2 + EPS) * g2_ref[0]                 # (1, 1, Cb)
    o_ref[...] = (d2 * s2 + b2_ref[0])[None]                   # (1, H, W, Cb)


# ----------------------------------------------------------------------------
# One-time parameter layout prep (kept OUT of the per-call jitted graph)
# ----------------------------------------------------------------------------
def prepare_params(w1, g1, b1, w_dw, g2, b2, n_blocks=N_BLOCKS):
    Cout, Cin = w1.shape[0], w1.shape[1]
    assert Cout % n_blocks == 0
    Cb = Cout // n_blocks
    # (Cout, Cin, 1, 1) -> (nb, Cin, Cb)   [channel block-major]
    w1_p = jnp.transpose(w1.reshape(n_blocks, Cb, Cin), (0, 2, 1))
    g1_p = g1.reshape(n_blocks, 1, Cb)
    b1_p = b1.reshape(n_blocks, 1, Cb)
    # (Cout, 1, 3, 3) -> (nb, 9, Cb)       [tap-major, channels on lanes]
    wdw_p = jnp.transpose(w_dw.reshape(n_blocks, Cb, 9), (0, 2, 1))
    g2_p = g2.reshape(n_blocks, 1, Cb)
    b2_p = b2.reshape(n_blocks, 1, Cb)
    return w1_p, g1_p, b1_p, wdw_p, g2_p, b2_p


# ----------------------------------------------------------------------------
# Forward wrapper (jitted): NCHW -> flat NHWC, single fused pallas_call, NCHW
# ----------------------------------------------------------------------------
def model_forward(x_nchw, w1_p, g1_p, b1_p, wdw_p, g2_p, b2_p):
    N, Cin, H, W = x_nchw.shape
    assert N == 1  # TODO(synk): generalize in-kernel padding for batch > 1
    nb, _, Cb = w1_p.shape
    HW = H * W

    x_flat = jnp.transpose(x_nchw, (0, 2, 3, 1)).reshape(HW, Cin)

    out = pl.pallas_call(
        fused_kernel,
        out_shape=jax.ShapeDtypeStruct((nb, H, W, Cb), jnp.float32),
        grid_spec=pltpu.PrefetchScalarGridSpec(
            num_scalar_prefetch=0,
            grid=(nb,),
            in_specs=[
                pl.BlockSpec((HW, Cin), lambda c: (0, 0)),          # x (shared)
                pl.BlockSpec((1, Cin, Cb), lambda c: (c, 0, 0)),    # w1 block
                pl.BlockSpec((1, 1, Cb), lambda c: (c, 0, 0)),      # g1
                pl.BlockSpec((1, 1, Cb), lambda c: (c, 0, 0)),      # b1
                pl.BlockSpec((1, 9, Cb), lambda c: (c, 0, 0)),      # dw taps
                pl.BlockSpec((1, 1, Cb), lambda c: (c, 0, 0)),      # g2
                pl.BlockSpec((1, 1, Cb), lambda c: (c, 0, 0)),      # b2
            ],
            out_specs=pl.BlockSpec((1, H, W, Cb), lambda c: (c, 0, 0, 0)),
            scratch_shapes=[pltpu.VMEM((H + 2, W + 2, Cb), jnp.float32)],
        ),
        compiler_params=pltpu.CompilerParams(
            dimension_semantics=("parallel",)),
    )(x_flat, w1_p, g1_p, b1_p, wdw_p, g2_p, b2_p)

    # (nb, H, W, Cb) -> (N, Cout, H, W)  with channel = blk*Cb + c
    return jnp.transpose(out, (0, 3, 1, 2)).reshape(N, nb * Cb, H, W)


# ----------------------------------------------------------------------------
# Pure-JAX reference (for correctness check)
# ----------------------------------------------------------------------------
def reference_forward(x_nchw, w1, g1, b1, w_dw, g2, b2):
    N, Cin, H, W = x_nchw.shape
    Cout = w1.shape[0]
    x = jnp.transpose(x_nchw, (0, 2, 3, 1))                    # NHWC
    z = jnp.einsum('nhwc,oc->nhwo', x, w1.reshape(Cout, Cin))
    m = jnp.mean(z, axis=(0, 1, 2))
    v = jnp.mean((z - m) ** 2, axis=(0, 1, 2))
    y = jnp.maximum((z - m) / jnp.sqrt(v + EPS) * g1 + b1, 0.0)
    yp = jnp.pad(y, ((0, 0), (1, 1), (1, 1), (0, 0)))
    wk = jnp.transpose(w_dw.reshape(Cout, 3, 3), (1, 2, 0))
    acc = jnp.zeros_like(y)
    for dh in range(3):
        for dw in range(3):
            acc = acc + yp[:, dh:dh + H, dw:dw + W, :] * wk[dh, dw, :]
    m2 = jnp.mean(acc, axis=(0, 1, 2))
    v2 = jnp.mean((acc - m2) ** 2, axis=(0, 1, 2))
    out = (acc - m2) / jnp.sqrt(v2 + EPS) * g2 + b2
    return jnp.transpose(out, (0, 3, 1, 2))


if __name__ == "__main__":
    key = jax.random.PRNGKey(0)
    k_x, k_w1, k_g1, k_b1, k_wd, k_g2, k_b2 = jax.random.split(key, 7)

    N, Cin, H, W = 1, 144, 7, 7
    Cout = 864

    x = jax.random.normal(k_x, (N, Cin, H, W), jnp.float32)
    # parameters (deterministic synthetic init; shapes match the torch module)
    w1 = jax.random.normal(k_w1, (Cout, Cin, 1, 1), jnp.float32) * 0.05
    g1 = jax.random.uniform(k_g1, (Cout,), jnp.float32, 0.5, 1.5)
    b1 = jax.random.normal(k_b1, (Cout,), jnp.float32) * 0.1
    w_dw = jax.random.normal(k_wd, (Cout, 1, 3, 3), jnp.float32) * 0.1
    g2 = jax.random.uniform(k_g2, (Cout,), jnp.float32, 0.5, 1.5)
    b2 = jax.random.normal(k_b2, (Cout,), jnp.float32) * 0.1

    # one-time weight layout prep (outside the jitted per-call graph)
    params = prepare_params(w1, g1, b1, w_dw, g2, b2)

    out = jax.jit(model_forward)(x, *params)
    out = jax.block_until_ready(out)

    ref = reference_forward(x, w1, g1, b1, w_dw, g2, b2)
    assert out.shape == (N, Cout, H, W), out.shape
    assert jnp.allclose(out, ref, rtol=1e-3, atol=1e-3), \
        float(jnp.max(jnp.abs(out - ref)))

    print("KERNEL_OK")
</pallas_src>

<mosaic_0001>
module attributes {stable_mosaic.version = 11 : i64} {
  func.func @fused_kernel(%arg0: i32, %arg1: memref<49x144xf32, #tpu.memory_space<vmem>>, %arg2: memref<1x144x432xf32, #tpu.memory_space<vmem>>, %arg3: memref<1x1x432xf32, #tpu.memory_space<vmem>>, %arg4: memref<1x1x432xf32, #tpu.memory_space<vmem>>, %arg5: memref<1x9x432xf32, #tpu.memory_space<vmem>>, %arg6: memref<1x1x432xf32, #tpu.memory_space<vmem>>, %arg7: memref<1x1x432xf32, #tpu.memory_space<vmem>>, %arg8: memref<1x7x7x432xf32, #tpu.memory_space<vmem>>, %arg9: memref<9x9x432xf32, #tpu.memory_space<vmem>>) attributes {dimension_semantics = [#tpu.dimension_semantics<parallel>], iteration_bounds = array<i64: 2>, scalar_prefetch = 0 : i64, scratch_operands = 1 : i64, tpu.core_type = #tpu.core_type<tc>, window_params = [{pipeline_mode = #tpu.pipeline_mode<synchronous>, transform_indices = @transform_0, window_bounds = array<i64: 49, 144>}, {transform_indices = @transform_1, window_bounds = array<i64: 1, 144, 432>}, {transform_indices = @transform_2, window_bounds = array<i64: 1, 1, 432>}, {transform_indices = @transform_3, window_bounds = array<i64: 1, 1, 432>}, {transform_indices = @transform_4, window_bounds = array<i64: 1, 9, 432>}, {transform_indices = @transform_5, window_bounds = array<i64: 1, 1, 432>}, {transform_indices = @transform_6, window_bounds = array<i64: 1, 1, 432>}, {transform_indices = @transform_7, window_bounds = array<i64: 1, 7, 7, 432>}]} {
    %c0 = arith.constant 0 : index
    %c0_0 = arith.constant 0 : index
    %0 = vector.load %arg1[%c0, %c0_0] : memref<49x144xf32, #tpu.memory_space<vmem>>, vector<49x144xf32>
    %c0_1 = arith.constant 0 : index
    %c0_2 = arith.constant 0 : index
    %c0_3 = arith.constant 0 : index
    %1 = vector.load %arg2[%c0_1, %c0_2, %c0_3] : memref<1x144x432xf32, #tpu.memory_space<vmem>>, vector<1x144x432xf32>
    %2 = vector.shape_cast %1 : vector<1x144x432xf32> to vector<144x432xf32>
    %cst = arith.constant dense<0.000000e+00> : vector<49x432xf32>
    %3 = tpu.matmul %0, %2, %cst {dimension_numbers = #tpu.dot_dimension_numbers<[1], [0], [0], [1], [0, 0, 1, 1], [], []>} : vector<49x144xf32>, vector<144x432xf32>, vector<49x432xf32> -> vector<49x432xf32>
    %cst_4 = arith.constant dense<0.000000e+00> : vector<432xf32>
    %4 = vector.multi_reduction <add>, %3, %cst_4 [0] : vector<49x432xf32> to vector<432xf32>
    %5 = vector.shape_cast %4 : vector<432xf32> to vector<1x432xf32>
    %cst_5 = arith.constant 4.900000e+01 : f32
    %6 = vector.broadcast %cst_5 : f32 to vector<1x432xf32>
    %7 = arith.divf %5, %6 : vector<1x432xf32>
    %8 = vector.broadcast %7 : vector<1x432xf32> to vector<49x432xf32>
    %9 = arith.subf %3, %8 : vector<49x432xf32>
    %10 = arith.mulf %9, %9 : vector<49x432xf32>
    %cst_6 = arith.constant dense<0.000000e+00> : vector<432xf32>
    %11 = vector.multi_reduction <add>, %10, %cst_6 [0] : vector<49x432xf32> to vector<432xf32>
    %12 = vector.shape_cast %11 : vector<432xf32> to vector<1x432xf32>
    %cst_7 = arith.constant 4.900000e+01 : f32
    %13 = vector.broadcast %cst_7 : f32 to vector<1x432xf32>
    %14 = arith.divf %12, %13 : vector<1x432xf32>
    %cst_8 = arith.constant 9.99999974E-6 : f32
    %15 = vector.broadcast %cst_8 : f32 to vector<1x432xf32>
    %16 = arith.addf %14, %15 : vector<1x432xf32>
    %17 = math.rsqrt %16 : vector<1x432xf32>
    %c0_9 = arith.constant 0 : index
    %c0_10 = arith.constant 0 : index
    %c0_11 = arith.constant 0 : index
    %18 = vector.load %arg3[%c0_9, %c0_10, %c0_11] : memref<1x1x432xf32, #tpu.memory_space<vmem>>, vector<1x1x432xf32>
    %19 = vector.shape_cast %18 : vector<1x1x432xf32> to vector<1x432xf32>
    %20 = arith.mulf %17, %19 : vector<1x432xf32>
    %21 = vector.broadcast %20 : vector<1x432xf32> to vector<49x432xf32>
    %22 = arith.mulf %9, %21 : vector<49x432xf32>
    %c0_12 = arith.constant 0 : index
    %c0_13 = arith.constant 0 : index
    %c0_14 = arith.constant 0 : index
    %23 = vector.load %arg4[%c0_12, %c0_13, %c0_14] : memref<1x1x432xf32, #tpu.memory_space<vmem>>, vector<1x1x432xf32>
    %24 = vector.shape_cast %23 : vector<1x1x432xf32> to vector<1x432xf32>
    %25 = vector.broadcast %24 : vector<1x432xf32> to vector<49x432xf32>
    %26 = arith.addf %22, %25 : vector<49x432xf32>
    %cst_15 = arith.constant 0.000000e+00 : f32
    %27 = vector.broadcast %cst_15 : f32 to vector<49x432xf32>
    %28 = arith.maximumf %26, %27 : vector<49x432xf32>
    %cst_16 = arith.constant 0.000000e+00 : f32
    %29 = vector.broadcast %cst_16 : f32 to vector<9x9x432xf32>
    %c0_17 = arith.constant 0 : index
    %c0_18 = arith.constant 0 : index
    %c0_19 = arith.constant 0 : index
    %30 = vector.load %arg9[%c0_17, %c0_18, %c0_19] : memref<9x9x432xf32, #tpu.memory_space<vmem>>, vector<9x9x432xf32>
    tpu.vector_store %arg9[%c0_17, %c0_18, %c0_19], %29 {strides = array<i32>} : memref<9x9x432xf32, #tpu.memory_space<vmem>>, vector<9x9x432xf32>,
    %31 = vector.extract_strided_slice %28 {offsets = [0, 0], sizes = [7, 432], strides = [1, 1]} : vector<49x432xf32> to vector<7x432xf32>
    %c1 = arith.constant 1 : index
    %c1_20 = arith.constant 1 : index
    %c0_21 = arith.constant 0 : index
    %32 = vector.load %arg9[%c1, %c1_20, %c0_21] : memref<9x9x432xf32, #tpu.memory_space<vmem>>, vector<1x7x432xf32>
    %33 = vector.shape_cast %32 : vector<1x7x432xf32> to vector<7x432xf32>
    %34 = vector.shape_cast %31 : vector<7x432xf32> to vector<1x7x432xf32>
    tpu.vector_store %arg9[%c1, %c1_20, %c0_21], %34 {strides = array<i32>} : memref<9x9x432xf32, #tpu.memory_space<vmem>>, vector<1x7x432xf32>,
    %35 = vector.extract_strided_slice %28 {offsets = [7, 0], sizes = [7, 432], strides = [1, 1]} : vector<49x432xf32> to vector<7x432xf32>
    %c2 = arith.constant 2 : index
    %c1_22 = arith.constant 1 : index
    %c0_23 = arith.constant 0 : index
    %36 = vector.load %arg9[%c2, %c1_22, %c0_23] : memref<9x9x432xf32, #tpu.memory_space<vmem>>, vector<1x7x432xf32>
    %37 = vector.shape_cast %36 : vector<1x7x432xf32> to vector<7x432xf32>
    %38 = vector.shape_cast %35 : vector<7x432xf32> to vector<1x7x432xf32>
    tpu.vector_store %arg9[%c2, %c1_22, %c0_23], %38 {strides = array<i32>} : memref<9x9x432xf32, #tpu.memory_space<vmem>>, vector<1x7x432xf32>,
    %39 = vector.extract_strided_slice %28 {offsets = [14, 0], sizes = [7, 432], strides = [1, 1]} : vector<49x432xf32> to vector<7x432xf32>
    %c3 = arith.constant 3 : index
    %c1_24 = arith.constant 1 : index
    %c0_25 = arith.constant 0 : index
    %40 = vector.load %arg9[%c3, %c1_24, %c0_25] : memref<9x9x432xf32, #tpu.memory_space<vmem>>, vector<1x7x432xf32>
    %41 = vector.shape_cast %40 : vector<1x7x432xf32> to vector<7x432xf32>
    %42 = vector.shape_cast %39 : vector<7x432xf32> to vector<1x7x432xf32>
    tpu.vector_store %arg9[%c3, %c1_24, %c0_25], %42 {strides = array<i32>} : memref<9x9x432xf32, #tpu.memory_space<vmem>>, vector<1x7x432xf32>,
    %43 = vector.extract_strided_slice %28 {offsets = [21, 0], sizes = [7, 432], strides = [1, 1]} : vector<49x432xf32> to vector<7x432xf32>
    %c4 = arith.constant 4 : index
    %c1_26 = arith.constant 1 : index
    %c0_27 = arith.constant 0 : index
    %44 = vector.load %arg9[%c4, %c1_26, %c0_27] : memref<9x9x432xf32, #tpu.memory_space<vmem>>, vector<1x7x432xf32>
    %45 = vector.shape_cast %44 : vector<1x7x432xf32> to vector<7x432xf32>
    %46 = vector.shape_cast %43 : vector<7x432xf32> to vector<1x7x432xf32>
    tpu.vector_store %arg9[%c4, %c1_26, %c0_27], %46 {strides = array<i32>} : memref<9x9x432xf32, #tpu.memory_space<vmem>>, vector<1x7x432xf32>,
    %47 = vector.extract_strided_slice %28 {offsets = [28, 0], sizes = [7, 432], strides = [1, 1]} : vector<49x432xf32> to vector<7x432xf32>
    %c5 = arith.constant 5 : index
    %c1_28 = arith.constant 1 : index
    %c0_29 = arith.constant 0 : index
    %48 = vector.load %arg9[%c5, %c1_28, %c0_29] : memref<9x9x432xf32, #tpu.memory_space<vmem>>, vector<1x7x432xf32>
    %49 = vector.shape_cast %48 : vector<1x7x432xf32> to vector<7x432xf32>
    %50 = vector.shape_cast %47 : vector<7x432xf32> to vector<1x7x432xf32>
    tpu.vector_store %arg9[%c5, %c1_28, %c0_29], %50 {strides = array<i32>} : memref<9x9x432xf32, #tpu.memory_space<vmem>>, vector<1x7x432xf32>,
    %51 = vector.extract_strided_slice %28 {offsets = [35, 0], sizes = [7, 432], strides = [1, 1]} : vector<49x432xf32> to vector<7x432xf32>
    %c6 = arith.constant 6 : index
    %c1_30 = arith.constant 1 : index
    %c0_31 = arith.constant 0 : index
    %52 = vector.load %arg9[%c6, %c1_30, %c0_31] : memref<9x9x432xf32, #tpu.memory_space<vmem>>, vector<1x7x432xf32>
    %53 = vector.shape_cast %52 : vector<1x7x432xf32> to vector<7x432xf32>
    %54 = vector.shape_cast %51 : vector<7x432xf32> to vector<1x7x432xf32>
    tpu.vector_store %arg9[%c6, %c1_30, %c0_31], %54 {strides = array<i32>} : memref<9x9x432xf32, #tpu.memory_space<vmem>>, vector<1x7x432xf32>,
    %55 = vector.extract_strided_slice %28 {offsets = [42, 0], sizes = [7, 432], strides = [1, 1]} : vector<49x432xf32> to vector<7x432xf32>
    %c7 = arith.constant 7 : index
    %c1_32 = arith.constant 1 : index
    %c0_33 = arith.constant 0 : index
    %56 = vector.load %arg9[%c7, %c1_32, %c0_33] : memref<9x9x432xf32, #tpu.memory_space<vmem>>, vector<1x7x432xf32>
    %57 = vector.shape_cast %56 : vector<1x7x432xf32> to vector<7x432xf32>
    %58 = vector.shape_cast %55 : vector<7x432xf32> to vector<1x7x432xf32>
    tpu.vector_store %arg9[%c7, %c1_32, %c0_33], %58 {strides = array<i32>} : memref<9x9x432xf32, #tpu.memory_space<vmem>>, vector<1x7x432xf32>,
    %c0_34 = arith.constant 0 : index
    %c0_35 = arith.constant 0 : index
    %c0_36 = arith.constant 0 : index
    %59 = vector.load %arg9[%c0_34, %c0_35, %c0_36] : memref<9x9x432xf32, #tpu.memory_space<vmem>>, vector<9x9x432xf32>
    %c0_37 = arith.constant 0 : index
    %c0_38 = arith.constant 0 : index
    %c0_39 = arith.constant 0 : index
    %60 = vector.load %arg5[%c0_37, %c0_38, %c0_39] : memref<1x9x432xf32, #tpu.memory_space<vmem>>, vector<1x9x432xf32>
    %61 = vector.shape_cast %60 : vector<1x9x432xf32> to vector<9x432xf32>
    %cst_40 = arith.constant 0.000000e+00 : f32
    %62 = vector.broadcast %cst_40 : f32 to vector<7x7x432xf32>
    %63 = vector.extract_strided_slice %59 {offsets = [0, 0, 0], sizes = [7, 7, 432], strides = [1, 1, 1]} : vector<9x9x432xf32> to vector<7x7x432xf32>
    %64 = vector.extract_strided_slice %61 {offsets = [0, 0], sizes = [1, 432], strides = [1, 1]} : vector<9x432xf32> to vector<1x432xf32>
    %65 = vector.shape_cast %64 : vector<1x432xf32> to vector<432xf32>
    %66 = vector.shape_cast %65 : vector<432xf32> to vector<1x1x432xf32>
    %67 = vector.broadcast %66 : vector<1x1x432xf32> to vector<7x7x432xf32>
    %68 = arith.mulf %63, %67 : vector<7x7x432xf32>
    %69 = arith.addf %62, %68 : vector<7x7x432xf32>
    %70 = vector.extract_strided_slice %59 {offsets = [0, 1, 0], sizes = [7, 7, 432], strides = [1, 1, 1]} : vector<9x9x432xf32> to vector<7x7x432xf32>
    %71 = vector.extract_strided_slice %61 {offsets = [1, 0], sizes = [1, 432], strides = [1, 1]} : vector<9x432xf32> to vector<1x432xf32>
    %72 = vector.shape_cast %71 : vector<1x432xf32> to vector<432xf32>
    %73 = vector.shape_cast %72 : vector<432xf32> to vector<1x1x432xf32>
    %74 = vector.broadcast %73 : vector<1x1x432xf32> to vector<7x7x432xf32>
    %75 = arith.mulf %70, %74 : vector<7x7x432xf32>
    %76 = arith.addf %69, %75 : vector<7x7x432xf32>
    %77 = vector.extract_strided_slice %59 {offsets = [0, 2, 0], sizes = [7, 7, 432], strides = [1, 1, 1]} : vector<9x9x432xf32> to vector<7x7x432xf32>
    %78 = vector.extract_strided_slice %61 {offsets = [2, 0], sizes = [1, 432], strides = [1, 1]} : vector<9x432xf32> to vector<1x432xf32>
    %79 = vector.shape_cast %78 : vector<1x432xf32> to vector<432xf32>
    %80 = vector.shape_cast %79 : vector<432xf32> to vector<1x1x432xf32>
    %81 = vector.broadcast %80 : vector<1x1x432xf32> to vector<7x7x432xf32>
    %82 = arith.mulf %77, %81 : vector<7x7x432xf32>
    %83 = arith.addf %76, %82 : vector<7x7x432xf32>
    %84 = vector.extract_strided_slice %59 {offsets = [1, 0, 0], sizes = [7, 7, 432], strides = [1, 1, 1]} : vector<9x9x432xf32> to vector<7x7x432xf32>
    %85 = vector.extract_strided_slice %61 {offsets = [3, 0], sizes = [1, 432], strides = [1, 1]} : vector<9x432xf32> to vector<1x432xf32>
    %86 = vector.shape_cast %85 : vector<1x432xf32> to vector<432xf32>
    %87 = vector.shape_cast %86 : vector<432xf32> to vector<1x1x432xf32>
    %88 = vector.broadcast %87 : vector<1x1x432xf32> to vector<7x7x432xf32>
    %89 = arith.mulf %84, %88 : vector<7x7x432xf32>
    %90 = arith.addf %83, %89 : vector<7x7x432xf32>
    %91 = vector.extract_strided_slice %59 {offsets = [1, 1, 0], sizes = [7, 7, 432], strides = [1, 1, 1]} : vector<9x9x432xf32> to vector<7x7x432xf32>
    %92 = vector.extract_strided_slice %61 {offsets = [4, 0], sizes = [1, 432], strides = [1, 1]} : vector<9x432xf32> to vector<1x432xf32>
    %93 = vector.shape_cast %92 : vector<1x432xf32> to vector<432xf32>
    %94 = vector.shape_cast %93 : vector<432xf32> to vector<1x1x432xf32>
    %95 = vector.broadcast %94 : vector<1x1x432xf32> to vector<7x7x432xf32>
    %96 = arith.mulf %91, %95 : vector<7x7x432xf32>
    %97 = arith.addf %90, %96 : vector<7x7x432xf32>
    %98 = vector.extract_strided_slice %59 {offsets = [1, 2, 0], sizes = [7, 7, 432], strides = [1, 1, 1]} : vector<9x9x432xf32> to vector<7x7x432xf32>
    %99 = vector.extract_strided_slice %61 {offsets = [5, 0], sizes = [1, 432], strides = [1, 1]} : vector<9x432xf32> to vector<1x432xf32>
    %100 = vector.shape_cast %99 : vector<1x432xf32> to vector<432xf32>
    %101 = vector.shape_cast %100 : vector<432xf32> to vector<1x1x432xf32>
    %102 = vector.broadcast %101 : vector<1x1x432xf32> to vector<7x7x432xf32>
    %103 = arith.mulf %98, %102 : vector<7x7x432xf32>
    %104 = arith.addf %97, %103 : vector<7x7x432xf32>
    %105 = vector.extract_strided_slice %59 {offsets = [2, 0, 0], sizes = [7, 7, 432], strides = [1, 1, 1]} : vector<9x9x432xf32> to vector<7x7x432xf32>
    %106 = vector.extract_strided_slice %61 {offsets = [6, 0], sizes = [1, 432], strides = [1, 1]} : vector<9x432xf32> to vector<1x432xf32>
    %107 = vector.shape_cast %106 : vector<1x432xf32> to vector<432xf32>
    %108 = vector.shape_cast %107 : vector<432xf32> to vector<1x1x432xf32>
    %109 = vector.broadcast %108 : vector<1x1x432xf32> to vector<7x7x432xf32>
    %110 = arith.mulf %105, %109 : vector<7x7x432xf32>
    %111 = arith.addf %104, %110 : vector<7x7x432xf32>
    %112 = vector.extract_strided_slice %59 {offsets = [2, 1, 0], sizes = [7, 7, 432], strides = [1, 1, 1]} : vector<9x9x432xf32> to vector<7x7x432xf32>
    %113 = vector.extract_strided_slice %61 {offsets = [7, 0], sizes = [1, 432], strides = [1, 1]} : vector<9x432xf32> to vector<1x432xf32>
    %114 = vector.shape_cast %113 : vector<1x432xf32> to vector<432xf32>
    %115 = vector.shape_cast %114 : vector<432xf32> to vector<1x1x432xf32>
    %116 = vector.broadcast %115 : vector<1x1x432xf32> to vector<7x7x432xf32>
    %117 = arith.mulf %112, %116 : vector<7x7x432xf32>
    %118 = arith.addf %111, %117 : vector<7x7x432xf32>
    %119 = vector.extract_strided_slice %59 {offsets = [2, 2, 0], sizes = [7, 7, 432], strides = [1, 1, 1]} : vector<9x9x432xf32> to vector<7x7x432xf32>
    %120 = vector.extract_strided_slice %61 {offsets = [8, 0], sizes = [1, 432], strides = [1, 1]} : vector<9x432xf32> to vector<1x432xf32>
    %121 = vector.shape_cast %120 : vector<1x432xf32> to vector<432xf32>
    %122 = vector.shape_cast %121 : vector<432xf32> to vector<1x1x432xf32>
    %123 = vector.broadcast %122 : vector<1x1x432xf32> to vector<7x7x432xf32>
    %124 = arith.mulf %119, %123 : vector<7x7x432xf32>
    %125 = arith.addf %118, %124 : vector<7x7x432xf32>
    %cst_41 = arith.constant dense<0.000000e+00> : vector<432xf32>
    %126 = vector.multi_reduction <add>, %125, %cst_41 [0, 1] : vector<7x7x432xf32> to vector<432xf32>
    %127 = vector.shape_cast %126 : vector<432xf32> to vector<1x1x432xf32>
    %cst_42 = arith.constant 4.900000e+01 : f32
    %128 = vector.broadcast %cst_42 : f32 to vector<1x1x432xf32>
    %129 = arith.divf %127, %128 : vector<1x1x432xf32>
    %130 = vector.broadcast %129 : vector<1x1x432xf32> to vector<7x7x432xf32>
    %131 = arith.subf %125, %130 : vector<7x7x432xf32>
    %132 = arith.mulf %131, %131 : vector<7x7x432xf32>
    %cst_43 = arith.constant dense<0.000000e+00> : vector<432xf32>
    %133 = vector.multi_reduction <add>, %132, %cst_43 [0, 1] : vector<7x7x432xf32> to vector<432xf32>
    %134 = vector.shape_cast %133 : vector<432xf32> to vector<1x1x432xf32>
    %cst_44 = arith.constant 4.900000e+01 : f32
    %135 = vector.broadcast %cst_44 : f32 to vector<1x1x432xf32>
    %136 = arith.divf %134, %135 : vector<1x1x432xf32>
    %cst_45 = arith.constant 9.99999974E-6 : f32
    %137 = vector.broadcast %cst_45 : f32 to vector<1x1x432xf32>
    %138 = arith.addf %136, %137 : vector<1x1x432xf32>
    %139 = math.rsqrt %138 : vector<1x1x432xf32>
    %c0_46 = arith.constant 0 : index
    %c0_47 = arith.constant 0 : index
    %c0_48 = arith.constant 0 : index
    %140 = vector.load %arg6[%c0_46, %c0_47, %c0_48] : memref<1x1x432xf32, #tpu.memory_space<vmem>>, vector<1x1x432xf32>
    %141 = vector.shape_cast %140 : vector<1x1x432xf32> to vector<1x432xf32>
    %142 = vector.shape_cast %141 : vector<1x432xf32> to vector<1x1x432xf32>
    %143 = arith.mulf %139, %142 : vector<1x1x432xf32>
    %144 = vector.broadcast %143 : vector<1x1x432xf32> to vector<7x7x432xf32>
    %145 = arith.mulf %131, %144 : vector<7x7x432xf32>
    %c0_49 = arith.constant 0 : index
    %c0_50 = arith.constant 0 : index
    %c0_51 = arith.constant 0 : index
    %146 = vector.load %arg7[%c0_49, %c0_50, %c0_51] : memref<1x1x432xf32, #tpu.memory_space<vmem>>, vector<1x1x432xf32>
    %147 = vector.shape_cast %146 : vector<1x1x432xf32> to vector<1x432xf32>
    %148 = vector.shape_cast %147 : vector<1x432xf32> to vector<1x1x432xf32>
    %149 = vector.broadcast %148 : vector<1x1x432xf32> to vector<7x7x432xf32>
    %150 = arith.addf %145, %149 : vector<7x7x432xf32>
    %151 = vector.shape_cast %150 : vector<7x7x432xf32> to vector<1x7x7x432xf32>
    %c0_52 = arith.constant 0 : index
    %c0_53 = arith.constant 0 : index
    %c0_54 = arith.constant 0 : index
    %c0_55 = arith.constant 0 : index
    %152 = vector.load %arg8[%c0_52, %c0_53, %c0_54, %c0_55] : memref<1x7x7x432xf32, #tpu.memory_space<vmem>>, vector<1x7x7x432xf32>
    tpu.vector_store %arg8[%c0_52, %c0_53, %c0_54, %c0_55], %151 {strides = array<i32>} : memref<1x7x7x432xf32, #tpu.memory_space<vmem>>, vector<1x7x7x432xf32>,
    return
  }
  func.func @transform_0(%arg0: i32) -> (i32, i32) {
    %c0_i32 = arith.constant 0 : i32
    %c0_i32_0 = arith.constant 0 : i32
    %c0_i32_1 = arith.constant 0 : i32
    return %c0_i32, %c0_i32_0 : i32, i32
  }
  func.func @transform_1(%arg0: i32) -> (i32, i32, i32) {
    %c0_i32 = arith.constant 0 : i32
    %c0_i32_0 = arith.constant 0 : i32
    %c0_i32_1 = arith.constant 0 : i32
    return %arg0, %c0_i32, %c0_i32_0 : i32, i32, i32
  }
  func.func @transform_2(%arg0: i32) -> (i32, i32, i32) {
    %c0_i32 = arith.constant 0 : i32
    %c0_i32_0 = arith.constant 0 : i32
    %c0_i32_1 = arith.constant 0 : i32
    return %arg0, %c0_i32, %c0_i32_0 : i32, i32, i32
  }
  func.func @transform_3(%arg0: i32) -> (i32, i32, i32) {
    %c0_i32 = arith.constant 0 : i32
    %c0_i32_0 = arith.constant 0 : i32
    %c0_i32_1 = arith.constant 0 : i32
    return %arg0, %c0_i32, %c0_i32_0 : i32, i32, i32
  }
  func.func @transform_4(%arg0: i32) -> (i32, i32, i32) {
    %c0_i32 = arith.constant 0 : i32
    %c0_i32_0 = arith.constant 0 : i32
    %c0_i32_1 = arith.constant 0 : i32
    return %arg0, %c0_i32, %c0_i32_0 : i32, i32, i32
  }
  func.func @transform_5(%arg0: i32) -> (i32, i32, i32) {
    %c0_i32 = arith.constant 0 : i32
    %c0_i32_0 = arith.constant 0 : i32
    %c0_i32_1 = arith.constant 0 : i32
    return %arg0, %c0_i32, %c0_i32_0 : i32, i32, i32
  }
  func.func @transform_6(%arg0: i32) -> (i32, i32, i32) {
    %c0_i32 = arith.constant 0 : i32
    %c0_i32_0 = arith.constant 0 : i32
    %c0_i32_1 = arith.constant 0 : i32
    return %arg0, %c0_i32, %c0_i32_0 : i32, i32, i32
  }
  func.func @transform_7(%arg0: i32) -> (i32, i32, i32, i32) {
    %c0_i32 = arith.constant 0 : i32
    %c0_i32_0 = arith.constant 0 : i32
    %c0_i32_1 = arith.constant 0 : i32
    %c0_i32_2 = arith.constant 0 : i32
    return %arg0, %c0_i32, %c0_i32_0, %c0_i32_1 : i32, i32, i32, i32
  }
}

</mosaic_0001>

<bundles_post_ra>
// kernel: model_forward.1
= control target key start
LH: loop header
LB: loop body
LE: loop exit
PB: predicated region body
PF: predicated region fallthrough
CT: control target
= control target key end

     0   :  { %12 = vsyncpa [#allocation4], 0  ;;  %s6089_s0 = inlined_call_operand.vmem [shape: f32[49,144], index: 0, kind: input, shape index: {}]   ;;  %s6090_s1 = inlined_call_operand.hbm [shape: f32[2,144,432], index: 1, kind: input, shape index: {}]   ;;  %s6091_s2 = inlined_call_operand.vmem [shape: f32[2,1,432], index: 2, kind: input, shape index: {}]   ;;  %s6092_s3 = inlined_call_operand.vmem [shape: f32[2,1,432], index: 3, kind: input, shape index: {}]   ;;  %s6093_s4 = inlined_call_operand.vmem [shape: f32[2,9,432], index: 4, kind: input, shape index: {}]   ;;  %s6094_s5 = inlined_call_operand.vmem [shape: f32[2,1,432], index: 5, kind: input, shape index: {}]   ;;  %s6095_s6 = inlined_call_operand.vmem [shape: f32[2,1,432], index: 6, kind: input, shape index: {}]   ;;  %s6096_s7 = inlined_call_operand.vmem [shape: f32[2,7,7,432], index: 7, kind: output, shape index: {}]  }
   0x1   :  { %14 = vsyncpa [#allocation4 + $0x1], 0  ;;  %s3652_s24 = smov 0   ;;  %s3654_s25 = smov 0  }
   0x2   :  { %s3656_s26 = smov 0   ;;  %s3658_s27 = smov 0  }
   0x3 LB: > { %s3671_s28 = sadd.s32 4294967295, %s3606_s27   ;;  %s3674_s29 = sadd.s32 1, %s3606_s27   ;;  %s3606_s27 = sphi %s3658_s27, %s6498_s27   ;;  %s3602_s26 = sphi %s3656_s26, %s6497_s26   ;;  %s3598_s25 = sphi %s3654_s25, %s6496_s25   ;;  %s3594_s24 = sphi %s3652_s24, %s6495_s24  }
   0x4   : > { %s45_s30 = ssub.s32 %s3606_s27, %s3674_s29  ;;  %s48_s8 = sadd.s32 1, %s3602_s26 }
   0x5   : > { %p46_p0 = scmp.eq.s32.totalorder %s45_s30, 0  ;;  %p55_p1 = scmp.ne.s32.totalorder %s3602_s26, %s3598_s25 }
   0x6   : > { %p56_p2 = scmp.eq.s32.totalorder %s3606_s27, 0  ;;  %p61_p3 = scmp.ne.s32.totalorder %s3598_s25, %s3594_s24 }
   0x7   : > { %s3684_s9 = scalar_select %p46_p0, %s3602_s26, %s48_s8  }
   0x8   : > { %p57_p4 = por %p56_p2, %p55_p1  ;;  %p62_p5 = scmp.eq.s32.totalorder %s3671_s28, 0 }
   0x9   : > { %p3478_p6 = scmp.lt.s32.totalorder %s3606_s27, 2  ;;  %s244_s11 = sand.u32 1, %s3602_s26  }
   0xa   : > { %p3688_p7 = por %p62_p5, %p61_p3  ;;  %s3468_s12 = smul.u32 576, %s244_s11 }
   0xb   : > { %s3469_s13 = smul.u32 9216, %s3606_s27  ;;  %p3694_p8 = pnand %p3478_p6, %p57_p4 }
   0xc   : > { %s248_s18 = scalar_lea.vmem [#allocation3], %s3468_s12  ;;  %s3706_s20 = scalar_lea.sflag [#allocation4], %s244_s11 }
   0xd   : > { %s3701_s17 = scalar_lea.hbm %s6090_s1, %s3469_s13  ;;  %s255_s19 = sshll.u32 %s248_s18, 4  ;;  %s3703_s19 = int_to_ptr.vmem [resolvable:$true] %s255_s19 }
   0xe   : > { %s3542_s21 = scalar_lea.hbm %s3701_s17, 9216  ;;  %p3544_p11 = pneg %p3694_p8 }
   0xf   : > { %p3543_p10 = scmp.ne.s32.totalorder %s3701_s17, %s3542_s21  ;;  %s3547_s24 = scalar_lea.hbm %s6090_s1, 18432 }
  0x10   : > { %p3548_p0 = scmp.lt.u32.totalorder %s3701_s17, %s6090_s1  ;;  %p3549_p1 = scmp.lt.u32.totalorder %s3547_s24, %s3542_s21 }
  0x11   : > { %p3545_p12 = pnand %p3544_p11, %p3543_p10  ;;  %p3551_p3 = scmp.lt.u32.totalorder %s3542_s21, %s3701_s17 }
  0x12   : > { %p3550_p2 = por %p3549_p1, %p3548_p0 }
  0x13   : > { %p3546_p13 = pneg %p3545_p12 }
  0x14   : > { %p3552_p4 = por %p3551_p3, %p3550_p2 }
  0x16   : > { %p3553_p5 = pnand %p3552_p4, %p3546_p13 }
  0x18   : > { %3556 = shalt.err (!%p3553_p5)
}
  0x19   : > { %s3557_s11 = scalar_lea.vmem %s3703_s19, 9216  ;;  %s3608_s12 = smov [#allocation3]  }
  0x1a   : > { %p3558_p6 = scmp.ne.s32.totalorder %s3703_s19, %s3557_s11  ;;  %s3562_s13 = sshll.u32 %s3608_s12, 4  ;;  %s3563_s13 = int_to_ptr.vmem [resolvable:$false] %s3562_s13 }
  0x1b   : > { %s3564_s15 = scalar_lea.vmem %s3563_s13, 18432  ;;  %p3565_p9 = scmp.lt.s32.totalorder %s3703_s19, %s3563_s13 }
  0x1c   : > { %p3560_p10 = pnand %p3558_p6, %p3544_p11  ;;  %p3566_p0 = scmp.lt.s32.totalorder %s3564_s15, %s3557_s11 }
  0x1e   : > { %p3561_p12 = pneg %p3560_p10  ;;  %p3567_p1 = por %p3566_p0, %p3565_p9 }
  0x20   : > { %p3568_p2 = pnand %p3567_p1, %p3561_p12 }
  0x22   : > { %3571 = shalt.err (!%p3568_p2)
}
  0x23   : > { %s3609_s16 = smov 512   ;;  %s3610_s18 = smov 32  }
  0x24   : > { %3477 = dma.hbm_to_vmem [thread:$0]  (!%p3694_p8), %s3701_s17, 9216, %s3703_s19, %s3706_s20, %s3609_s16, %s3609_s16, %s3610_s18  }
  0x25   : > { %p299_p11 = scmp.lt.s32.totalorder %s3606_s27, 3  ;;  %p6212_p13 = scmp.ge.s32.totalorder %s3606_s27, 1 }
  0x27   : > { %p300_p3 = pnand %p6212_p13, %p299_p11 }
  0x29   : > { %303 = sbr.rel (%p300_p3) target bundleno = 829 (0x33d), region = 48 }
  0x30   : > { %s305_s21 = sand.u32 1, %s3598_s25  }
  0x31   : > { %s3470_s22 = smul.u32 576, %s305_s21  ;;  %s306_s23 = scalar_lea.sflag [#allocation4], %s305_s21 }
  0x33   : > { %s3738_s24 = scalar_lea.vmem [#allocation3], %s3470_s22 }
  0x34   : > { %3589 = dma.done.wait (%p3688_p7), %s306_s23, 9216  }
  0x35   : > { %3591 = vsyncadd (%p3688_p7), %s306_s23, 4294958080  ;;  %v402_v0 = vld [vmem:[%s3738_s24 + $0x8] sm:$0xff]  ;;  %v404_v2 = vld [vmem:[%s3738_s24 + $0x18] sm:$0xff]  ;;  %vm473_vm0 = vcmask 130048   ;;  %vm749_vm1 = vcmask 392192   ;;  %p361_p7 = scmp.lt.s32.totalorder %s3671_s28, 1 }
  0x36   : > { %v406_v1 = vld [vmem:[%s3738_s24 + $0x28] sm:$0xff]  ;;  %v408_v4 = vld [vmem:[%s3738_s24 + $0x38] sm:$0xff]  ;;  %v401_v5 = vld [vmem:[%s3738_s24] sm:$0xff]  ;;  %vm714_vm2 = vcmask 1040384   ;;  %vm1247_vm3 = vcmask 1045504   ;;  %vm761_vm4 = vcmask 385024  }
  0x37   : > { %v3396_v3 = vpack.c.bf16 %v406_v1, %v402_v0  ;;  %v405_v6 = vld [vmem:[%s3738_s24 + $0x20] sm:$0xff]  ;;  %v3432_v7 = vpack.c.bf16 %v408_v4, %v404_v2  ;;  %v403_v9 = vld [vmem:[%s3738_s24 + $0x10] sm:$0xff]  ;;  %v410_v11 = vld [vmem:[%s3738_s24 + $0x48] sm:$0xff]  ;;  %s6500_s28 = smov (!%p361_p7, %s3671_s28), 1  ;;  %vm1143_vm5 = vcmask 1041408   ;;  %vm1169_vm6 = vcmask 1042432  }
  0x38   : > { %v3398_v8 = vpack.c.bf16 %v405_v6, %v401_v5  ;;  %v407_v10 = vld [vmem:[%s3738_s24 + $0x30] sm:$0xff]  ;;  %v414_v13 = vld [vmem:[%s3738_s24 + $0x68] sm:$0xff]  ;;  %v412_v14 = vld [vmem:[%s3738_s24 + $0x58] sm:$0xff]  ;;  %s3395_s13 = sshll.u32 %s6500_s28, 6  ;;  %s4090_s21 = sshll.u32 %s6500_s28, 2  ;;  %vm1195_vm7 = vcmask 1043456  }
  0x39   : > { %3397 = vmatprep.subr.bf16.mxu0 %v3396_v3  ;;  %v3434_v12 = vpack.c.bf16 %v407_v10, %v403_v9  ;;  %v416_v15 = vld [vmem:[%s3738_s24 + $0x78] sm:$0xff]  ;;  %3433 = vmatprep.subr.bf16.mxu1 %v3432_v7  ;;  %v3400_v16 = vpack.c.bf16 %v414_v13, %v410_v11  ;;  %v409_v18 = vld [vmem:[%s3738_s24 + $0x40] sm:$0xff]  ;;  %v411_v20 = vld [vmem:[%s3738_s24 + $0x50] sm:$0xff]  ;;  %s3947_s18 = scalar_lea.vmem %s6093_s4, %s3395_s13  ;;  %s4120_s14 = scalar_lea.vmem %s6092_s3, %s4090_s21  ;;  %vm1221_vm8 = vcmask 1044480   ;;  %vm1273_vm9 = vcmask 1046528  }
  0x3a   : > { %3399 = vmatpush1.bf16.msra.mxu0 %v3398_v8  ;;  %v3436_v17 = vpack.c.bf16 %v416_v15, %v412_v14  ;;  %v413_v19 = vld [vmem:[%s3738_s24 + $0x60] sm:$0xff]  ;;  %v415_v22 = vld [vmem:[%s3738_s24 + $0x70] sm:$0xff]  ;;  %v418_v23 = vld [vmem:[%s3738_s24 + $0x88] sm:$0xff]  ;;  %s4502_s20 = scalar_lea.vmem %s6094_s5, %s4090_s21  ;;  %s4613_s11 = scalar_lea.vmem %s6095_s6, %s4090_s21  ;;  %vm1137_vm10 = vcmask 392193   ;;  %vm2920_vm11 = vcmask 391168  }
  0x3b   : > { %3435 = vmatpush1.bf16.msra.mxu1 %v3434_v12  ;;  %v3402_v21 = vpack.c.bf16 %v413_v19, %v409_v18  ;;  %v422_v24 = vld [vmem:[%s3738_s24 + $0xa8] sm:$0xff]  ;;  %3401 = vmatprep.subr.bf16.mxu0 %v3400_v16  ;;  %v3438_v25 = vpack.c.bf16 %v415_v22, %v411_v20  ;;  %v420_v27 = vld [vmem:[%s3738_s24 + $0x98] sm:$0xff]  ;;  %v417_v29 = vld [vmem:[%s3738_s24 + $0x80] sm:$0xff]  ;;  %s3471_s12 = smul.u32 224, %s6500_s28 }
  0x3c   : > { %3437 = vmatprep.subr.bf16.mxu1 %v3436_v17  ;;  %v3404_v26 = vpack.c.bf16 %v422_v24, %v418_v23  ;;  %v424_v28 = vld [vmem:[%s3738_s24 + $0xb8] sm:$0xff]  ;;  %v421_v31 = vld [vmem:[%s3738_s24 + $0xa0] sm:$0xff]  ;;  %v419_v32 = vld [vmem:[%s3738_s24 + $0x90] sm:$0xff] }
  0x3d   : > { %v3440_v30 = vpack.c.bf16 %v424_v28, %v420_v27  ;;  %v423_v33 = vld [vmem:[%s3738_s24 + $0xb0] sm:$0xff]  ;;  %v3406_v34 = vpack.c.bf16 %v421_v31, %v417_v29  ;;  %v426_v35 = vld [vmem:[%s3738_s24 + $0xc8] sm:$0xff]  ;;  %v428_v37 = vld [vmem:[%s3738_s24 + $0xd8] sm:$0xff]  ;;  %s5244_s15 = scalar_lea.vmem %s6096_s7, %s3471_s12 }
  0x3e   : > { %3403 = vmatpush1.bf16.msra.mxu0 %v3402_v21  ;;  %v430_v36 = vld [vmem:[%s3738_s24 + $0xe8] sm:$0xff]  ;;  %v3442_v38 = vpack.c.bf16 %v423_v33, %v419_v32  ;;  %v432_v40 = vld [vmem:[%s3738_s24 + $0xf8] sm:$0xff]  ;;  %v425_v41 = vld [vmem:[%s3738_s24 + $0xc0] sm:$0xff] }
  0x3f   : > { %3439 = vmatpush1.bf16.msra.mxu1 %v3438_v25  ;;  %3405 = vmatprep.subr.bf16.mxu0 %v3404_v26  ;;  %v3408_v39 = vpack.c.bf16 %v430_v36, %v426_v35  ;;  %v429_v42 = vld [vmem:[%s3738_s24 + $0xe0] sm:$0xff]  ;;  %v3444_v43 = vpack.c.bf16 %v432_v40, %v428_v37  ;;  %v427_v44 = vld [vmem:[%s3738_s24 + $0xd0] sm:$0xff]  ;;  %v434_v46 = vld [vmem:[%s3738_s24 + $0x108] sm:$0xff] }
  0x40   : > { %3441 = vmatprep.subr.bf16.mxu1 %v3440_v30  ;;  %v431_v45 = vld [vmem:[%s3738_s24 + $0xf0] sm:$0xff]  ;;  %v438_v47 = vld [vmem:[%s3738_s24 + $0x128] sm:$0xff]  ;;  %v436_v48 = vld [vmem:[%s3738_s24 + $0x118] sm:$0xff]  ;;  %v3410_v50 = vpack.c.bf16 %v429_v42, %v425_v41 }
  0x41   : > { %v440_v49 = vld [vmem:[%s3738_s24 + $0x138] sm:$0xff]  ;;  %v3446_v51 = vpack.c.bf16 %v431_v45, %v427_v44  ;;  %v3412_v52 = vpack.c.bf16 %v438_v47, %v434_v46  ;;  %v433_v53 = vld [vmem:[%s3738_s24 + $0x100] sm:$0xff]  ;;  %v435_v55 = vld [vmem:[%s3738_s24 + $0x110] sm:$0xff] }
  0x42   : > { %3407 = vmatpush1.bf16.msra.mxu0 %v3406_v34  ;;  %v437_v54 = vld [vmem:[%s3738_s24 + $0x120] sm:$0xff]  ;;  %v3448_v56 = vpack.c.bf16 %v440_v49, %v436_v48  ;;  %v439_v57 = vld [vmem:[%s3738_s24 + $0x130] sm:$0xff]  ;;  %v442_v58 = vld [vmem:[%s3738_s24 + $0x148] sm:$0xff] }
  0x43   : > { %3443 = vmatpush1.bf16.msra.mxu1 %v3442_v38  ;;  %3409 = vmatprep.subr.bf16.mxu0 %v3408_v39  ;;  %v446_v59 = vld [vmem:[%s3738_s24 + $0x168] sm:$0xff]  ;;  %v444_v60 = vld [vmem:[%s3738_s24 + $0x158] sm:$0xff]  ;;  %v3414_v62 = vpack.c.bf16 %v437_v54, %v433_v53  ;;  %v3450_v63 = vpack.c.bf16 %v439_v57, %v435_v55  ;;  %v441_v1 = vld [vmem:[%s3738_s24 + $0x140] sm:$0xff] }
  0x44   : > { %3445 = vmatprep.subr.bf16.mxu1 %v3444_v43  ;;  %v448_v61 = vld [vmem:[%s3738_s24 + $0x178] sm:$0xff]  ;;  %v3416_v0 = vpack.c.bf16 %v446_v59, %v442_v58  ;;  %v445_v2 = vld [vmem:[%s3738_s24 + $0x160] sm:$0xff]  ;;  %v443_v3 = vld [vmem:[%s3738_s24 + $0x150] sm:$0xff]  ;;  %v6097_v58 = vmov 0.0   ;;  %v903_v59 = vlaneseq }
  0x45   : > { %v3452_v4 = vpack.c.bf16 %v448_v61, %v444_v60  ;;  %v447_v5 = vld [vmem:[%s3738_s24 + $0x170] sm:$0xff]  ;;  %v450_v6 = vld [vmem:[%s3738_s24 + $0x188] sm:$0xff]  ;;  %v452_v8 = vld [vmem:[%s3738_s24 + $0x198] sm:$0xff]  ;;  %v3418_v10 = vpack.c.bf16 %v445_v2, %v441_v1  ;;  %1049 = vst [vmem:[#allocation2] sm:$0xff] %v6097_v58 }
  0x46   : > { %3411 = vmatpush1.bf16.msra.mxu0 %v3410_v50  ;;  %v454_v7 = vld [vmem:[%s3738_s24 + $0x1a8] sm:$0xff]  ;;  %v456_v9 = vld [vmem:[%s3738_s24 + $0x1b8] sm:$0xff]  ;;  %v3454_v11 = vpack.c.bf16 %v447_v5, %v443_v3  ;;  %v449_v13 = vld [vmem:[%s3738_s24 + $0x180] sm:$0xff]  ;;  %1053 = vst [vmem:[#allocation2 + $0x20] sm:$0x1] %v6097_v58  ;;  %v3949_v60 = vshrl.u32 %v903_v59, 7 }
  0x47   : > { %3447 = vmatpush1.bf16.msra.mxu1 %v3446_v51  ;;  %3413 = vmatprep.subr.bf16.mxu0 %v3412_v52  ;;  %v3420_v12 = vpack.c.bf16 %v454_v7, %v450_v6  ;;  %v453_v14 = vld [vmem:[%s3738_s24 + $0x1a0] sm:$0xff]  ;;  %v451_v15 = vld [vmem:[%s3738_s24 + $0x190] sm:$0xff]  ;;  %v3456_v16 = vpack.c.bf16 %v456_v9, %v452_v8  ;;  %v458_v18 = vld [vmem:[%s3738_s24 + $0x1c8] sm:$0xff]  ;;  %1057 = vst [vmem:[#allocation2 + $0x40] sm:$0xff] %v6097_v58 }
  0x48   : > { %3449 = vmatprep.subr.bf16.mxu1 %v3448_v56  ;;  %v455_v17 = vld [vmem:[%s3738_s24 + $0x1b0] sm:$0xff]  ;;  %v462_v19 = vld [vmem:[%s3738_s24 + $0x1e8] sm:$0xff]  ;;  %v460_v20 = vld [vmem:[%s3738_s24 + $0x1d8] sm:$0xff]  ;;  %v3422_v22 = vpack.c.bf16 %v453_v14, %v449_v13  ;;  %1061 = vst [vmem:[#allocation2 + $0x60] sm:$0x1] %v6097_v58  ;;  %v3952_v61 = vsub.s32 4, %v3949_v60 }
  0x49   : > { %v464_v21 = vld [vmem:[%s3738_s24 + $0x1f8] sm:$0xff]  ;;  %v388_v23 = vld [vmem:[%s6089_s0 + $0x8] sm:$0xff]  ;;  %v3458_v24 = vpack.c.bf16 %v455_v17, %v451_v15  ;;  %v3424_v25 = vpack.c.bf16 %v462_v19, %v458_v18  ;;  %v457_v26 = vld [vmem:[%s3738_s24 + $0x1c0] sm:$0xff]  ;;  %1065 = vst [vmem:[#allocation2 + $0x80] sm:$0xff] %v6097_v58  ;;  %v3987_v8 = vsub.s32 6, %v3949_v60 }
  0x4a   : > { %3415 = vmatpush1.bf16.msra.mxu0 %v3414_v62  ;;  %v461_v27 = vld [vmem:[%s3738_s24 + $0x1e0] sm:$0xff]  ;;  %v459_v28 = vld [vmem:[%s3738_s24 + $0x1d0] sm:$0xff]  ;;  %v3460_v29 = vpack.c.bf16 %v464_v21, %v460_v20  ;;  %v466_v31 = vld [vmem:[%s3738_s24 + $0x208] sm:$0xff]  ;;  %3375 = vmatprep.mubr.msk.f32.mxu0 %vm473_vm0, %v388_v23  ;;  %1069 = vst [vmem:[#allocation2 + $0xa0] sm:$0x1] %v6097_v58 }
  0x4b   : > { %3451 = vmatpush1.bf16.msra.mxu1 %v3450_v63  ;;  %3417 = vmatprep.subr.bf16.mxu0 %v3416_v0  ;;  %v463_v30 = vld [vmem:[%s3738_s24 + $0x1f0] sm:$0xff]  ;;  %v470_v32 = vld [vmem:[%s3738_s24 + $0x228] sm:$0xff]  ;;  %v468_v33 = vld [vmem:[%s3738_s24 + $0x218] sm:$0xff]  ;;  %v3426_v35 = vpack.c.bf16 %v461_v27, %v457_v26  ;;  %1073 = vst [vmem:[#allocation2 + $0xc0] sm:$0xff] %v6097_v58 }
  0x4c   : > { %3453 = vmatprep.subr.bf16.mxu1 %v3452_v4  ;;  %v472_v34 = vld [vmem:[%s3738_s24 + $0x238] sm:$0xff]  ;;  %3382 = vmatprep.mubr.msk.f32.mxu1 %vm473_vm0, %v388_v23  ;;  %v3462_v36 = vpack.c.bf16 %v463_v30, %v459_v28  ;;  %v3428_v37 = vpack.c.bf16 %v470_v32, %v466_v31  ;;  %v465_v38 = vld [vmem:[%s3738_s24 + $0x200] sm:$0xff]  ;;  %v467_v41 = vld [vmem:[%s3738_s24 + $0x210] sm:$0xff]  ;;  %1077 = vst [vmem:[#allocation2 + $0xe0] sm:$0x1] %v6097_v58  ;;  %v3973_v4 = vsub.s32 5, %v3949_v60 }
  0x4d   : > { %v469_v39 = vld [vmem:[%s3738_s24 + $0x220] sm:$0xff]  ;;  %v3464_v40 = vpack.c.bf16 %v472_v34, %v468_v33  ;;  %v471_v42 = vld [vmem:[%s3738_s24 + $0x230] sm:$0xff]  ;;  %v390_v46 = vld [vmem:[%s6089_s0 + $0x18] sm:$0xff]  ;;  %1081 = vst [vmem:[#allocation2 + $0x100] sm:$0xff] %v6097_v58  ;;  %s4114_s24 = scalar_lea.vmem %s6091_s2, %s4090_s21 }
  0x4e   : > { %3419 = vmatpush1.bf16.msra.mxu0 %v3418_v10  ;;  %v3430_v43 = vpack.c.bf16 %v469_v39, %v465_v38  ;;  %v3466_v44 = vpack.c.bf16 %v471_v42, %v467_v41  ;;  %v387_v45 = vld [vmem:[%s6089_s0] sm:$0xff]  ;;  %v389_v47 = vld [vmem:[%s6089_s0 + $0x10] sm:$0xff]  ;;  %v392_v48 = vld [vmem:[%s6089_s0 + $0x28] sm:$0xff]  ;;  %1085 = vst [vmem:[#allocation2 + $0x120] sm:$0x1] %v6097_v58 }
  0x4f   : > { %3455 = vmatpush1.bf16.msra.mxu1 %v3454_v11  ;;  %3421 = vmatprep.subr.bf16.mxu0 %v3420_v12  ;;  %v391_v49 = vld [vmem:[%s6089_s0 + $0x20] sm:$0xff]  ;;  %v394_v50 = vld [vmem:[%s6089_s0 + $0x38] sm:$0xff]  ;;  %v393_v51 = vld [vmem:[%s6089_s0 + $0x30] sm:$0xff]  ;;  %1089 = vst [vmem:[#allocation2 + $0x140] sm:$0xff] %v6097_v58 }
  0x50   : > { %3457 = vmatprep.subr.bf16.mxu1 %v3456_v16  ;;  %v396_v52 = vld [vmem:[%s6089_s0 + $0x48] sm:$0xff]  ;;  %v395_v53 = vld [vmem:[%s6089_s0 + $0x40] sm:$0xff]  ;;  %v398_v54 = vld [vmem:[%s6089_s0 + $0x58] sm:$0xff]  ;;  %1093 = vst [vmem:[#allocation2 + $0x160] sm:$0x1] %v6097_v58  ;;  %v4009_v16 = vsub.s32 7, %v3949_v60 }
  0x51   : > { %v397_v55 = vld [vmem:[%s6089_s0 + $0x50] sm:$0xff]  ;;  %v400_v56 = vld [vmem:[%s6089_s0 + $0x68] sm:$0x1]  ;;  %v399_v57 = vld [vmem:[%s6089_s0 + $0x60] sm:$0x1]  ;;  %1097 = vst [vmem:[#allocation2 + $0x180] sm:$0xff] %v6097_v58 }
  0x52   : > { %3423 = vmatpush1.bf16.msra.mxu0 %v3422_v22  ;;  %1101 = vst [vmem:[#allocation2 + $0x1a0] sm:$0x1] %v6097_v58  ;;  %1105 = vst [vmem:[#allocation2 + $0x1c0] sm:$0xff] %v6097_v58  ;;  %v3955_v62 = vld [vmem:[%s3947_s18 + $0x10] sm:$0xff]  ;;  %v3958_v63 = vld [vmem:[%s3947_s18 + $0x8] sm:$0xff] }
  0x53   : > { %3459 = vmatpush1.bf16.msra.mxu1 %v3458_v24  ;;  %3425 = vmatprep.subr.bf16.mxu0 %v3424_v25  ;;  %1109 = vst [vmem:[#allocation2 + $0x1e0] sm:$0x1] %v6097_v58  ;;  %1117 = vst [vmem:[#allocation2 + $0x220] sm:$0x1] %v6097_v58  ;;  %v3962_v0 = vrot.slane %v3955_v62, %v3952_v61  ;;  %v1370_v1 = vld [vmem:[%s3947_s18 + $0x18] sm:$0xff]  ;;  %v3967_v2 = vrot.slane %v3958_v63, %v3952_v61  ;;  %v4082_v59 = vld [vmem:[%s3947_s18] sm:$0xff] }
  0x54   : > { %3461 = vmatprep.subr.bf16.mxu1 %v3460_v29  ;;  %1052 = vst.msk [vmem:[#allocation2 + $0x18] sm:$0xff] %vm749_vm1, %v6097_v58  ;;  %1054 = vst [vmem:[#allocation2 + $0x28] sm:$0x1] %v6097_v58  ;;  %v3970_v3 = vrot.slane %v1370_v1, %v3952_v61  ;;  %v3977_v5 = vrot.slane %v3955_v62, %v3973_v4  ;;  %v3981_v6 = vrot.slane %v3958_v63, %v3973_v4 }
  0x55   : > { %1055 = vst [vmem:[#allocation2 + $0x30] sm:$0x1] %v6097_v58  ;;  %1058 = vst [vmem:[#allocation2 + $0x48] sm:$0xff] %v6097_v58  ;;  %v3984_v7 = vrot.slane %v1370_v1, %v3973_v4  ;;  %v3991_v9 = vrot.slane %v3955_v62, %v3987_v8  ;;  %v3995_v10 = vrot.slane %v3958_v63, %v3987_v8 }
  0x56   : > { %3427 = vmatpush1.bf16.msra.mxu0 %v3426_v35  ;;  %1059 = vst [vmem:[#allocation2 + $0x50] sm:$0xff] %v6097_v58  ;;  %1060 = vst.msk [vmem:[#allocation2 + $0x58] sm:$0xff] %vm749_vm1, %v6097_v58  ;;  %v3998_v11 = vrot.slane %v1370_v1, %v3987_v8  ;;  %v4015_v18 = vrot.slane %v3955_v62, %v4009_v16  ;;  %v4025_v22 = vrot.slane %v3958_v63, %v4009_v16 }
  0x57   : > { %3463 = vmatpush1.bf16.msra.mxu1 %v3462_v36  ;;  %3429 = vmatprep.subr.bf16.mxu0 %v3428_v37  ;;  %1062 = vst [vmem:[#allocation2 + $0x68] sm:$0x1] %v6097_v58  ;;  %1063 = vst [vmem:[#allocation2 + $0x70] sm:$0x1] %v6097_v58  ;;  %v4034_v26 = vrot.slane %v1370_v1, %v4009_v16 }
  0x58   : > { %3465 = vmatprep.subr.bf16.mxu1 %v3464_v40  ;;  %1066 = vst [vmem:[#allocation2 + $0x88] sm:$0xff] %v6097_v58  ;;  %1067 = vst [vmem:[#allocation2 + $0x90] sm:$0xff] %v6097_v58 }
  0x59   : > { %1068 = vst.msk [vmem:[#allocation2 + $0x98] sm:$0xff] %vm749_vm1, %v6097_v58  ;;  %1070 = vst [vmem:[#allocation2 + $0xa8] sm:$0x1] %v6097_v58 }
  0x5a   : > { %3431 = vmatpush1.bf16.msra.mxu0 %v3430_v43  ;;  %1071 = vst [vmem:[#allocation2 + $0xb0] sm:$0x1] %v6097_v58  ;;  %1074 = vst [vmem:[#allocation2 + $0xc8] sm:$0xff] %v6097_v58 }
  0x5b   : > { %3467 = vmatpush1.bf16.msra.mxu1 %v3466_v44  ;;  %1075 = vst [vmem:[#allocation2 + $0xd0] sm:$0xff] %v6097_v58  ;;  %1076 = vst.msk [vmem:[#allocation2 + $0xd8] sm:$0xff] %vm749_vm1, %v6097_v58 }
  0x5c   : > { %1078 = vst [vmem:[#allocation2 + $0xe8] sm:$0x1] %v6097_v58  ;;  %1079 = vst [vmem:[#allocation2 + $0xf0] sm:$0x1] %v6097_v58 }
  0x5d   : > { %560 = vmatmul.mubr.f32.vlgmr.msra.gmra.mrb[0].mxu0 %v387_v45  ;;  %1082 = vst [vmem:[#allocation2 + $0x108] sm:$0xff] %v6097_v58  ;;  %1083 = vst [vmem:[#allocation2 + $0x110] sm:$0xff] %v6097_v58 }
  0x5e   : > { %667 = vmatmul.mubr.f32.vlgmr.msra.gmra.mrb[0].mxu1 %v387_v45  ;;  %3376 = vmatprep.mubr.msk.f32.mxu0 %vm473_vm0, %v390_v46  ;;  %1084 = vst.msk [vmem:[#allocation2 + $0x118] sm:$0xff] %vm749_vm1, %v6097_v58  ;;  %1086 = vst [vmem:[#allocation2 + $0x128] sm:$0x1] %v6097_v58 }
  0x5f   : > { %3383 = vmatprep.mubr.msk.f32.mxu1 %vm473_vm0, %v390_v46  ;;  %1087 = vst [vmem:[#allocation2 + $0x130] sm:$0x1] %v6097_v58  ;;  %1090 = vst [vmem:[#allocation2 + $0x148] sm:$0xff] %v6097_v58 }
  0x60   : > { %1091 = vst [vmem:[#allocation2 + $0x150] sm:$0xff] %v6097_v58  ;;  %1092 = vst.msk [vmem:[#allocation2 + $0x158] sm:$0xff] %vm749_vm1, %v6097_v58 }
  0x61   : > { %566 = vmatmul.mubr.f32.gmra.mrb[2].mxu0 %v389_v47  ;;  %1094 = vst [vmem:[#allocation2 + $0x168] sm:$0x1] %v6097_v58  ;;  %1095 = vst [vmem:[#allocation2 + $0x170] sm:$0x1] %v6097_v58 }
  0x62   : > { %673 = vmatmul.mubr.f32.gmra.mrb[2].mxu1 %v389_v47  ;;  %3377 = vmatprep.mubr.msk.f32.mxu0 %vm473_vm0, %v392_v48  ;;  %1098 = vst [vmem:[#allocation2 + $0x188] sm:$0xff] %v6097_v58  ;;  %1099 = vst [vmem:[#allocation2 + $0x190] sm:$0xff] %v6097_v58 }
  0x63   : > { %3384 = vmatprep.mubr.msk.f32.mxu1 %vm473_vm0, %v392_v48  ;;  %1100 = vst.msk [vmem:[#allocation2 + $0x198] sm:$0xff] %vm749_vm1, %v6097_v58  ;;  %1102 = vst [vmem:[#allocation2 + $0x1a8] sm:$0x1] %v6097_v58 }
  0x64   : > { %1103 = vst [vmem:[#allocation2 + $0x1b0] sm:$0x1] %v6097_v58  ;;  %1106 = vst [vmem:[#allocation2 + $0x1c8] sm:$0xff] %v6097_v58 }
  0x65   : > { %572 = vmatmul.mubr.f32.gmra.mrb[4].mxu0 %v391_v49  ;;  %1107 = vst [vmem:[#allocation2 + $0x1d0] sm:$0xff] %v6097_v58  ;;  %1108 = vst.msk [vmem:[#allocation2 + $0x1d8] sm:$0xff] %vm749_vm1, %v6097_v58 }
  0x66   : > { %679 = vmatmul.mubr.f32.gmra.mrb[4].mxu1 %v391_v49  ;;  %3378 = vmatprep.mubr.msk.f32.mxu0 %vm473_vm0, %v394_v50  ;;  %1110 = vst [vmem:[#allocation2 + $0x1e8] sm:$0x1] %v6097_v58  ;;  %1111 = vst [vmem:[#allocation2 + $0x1f0] sm:$0x1] %v6097_v58 }
  0x67   : > { %3385 = vmatprep.mubr.msk.f32.mxu1 %vm473_vm0, %v394_v50  ;;  %1116 = vst.msk [vmem:[#allocation2 + $0x218] sm:$0xff] %vm749_vm1, %v6097_v58  ;;  %1118 = vst [vmem:[#allocation2 + $0x228] sm:$0x1] %v6097_v58 }
  0x68   : > { %1119 = vst [vmem:[#allocation2 + $0x230] sm:$0x1] %v6097_v58  ;;  %6213 = vst [vmem:[#allocation6_spill] sm:$0xff] %v3962_v0 }
  0x69   : > { %578 = vmatmul.mubr.f32.gmra.mrb[6].mxu0 %v393_v51  ;;  %6214 = vst [vmem:[#allocation7_spill] sm:$0xff] %v3967_v2  ;;  %6215 = vst [vmem:[#allocation8_spill] sm:$0xff] %v3970_v3  ;;  %v4178_v2 = vld [vmem:[#allocation2 + $0x160] sm:$0x1] }
  0x6a   : > { %685 = vmatmul.mubr.f32.gmra.mrb[6].mxu1 %v393_v51  ;;  %3379 = vmatprep.mubr.msk.f32.mxu0 %vm473_vm0, %v396_v52  ;;  %6216 = vst [vmem:[#allocation9_spill] sm:$0xff] %v3977_v5  ;;  %6217 = vst [vmem:[#allocation10_spill] sm:$0xff] %v3981_v6 }
  0x6b   : > { %3386 = vmatprep.mubr.msk.f32.mxu1 %vm473_vm0, %v396_v52  ;;  %6218 = vst [vmem:[#allocation11_spill] sm:$0xff] %v3984_v7  ;;  %6219 = vst [vmem:[#allocation12_spill] sm:$0xff] %v3991_v9 }
  0x6c   : > { %6220 = vst [vmem:[#allocation13_spill] sm:$0xff] %v3995_v10  ;;  %6221 = vst [vmem:[#allocation14_spill] sm:$0xff] %v3998_v11  ;;  %v4176_v10 = vld [vmem:[#allocation2 + $0x120] sm:$0x1] }
  0x6d   : > { %584 = vmatmul.mubr.f32.gmra.mrb[8].mxu0 %v395_v53  ;;  %6223 = vst [vmem:[#allocation16_spill] sm:$0xff] %v4015_v18  ;;  %6224 = vst [vmem:[#allocation17_spill] sm:$0xff] %v4025_v22 }
  0x6e   : > { %691 = vmatmul.mubr.f32.gmra.mrb[8].mxu1 %v395_v53  ;;  %3380 = vmatprep.mubr.msk.f32.mxu0 %vm473_vm0, %v398_v54  ;;  %6226 = vst [vmem:[#allocation19_spill] sm:$0xff] %v4034_v26 }
  0x6f   : > { %3387 = vmatprep.mubr.msk.f32.mxu1 %vm473_vm0, %v398_v54 }
  0x71   : > { %590 = vmatmul.mubr.f32.gmra.mrb[10].mxu0 %v397_v55 }
  0x72   : > { %697 = vmatmul.mubr.f32.gmra.mrb[10].mxu1 %v397_v55  ;;  %3381 = vmatprep.mubr.msk.f32.mxu0 %vm473_vm0, %v400_v56 }
  0x73   : > { %3388 = vmatprep.mubr.msk.f32.mxu1 %vm473_vm0, %v400_v56 }
  0x75   : > { %596 = vmatmul.mubr.f32.gmra.mrb[12].mxu0 %v399_v57 }
  0x76   : > { %703 = vmatmul.mubr.f32.gmra.mrb[12].mxu1 %v399_v57 }
 0x130   : > { %v4000_v12 = vpop.f32.mrb[0].mxu0 }
 0x131   : > { %v4002_v13 = vpop.f32.mrb[0].mxu1  ;;  %v4004_v14 = vpop.f32.mrb[1].mxu0 }
 0x132   : > { %v4006_v15 = vpop.f32.mrb[1].mxu1 }
 0x133   : > { %6222 = vst [vmem:[#allocation15_spill] sm:$0xff] %v4006_v15  ;;  %v750_v27 = vsel %vm749_vm1, %v4006_v15, 0.0 }
 0x134   : > { %v4011_v17 = vpop.f32.mrb[2].mxu0 }
 0x135   : > { %v709_v19 = vadd.f32 %v4011_v17, %v4000_v12  ;;  %v4019_v20 = vpop.f32.mrb[2].mxu1  ;;  %v4021_v21 = vpop.f32.mrb[3].mxu0 }
 0x136   : > { %v736_v23 = vadd.f32 %v4019_v20, %v4002_v13  ;;  %v723_v24 = vadd.f32 %v4021_v21, %v4004_v14  ;;  %v4031_v25 = vpop.f32.mrb[3].mxu1 }
 0x137   : > { %6225 = vst [vmem:[#allocation18_spill] sm:$0xff] %v4031_v25  ;;  %v751_v28 = vsel %vm749_vm1, %v4031_v25, 0.0 }
 0x138   : > { %v752_v29 = vadd.f32 %v751_v28, %v750_v27  ;;  %v4040_v30 = vpop.f32.mrb[4].mxu0 }
 0x139   : > { %v710_v31 = vadd.f32 %v709_v19, %v4040_v30  ;;  %v4043_v32 = vpop.f32.mrb[4].mxu1  ;;  %v4045_v33 = vpop.f32.mrb[5].mxu0 }
 0x13a   : > { %v737_v34 = vadd.f32 %v736_v23, %v4043_v32  ;;  %v724_v35 = vadd.f32 %v723_v24, %v4045_v33  ;;  %v4049_v36 = vpop.f32.mrb[5].mxu1  ;;  %v4093_v24 = vsub.s32 1, %v3949_v60 }
 0x13b   : > { %6227 = vst [vmem:[#allocation20_spill] sm:$0xff] %v4049_v36  ;;  %v753_v37 = vsel %vm749_vm1, %v4049_v36, 0.0 }
 0x13c   : > { %v754_v38 = vadd.f32 %v753_v37, %v752_v29  ;;  %v4053_v39 = vpop.f32.mrb[6].mxu0  ;;  %6230 = vst [vmem:[#allocation23_spill] sm:$0xff] %v4093_v24  ;;  %v4174_v36 = vrot.slane %v3958_v63, %v4093_v24 }
 0x13d   : > { %v711_v40 = vadd.f32 %v710_v31, %v4053_v39  ;;  %v4056_v41 = vpop.f32.mrb[6].mxu1  ;;  %v4058_v42 = vpop.f32.mrb[7].mxu0  ;;  %v4100_v31 = vsub.s32 2, %v3949_v60 }
 0x13e   : > { %v738_v43 = vadd.f32 %v737_v34, %v4056_v41  ;;  %v725_v44 = vadd.f32 %v724_v35, %v4058_v42  ;;  %v4062_v45 = vpop.f32.mrb[7].mxu1  ;;  %v4106_v35 = vrot.slane %v4082_v59, %v4093_v24  ;;  %6243 = vst [vmem:[#allocation36_spill] sm:$0xff] %v4174_v36 }
 0x13f   : > { %6228 = vst [vmem:[#allocation21_spill] sm:$0xff] %v4062_v45  ;;  %v755_v46 = vsel %vm749_vm1, %v4062_v45, 0.0  ;;  %6232 = vst [vmem:[#allocation25_spill] sm:$0xff] %v4100_v31 }
 0x140   : > { %v756_v47 = vadd.f32 %v755_v46, %v754_v38  ;;  %v4066_v48 = vpop.f32.mrb[8].mxu0  ;;  %6233 = vst [vmem:[#allocation26_spill] sm:$0xff] %v4106_v35  ;;  %v1299_v46 = vld [vmem:[#allocation2 + $0x20] sm:$0x1]  ;;  %v1463_v3 = vmul.f32 0.0, %v4106_v35 }
 0x141   : > { %v712_v49 = vadd.f32 %v711_v40, %v4066_v48  ;;  %v4069_v50 = vpop.f32.mrb[8].mxu1  ;;  %v4071_v51 = vpop.f32.mrb[9].mxu0  ;;  %v4126_v40 = vrot.slane %v4082_v59, %v4100_v31  ;;  %v4188_v35 = vld [vmem:[#allocation2 + $0x1a0] sm:$0x1] }
 0x142   : > { %v739_v52 = vadd.f32 %v738_v43, %v4069_v50  ;;  %v726_v53 = vadd.f32 %v725_v44, %v4071_v51  ;;  %v4075_v54 = vpop.f32.mrb[9].mxu1  ;;  %v4131_v44 = vsub.s32 0, %v3949_v60 }
 0x143   : > { %6229 = vst [vmem:[#allocation22_spill] sm:$0xff] %v4075_v54  ;;  %v757_v55 = vsel %vm749_vm1, %v4075_v54, 0.0  ;;  %6235 = vst [vmem:[#allocation28_spill] sm:$0xff] %v4126_v40 }
 0x144   : > { %v758_v56 = vadd.f32 %v757_v55, %v756_v47  ;;  %v4079_v57 = vpop.f32.mrb[10].mxu0  ;;  %6236 = vst [vmem:[#allocation29_spill] sm:$0xff] %v4131_v44  ;;  %v4149_v58 = vrot.slane %v4082_v59, %v4131_v44  ;;  %v4182_v6 = vrot.slane %v3955_v62, %v4131_v44 }
 0x145   : > { %v713_v1 = vadd.f32 %v712_v49, %v4079_v57  ;;  %v4085_v19 = vpop.f32.mrb[10].mxu1  ;;  %v4087_v23 = vpop.f32.mrb[11].mxu0 }
 0x146   : > { %v740_v27 = vadd.f32 %v739_v52, %v4085_v19  ;;  %v727_v28 = vadd.f32 %v726_v53, %v4087_v23  ;;  %v4097_v29 = vpop.f32.mrb[11].mxu1  ;;  %6239 = vst [vmem:[#allocation32_spill] sm:$0xff] %v4149_v58  ;;  %6244 = vst [vmem:[#allocation37_spill] sm:$0xff] %v4182_v6 }
 0x147   : > { %6231 = vst [vmem:[#allocation24_spill] sm:$0xff] %v4097_v29  ;;  %v759_v34 = vsel %vm749_vm1, %v4097_v29, 0.0  ;;  %v4155_v29 = vsub.s32 3, %v3949_v60  ;;  %v1519_v60 = vrot.slane %v1463_v3, 1  ;;  %v4186_v3 = vrot.slane %v3955_v62, %v4100_v31 }
 0x148   : > { %v4108_v37 = vadd.f32 %v759_v34, %v758_v56  ;;  %v4122_v38 = vpop.f32.mrb[12].mxu0  ;;  %v4142_v56 = vld [vmem:[%s4114_s24] sm:$0xf] }
 0x149   : > { %v715_v43 = vsel %vm714_vm2, %v4122_v38, 0.0  ;;  %v4133_v47 = vpop.f32.mrb[12].mxu1  ;;  %v4135_v49 = vpop.f32.mrb[13].mxu0  ;;  %6237 = vst [vmem:[#allocation30_spill] sm:$0xff] %v4142_v56  ;;  %v4145_v34 = vld [vmem:[%s4120_s14] sm:$0xf] }
 0x14a   : > { %6234 = vst [vmem:[#allocation27_spill] sm:$0xff] %v4108_v37  ;;  %v716_v52 = vadd.f32 %v715_v43, %v713_v1  ;;  %v741_v53 = vsel %vm714_vm2, %v4133_v47, 0.0  ;;  %v728_v55 = vsel %vm714_vm2, %v4135_v49, 0.0  ;;  %6238 = vst [vmem:[#allocation31_spill] sm:$0xff] %v4145_v34  ;;  %v1619_v1 = vmul.f32 0.0, %v4126_v40 }
 0x14b   : > { %v742_v11 = vadd.f32 %v741_v53, %v740_v27  ;;  %v729_v26 = vadd.f32 %v728_v55, %v727_v28  ;;  %v1623_v43 = vmul.f32 %v4126_v40, %v1299_v46  ;;  %6240 = vst [vmem:[#allocation33_spill] sm:$0xff] %v4155_v29  ;;  %v4161_v25 = vrot.slane %v4145_v34, %v4131_v44  ;;  %v1307_v27 = vld [vmem:[#allocation2 + $0x60] sm:$0x1] }
 0x14c   : > { %v717_v7 = vrot.slane %v716_v52, 4  ;;  %v4163_v28 = vld [vmem:[#allocation2 + $0xa0] sm:$0x1]  ;;  %v1391_v53 = vmul.f32 0.0, %v4149_v58  ;;  %v4168_v46 = vrot.slane %v3955_v62, %v4093_v24  ;;  %v1731_v15 = vrot.slane %v1619_v1, 2  ;;  %6245 = vst [vmem:[#allocation38_spill] sm:$0xff] %v4186_v3 }
 0x14d   : > { %v743_v54 = vrot.slane %v742_v11, 4  ;;  %6241 = vst [vmem:[#allocation34_spill] sm:$0xff] %v4161_v25  ;;  %v1732_v22 = vrot.slane %v1623_v43, 2  ;;  %v4192_v1 = vrot.slane %v3958_v63, %v4131_v44  ;;  %v4196_v43 = vrot.slane %v3958_v63, %v4100_v31 }
 0x14e   : > { %v718_v45 = vadd.f32 %v717_v7, %v716_v52  ;;  %6242 = vst [vmem:[#allocation35_spill] sm:$0xff] %v4168_v46  ;;  %v4170_v52 = vld [vmem:[#allocation2 + $0xe0] sm:$0x1]  ;;  %v4199_v36 = vmul.f32 %v4126_v40, %v1307_v27  ;;  %v1575_v58 = vadd.f32 %v1519_v60, %v1391_v53  ;;  %v4203_v25 = vmul.f32 %v4126_v40, %v4163_v28 }
 0x14f   : > { %v744_v55 = vadd.f32 %v743_v54, %v742_v11  ;;  %v730_v54 = vrot.slane %v729_v26, 4  ;;  %6246 = vst [vmem:[#allocation39_spill] sm:$0xff] %v4192_v1  ;;  %6247 = vst [vmem:[#allocation40_spill] sm:$0xff] %v4196_v43  ;;  %v4211_v1 = vmul.f32 %v4126_v40, %v4176_v10  ;;  %v4215_v43 = vmul.f32 %v4126_v40, %v4178_v2 }
 0x150   : > { %v719_v7 = vrot.slane %v718_v45, 2  ;;  %v1733_v53 = vsel %vm1247_vm3, %v1731_v15, %v1732_v22  ;;  %v4220_v60 = vmul.f32 %v4126_v40, %v4188_v35  ;;  %v4224_v37 = vrot.slane %v4082_v59, %v4155_v29 }
 0x151   : > { %v745_v11 = vrot.slane %v744_v55, 2  ;;  %6248 = vst [vmem:[#allocation41_spill] sm:$0xff] %v4211_v1  ;;  %6249 = vst [vmem:[#allocation42_spill] sm:$0xff] %v4215_v43  ;;  %v4229_v24 = vrot.slane %v3958_v63, %v4155_v29  ;;  %v4233_v15 = vrot.slane %v3955_v62, %v4155_v29  ;;  %v4237_v5 = vadd.f32 %v1733_v53, %v1575_v58 }
 0x152   : > { %v720_v0 = vadd.f32 %v719_v7, %v718_v45  ;;  %v4207_v45 = vmul.f32 %v4126_v40, %v4170_v52  ;;  %6250 = vst [vmem:[#allocation43_spill] sm:$0xff] %v4220_v60  ;;  %6251 = vst [vmem:[#allocation44_spill] sm:$0xff] %v4224_v37  ;;  %v4243_v63 = vrot.slane %v4082_v59, %v3973_v4 }
 0x153   : > { %v746_v7 = vadd.f32 %v745_v11, %v744_v55  ;;  %v731_v11 = vadd.f32 %v730_v54, %v729_v26  ;;  %6252 = vst [vmem:[#allocation45_spill] sm:$0xff] %v4229_v24  ;;  %6253 = vst [vmem:[#allocation46_spill] sm:$0xff] %v4233_v15  ;;  %v4248_v62 = vrot.slane %v4082_v59, %v3952_v61 }
 0x154   : > { %v721_v18 = vrot.slane %v720_v0, 1  ;;  %6254 = vst [vmem:[#allocation47_spill] sm:$0xff] %v4237_v5  ;;  %6255 = vst [vmem:[#allocation48_spill] sm:$0xff] %v4243_v63 }
 0x155   : > { %v747_v55 = vrot.slane %v746_v7, 1  ;;  %6256 = vst [vmem:[#allocation49_spill] sm:$0xff] %v4248_v62  ;;  %v732_v40 = vrot.slane %v731_v11, 2 }
 0x156   : > { %v722_v9 = vadd.f32 %v721_v18, %v720_v0  ;;  %v4305_v0 = vmul.f32 %v4243_v63, %v4170_v52 }
 0x157   : > { %v748_v37 = vadd.f32 %v747_v55, %v746_v7 }
 0x158   : > { %v771_v34 = vmul.f32 0.020408163, %v722_v9 }
 0x159   : > { %v773_v54 = vmul.f32 0.020408163, %v748_v37 }
 0x15a   : > { %v4251_v58 = vsub.f32 %v4000_v12, %v771_v34  ;;  %v4254_v9 = vsub.f32 %v4011_v17, %v771_v34  ;;  %v4257_v7 = vsub.f32 %v4040_v30, %v771_v34  ;;  %v4260_v4 = vsub.f32 %v4053_v39, %v771_v34 }
 0x15b   : > { %v4263_v53 = vsub.f32 %v4066_v48, %v771_v34  ;;  %v4266_v61 = vsub.f32 %v4079_v57, %v771_v34  ;;  %v4269_v37 = vsub.f32 %v4122_v38, %v771_v34  ;;  %v4272_v12 = vsub.f32 %v4002_v13, %v773_v54 }
 0x15c   : > { %v803_v17 = vmul.f32 %v4251_v58, %v4251_v58  ;;  %v807_v30 = vmul.f32 %v4254_v9, %v4254_v9  ;;  %v4279_v39 = vmul.f32 %v4243_v63, %v1307_v27  ;;  %v4283_v48 = vmul.f32 %v4243_v63, %v4163_v28 }
 0x15d   : > { %v811_v57 = vmul.f32 %v4257_v7, %v4257_v7  ;;  %v4289_v13 = vrot.slane %v4082_v59, %v3987_v8  ;;  %v4292_v38 = vsub.f32 %v4019_v20, %v773_v54  ;;  %v733_v34 = vadd.f32 %v732_v40, %v731_v11  ;;  %v4317_v11 = vld [vmem:[#allocation2 + $0x1e0] sm:$0x1] }
 0x15e   : > { %v831_v55 = vadd.f32 %v807_v30, %v803_v17  ;;  %v4295_v26 = vsub.f32 %v4043_v32, %v773_v54  ;;  %v4298_v27 = vsub.f32 %v4056_v41, %v773_v54  ;;  %v4301_v18 = vsub.f32 %v4069_v50, %v773_v54 }
 0x15f   : > { %v4308_v8 = vsub.f32 %v4085_v19, %v773_v54  ;;  %v4311_v20 = vsub.f32 %v4133_v47, %v773_v54  ;;  %v805_v32 = vmul.f32 %v4272_v12, %v4272_v12  ;;  %v815_v41 = vmul.f32 %v4260_v4, %v4260_v4 }
 0x160   : > { %v832_v40 = vadd.f32 %v831_v55, %v811_v57  ;;  %v4321_v50 = vmul.f32 %v4243_v63, %v4176_v10  ;;  %v809_v19 = vmul.f32 %v4292_v38, %v4292_v38  ;;  %v4327_v47 = vmul.f32 %v4243_v63, %v4178_v2 }
 0x161   : > { %v4331_v54 = vmul.f32 %v4243_v63, %v4188_v35  ;;  %v829_v17 = vmul.f32 %v4311_v20, %v4311_v20  ;;  %v734_v30 = vrot.slane %v733_v34, 1  ;;  %v819_v57 = vmul.f32 %v4263_v53, %v4263_v53 }
 0x162   : > { %v833_v55 = vadd.f32 %v832_v40, %v815_v41  ;;  %v813_v22 = vmul.f32 %v4295_v26, %v4295_v26  ;;  %v857_v44 = vadd.f32 %v809_v19, %v805_v32  ;;  %v827_v29 = vmul.f32 %v4269_v37, %v4269_v37 }
 0x163   : > { %v4343_v24 = vmul.f32 %v4243_v63, %v4317_v11  ;;  %v862_v62 = vsel %vm714_vm2, %v829_v17, 0.0  ;;  %v823_v5 = vmul.f32 %v4266_v61, %v4266_v61  ;;  %v817_v41 = vmul.f32 %v4298_v27, %v4298_v27 }
 0x164   : > { %v834_v60 = vadd.f32 %v833_v55, %v819_v57  ;;  %v858_v40 = vadd.f32 %v857_v44, %v813_v22  ;;  %v735_v43 = vadd.f32 %v734_v30, %v733_v34  ;;  %v4356_v17 = vrot.slane %v4082_v59, %v4009_v16  ;;  %v4369_v59 = vld [vmem:[%s3947_s18 + $0x20] ss:$0 sm:$0xff] }
 0x165   : > { %v821_v57 = vmul.f32 %v4301_v18, %v4301_v18  ;;  %v836_v15 = vsel %vm714_vm2, %v827_v29, 0.0  ;;  %6257 = vst [vmem:[#allocation50_spill] sm:$0xff] %v4369_v59 }
 0x166   : > { %v835_v1 = vadd.f32 %v834_v60, %v823_v5  ;;  %v859_v55 = vadd.f32 %v858_v40, %v817_v41  ;;  %v772_v32 = vmul.f32 0.020408163, %v735_v43  ;;  %v4364_v63 = vmul.f32 0.0, %v4356_v17 }
 0x167   : > { %v825_v5 = vmul.f32 %v4308_v8, %v4308_v8 }
 0x168   : > { %v837_v19 = vadd.f32 %v836_v15, %v835_v1  ;;  %v860_v16 = vadd.f32 %v859_v55, %v821_v57  ;;  %v4372_v60 = vsub.f32 %v4004_v14, %v772_v32  ;;  %v4375_v29 = vsub.f32 %v4021_v21, %v772_v32  ;;  %v1363_v57 = vld [vmem:[#allocation2 + $0x220] sm:$0x1] }
 0x169   : > { %v4378_v34 = vsub.f32 %v4045_v33, %v772_v32  ;;  %v4381_v1 = vsub.f32 %v4058_v42, %v772_v32  ;;  %v4384_v30 = vsub.f32 %v4071_v51, %v772_v32  ;;  %v4387_v41 = vsub.f32 %v4087_v23, %v772_v32 }
 0x16a   : > { %6258 = vst [vmem:[#allocation51_spill] sm:$0xff] %v4372_v60  ;;  %6259 = vst [vmem:[#allocation52_spill] sm:$0xff] %v4375_v29  ;;  %v838_v43 = vrot.slane %v837_v19, 4  ;;  %v861_v15 = vadd.f32 %v860_v16, %v825_v5  ;;  %v4391_v40 = vsub.f32 %v4135_v49, %v772_v32  ;;  %v804_v21 = vmul.f32 %v4372_v60, %v4372_v60 }
 0x16b   : > { %6260 = vst [vmem:[#allocation53_spill] sm:$0xff] %v4378_v34  ;;  %6261 = vst [vmem:[#allocation54_spill] sm:$0xff] %v4381_v1  ;;  %v808_v33 = vmul.f32 %v4375_v29, %v4375_v29  ;;  %v4400_v51 = vmul.f32 %v4369_v59, %v4163_v28  ;;  %v4404_v5 = vmul.f32 %v4369_v59, %v4170_v52  ;;  %v1621_v29 = vmul.f32 0.0, %v4186_v3 }
 0x16c   : > { %6262 = vst [vmem:[#allocation55_spill] sm:$0xff] %v4384_v30  ;;  %6263 = vst [vmem:[#allocation56_spill] sm:$0xff] %v4387_v41  ;;  %v839_v42 = vadd.f32 %v838_v43, %v837_v19  ;;  %v863_v23 = vadd.f32 %v862_v62, %v861_v15  ;;  %v812_v49 = vmul.f32 %v4378_v34, %v4378_v34  ;;  %v2659_v15 = vmul.f32 0.0, %v4369_v59 }
 0x16d   : > { %6264 = vst [vmem:[#allocation57_spill] sm:$0xff] %v4391_v40  ;;  %6265 = vst [vmem:[#allocation58_spill] sm:$0xff] %v4400_v51  ;;  %v828_v32 = vmul.f32 %v4391_v40, %v4391_v40  ;;  %v844_v16 = vadd.f32 %v808_v33, %v804_v21  ;;  %v4412_v43 = vmul.f32 %v4369_v59, %v4176_v10  ;;  %v1301_v40 = vld [vmem:[#allocation2 + $0x30] sm:$0x1] }
 0x16e   : > { %6266 = vst [vmem:[#allocation59_spill] sm:$0xff] %v4404_v5  ;;  %v840_v19 = vrot.slane %v839_v42, 2  ;;  %v4416_v28 = vmul.f32 %v4369_v59, %v4178_v2  ;;  %v864_v62 = vrot.slane %v863_v23, 4  ;;  %v4420_v52 = vmul.f32 %v4369_v59, %v4188_v35  ;;  %v1309_v2 = vld [vmem:[#allocation2 + $0x70] sm:$0x1] }
 0x16f   : > { %6267 = vst [vmem:[#allocation60_spill] sm:$0xff] %v4412_v43  ;;  %v2663_v55 = vmul.f32 %v4369_v59, %v1363_v57  ;;  %v845_v14 = vadd.f32 %v844_v16, %v812_v49  ;;  %v4426_v33 = vmul.f32 %v4369_v59, %v4317_v11  ;;  %v849_v22 = vsel %vm714_vm2, %v828_v32, 0.0 }
 0x170   : > { %6268 = vst [vmem:[#allocation61_spill] sm:$0xff] %v4416_v28  ;;  %6269 = vst [vmem:[#allocation62_spill] sm:$0xff] %v4420_v52  ;;  %v841_v21 = vadd.f32 %v840_v19, %v839_v42  ;;  %v865_v10 = vadd.f32 %v864_v62, %v863_v23  ;;  %v1465_v35 = vmul.f32 0.0, %v4168_v46  ;;  %v816_v34 = vmul.f32 %v4381_v1, %v4381_v1 }
 0x171   : > { %6270 = vst [vmem:[#allocation63_spill] sm:$0xff] %v4426_v33  ;;  %v2795_v16 = vrot.slane %v2659_v15, 2  ;;  %v2796_v23 = vrot.slane %v2663_v55, 2  ;;  %v820_v32 = vmul.f32 %v4384_v30, %v4384_v30  ;;  %v1625_v60 = vmul.f32 %v4186_v3, %v1301_v40  ;;  %v6271_v40 = vld [vmem:[#allocation31_spill] sm:$0xff] }
 0x172   : > { %v842_v57 = vrot.slane %v841_v21, 1  ;;  %v866_v11 = vrot.slane %v865_v10, 2  ;;  %v846_v19 = vadd.f32 %v845_v14, %v816_v34  ;;  %v1393_v1 = vmul.f32 0.0, %v4182_v6  ;;  %v1317_v14 = vld [vmem:[#allocation2 + $0xb0] sm:$0x1] }
 0x173   : > { %v1521_v46 = vrot.slane %v1465_v35, 1  ;;  %v824_v49 = vmul.f32 %v4387_v41, %v4387_v41  ;;  %v1325_v35 = vld [vmem:[#allocation2 + $0xf0] sm:$0x1]  ;;  %v1737_v30 = vrot.slane %v1621_v29, 2  ;;  %v1738_v34 = vrot.slane %v1625_v60, 2 }
 0x174   : > { %v843_v62 = vadd.f32 %v842_v57, %v841_v21  ;;  %v867_v44 = vadd.f32 %v866_v11, %v865_v10  ;;  %v847_v42 = vadd.f32 %v846_v19, %v820_v32  ;;  %v4447_v21 = vmul.f32 0.0, %v4289_v13  ;;  %v1333_v57 = vld [vmem:[#allocation2 + $0x130] sm:$0x1] }
 0x175   : > { %v4451_v10 = vrot.slane %v6271_v40, %v4100_v31  ;;  %v1341_v11 = vld [vmem:[#allocation2 + $0x170] sm:$0x1]  ;;  %v4454_v32 = vmul.f32 %v4186_v3, %v1309_v2  ;;  %v4458_v52 = vsel %vm1247_vm3, %v2795_v16, %v2796_v23  ;;  %v1577_v43 = vadd.f32 %v1521_v46, %v1393_v1 }
 0x176   : > { %v889_v15 = vmul.f32 0.020408163, %v843_v62  ;;  %v868_v28 = vrot.slane %v867_v44, 1  ;;  %v848_v19 = vadd.f32 %v847_v42, %v824_v49  ;;  %v1349_v41 = vld [vmem:[#allocation2 + $0x1b0] sm:$0x1]  ;;  %6273 = vst [vmem:[#allocation64_spill] sm:$0xff] %v4458_v52  ;;  %v4461_v51 = vmul.f32 %v4186_v3, %v1317_v14 }
 0x177   : > { %6272 = vst [vmem:[#allocation31_spill] sm:$0xff] %v4454_v32  ;;  %v4464_v59 = vmul.f32 %v4186_v3, %v1325_v35  ;;  %v1357_v42 = vld [vmem:[#allocation2 + $0x1f0] sm:$0x1]  ;;  %v4470_v60 = vmul.f32 %v4186_v3, %v1341_v11  ;;  %v4473_v46 = vmul.f32 %v4186_v3, %v1349_v41  ;;  %v1739_v1 = vsel %vm1247_vm3, %v1737_v30, %v1738_v34  ;;  %v6279_v49 = vld [vmem:[#allocation9_spill] sm:$0xff] }
 0x178   : > { %v893_v62 = vadd.f32 1e-05, %v889_v15  ;;  %v869_v55 = vadd.f32 %v868_v28, %v867_v44  ;;  %v850_v40 = vadd.f32 %v849_v22, %v848_v19  ;;  %6274 = vst [vmem:[#allocation65_spill] sm:$0xff] %v4461_v51  ;;  %v4467_v44 = vmul.f32 %v4186_v3, %v1333_v57  ;;  %v4505_v34 = vld [vmem:[%s3947_s18 + $0x30] ss:$0 sm:$0xff] }
 0x179   : > { %6275 = vst [vmem:[#allocation66_spill] sm:$0xff] %v4464_v59  ;;  %6277 = vst [vmem:[#allocation68_spill] sm:$0xff] %v4470_v60  ;;  %v4478_v16 = vmul.f32 %v6279_v49, %v1309_v2  ;;  %v4481_v23 = vmul.f32 %v6279_v49, %v1317_v14  ;;  %v4484_v15 = vmul.f32 %v6279_v49, %v1325_v35  ;;  %v4519_v51 = vld [vmem:[%s4502_s20] sm:$0xf] }
 0x17a   : > { %3514 = vrsqrt.f32 %v893_v62  ;;  %v891_v5 = vmul.f32 0.020408163, %v869_v55  ;;  %6276 = vst [vmem:[#allocation67_spill] sm:$0xff] %v4467_v44  ;;  %6278 = vst [vmem:[#allocation69_spill] sm:$0xff] %v4473_v46  ;;  %v851_v22 = vrot.slane %v850_v40, 4  ;;  %v4487_v55 = vmul.f32 %v6279_v49, %v1333_v57 }
 0x17b   : > { %6280 = vst [vmem:[#allocation70_spill] sm:$0xff] %v4478_v16  ;;  %6281 = vst [vmem:[#allocation71_spill] sm:$0xff] %v4481_v23  ;;  %v4493_v30 = vmul.f32 %v6279_v49, %v1349_v41  ;;  %v4496_v2 = vmul.f32 %v6279_v49, %v1357_v42  ;;  %v4512_v32 = vadd.f32 %v1739_v1, %v1577_v43 }
 0x17c   : > { %v895_v29 = vadd.f32 1e-05, %v891_v5  ;;  %6282 = vst [vmem:[#allocation72_spill] sm:$0xff] %v4484_v15  ;;  %6283 = vst [vmem:[#allocation73_spill] sm:$0xff] %v4487_v55  ;;  %v852_v19 = vadd.f32 %v851_v22, %v850_v40  ;;  %v4490_v5 = vmul.f32 %v6279_v49, %v1341_v11  ;;  %v4525_v43 = vmul.f32 %v4505_v34, %v1317_v14 }
 0x17d   : > { %6285 = vst [vmem:[#allocation75_spill] sm:$0xff] %v4493_v30  ;;  %6286 = vst [vmem:[#allocation76_spill] sm:$0xff] %v4496_v2  ;;  %v4528_v1 = vmul.f32 %v4505_v34, %v1325_v35  ;;  %v4531_v3 = vmul.f32 %v4505_v34, %v1333_v57  ;;  %v4534_v52 = vmul.f32 %v4505_v34, %v1341_v11  ;;  %v6297_v57 = vld [vmem:[#allocation29_spill] sm:$0xff] }
 0x17e   : > { %3516 = vrsqrt.f32 %v895_v29  ;;  %6284 = vst [vmem:[#allocation74_spill] sm:$0xff] %v4490_v5  ;;  %v853_v29 = vrot.slane %v852_v19, 2  ;;  %6287 = vst [vmem:[#allocation77_spill] sm:$0xff] %v4512_v32  ;;  %v4539_v40 = vmul.f32 %v4505_v34, %v1349_v41  ;;  %v4542_v28 = vmul.f32 %v4505_v34, %v1357_v42  ;;  %v6300_v42 = vld [vmem:[#allocation12_spill] sm:$0xff] }
 0x17f   : > { %6288 = vst [vmem:[#allocation78_spill] sm:$0xff] %v4519_v51  ;;  %6289 = vst [vmem:[#allocation79_spill] sm:$0xff] %v4525_v43  ;;  %v6298_v33 = vrot.slane %v4142_v56, %v6297_v57  ;;  %v6299_v41 = vmov 0.0  }
 0x180   : > { %v854_v62 = vadd.f32 %v853_v29, %v852_v19  ;;  %6290 = vst [vmem:[#allocation80_spill] sm:$0xff] %v4528_v1  ;;  %6291 = vst [vmem:[#allocation81_spill] sm:$0xff] %v4531_v3  ;;  %v4536_v29 = vpop.f32.mrb[13].mxu1 }
 0x181   : > { %6292 = vst [vmem:[#allocation82_spill] sm:$0xff] %v4534_v52  ;;  %6293 = vst [vmem:[#allocation83_spill] sm:$0xff] %v4536_v29  ;;  %v762_v2 = vsel %vm761_vm4, %v4536_v29, 0.0 }
 0x182   : > { %v855_v19 = vrot.slane %v854_v62, 1  ;;  %6294 = vst [vmem:[#allocation84_spill] sm:$0xff] %v4539_v40  ;;  %6295 = vst [vmem:[#allocation85_spill] sm:$0xff] %v4542_v28  ;;  %v6307_v28 = vld [vmem:[#allocation34_spill] sm:$0xff] }
 0x183   : > { %1056 = vst.msk [vmem:[#allocation2 + $0x38] sm:$0x1] %vm761_vm4, %v6299_v41  ;;  %1064 = vst.msk [vmem:[#allocation2 + $0x78] sm:$0x1] %vm761_vm4, %v6299_v41 }
 0x184   : > { %v3515_v22 = vpop.eup %3514  ;;  %v856_v6 = vadd.f32 %v855_v19, %v854_v62  ;;  %1072 = vst.msk [vmem:[#allocation2 + $0xb8] sm:$0x1] %vm761_vm4, %v6299_v41  ;;  %1080 = vst.msk [vmem:[#allocation2 + $0xf8] sm:$0x1] %vm761_vm4, %v6299_v41  ;;  %v4574_v62 = vmul.f32 0.0, %v6300_v42  ;;  %v6302_v19 = vld [vmem:[#allocation27_spill] sm:$0xff] }
 0x185   : > { %v923_v49 = vmul.f32 %v3515_v22, %v6298_v33  ;;  %1088 = vst.msk [vmem:[#allocation2 + $0x138] sm:$0x1] %vm761_vm4, %v6299_v41  ;;  %1096 = vst.msk [vmem:[#allocation2 + $0x178] sm:$0x1] %vm761_vm4, %v6299_v41  ;;  %v4578_v11 = vadd.f32 %v762_v2, %v6302_v19  ;;  %v6304_v33 = vld [vmem:[#allocation16_spill] sm:$0xff] }
 0x186   : > { %1104 = vst.msk [vmem:[#allocation2 + $0x1b8] sm:$0x1] %vm761_vm4, %v6299_v41  ;;  %1112 = vst.msk [vmem:[#allocation2 + $0x1f8] sm:$0x1] %vm761_vm4, %v6299_v41  ;;  %v4585_v51 = vmul.f32 0.0, %v6304_v33 }
 0x187   : > { %1120 = vst.msk [vmem:[#allocation2 + $0x238] sm:$0x1] %vm761_vm4, %v6299_v41  ;;  %6301 = vst [vmem:[#allocation86_spill] sm:$0xff] %v4574_v62  ;;  %v930_v35 = vrot.slane %v923_v49, %v6297_v57  ;;  %v4589_v19 = vmul.f32 0.020408163, %v856_v6  ;;  %v6306_v6 = vrot.slane %v4142_v56, %v4100_v31 }
 0x188   : > { %6303 = vst [vmem:[#allocation27_spill] sm:$0xff] %v4578_v11  ;;  %v3517_v5 = vpop.eup %3516  ;;  %6305 = vst [vmem:[#allocation87_spill] sm:$0xff] %v4585_v51 }
 0x189   : > { %v943_v49 = vmul.f32 %v930_v35, %v4251_v58  ;;  %v947_v43 = vmul.f32 %v930_v35, %v4254_v9  ;;  %v951_v29 = vmul.f32 %v930_v35, %v4257_v7  ;;  %v955_v41 = vmul.f32 %v930_v35, %v4260_v4 }
 0x18a   : > { %v959_v30 = vmul.f32 %v930_v35, %v4263_v53  ;;  %v963_v52 = vmul.f32 %v930_v35, %v4266_v61  ;;  %v967_v22 = vmul.f32 %v930_v35, %v4269_v37  ;;  %v925_v2 = vmul.f32 %v3517_v5, %v6306_v6 }
 0x18b   : > { %v993_v58 = vadd.f32 %v6307_v28, %v943_v49  ;;  %v997_v9 = vadd.f32 %v6307_v28, %v947_v43  ;;  %v1001_v7 = vadd.f32 %v6307_v28, %v951_v29  ;;  %v1005_v4 = vadd.f32 %v6307_v28, %v955_v41 }
 0x18c   : > { %v1009_v40 = vadd.f32 %v6307_v28, %v959_v30  ;;  %v1013_v53 = vadd.f32 %v6307_v28, %v963_v52  ;;  %v1017_v61 = vadd.f32 %v6307_v28, %v967_v22  ;;  %v938_v37 = vrot.slane %v925_v2, %v6297_v57 }
 0x18d   : > { %v1021_v35 = vmax.f32 %v993_v58, 0.0  ;;  %v1025_v3 = vmax.f32 %v997_v9, 0.0  ;;  %v1029_v1 = vmax.f32 %v1001_v7, 0.0  ;;  %v1033_v5 = vmax.f32 %v1005_v4, 0.0 }
 0x18e   : > { %v1037_v43 = vmax.f32 %v1009_v40, 0.0  ;;  %v1041_v29 = vmax.f32 %v1013_v53, 0.0  ;;  %v1045_v41 = vmax.f32 %v1017_v61, 0.0  ;;  %v945_v30 = vmul.f32 %v938_v37, %v4272_v12  ;;  %v3158_v40 = vld [vmem:[%s4613_s11] sm:$0xf] }
 0x18f   : > { %v1125_v52 = vrot.slane %v1021_v35, 7  ;;  %v1144_v49 = vrot.slane %v1021_v35, 6  ;;  %v1145_v28 = vrot.slane %v1025_v3, 6  ;;  %v1170_v22 = vrot.slane %v1025_v3, 5 }
 0x190   : > { %v1171_v2 = vrot.slane %v1029_v1, 5  ;;  %v1196_v6 = vrot.slane %v1029_v1, 4  ;;  %v1197_v58 = vrot.slane %v1033_v5, 4  ;;  %v1222_v9 = vrot.slane %v1033_v5, 3 }
 0x191   : > { %1134 = vst [vmem:[#allocation2 + $0x40] sm:$0xfe] %v1125_v52  ;;  %v1146_v7 = vsel %vm1143_vm5, %v1144_v49, %v1145_v28  ;;  %v1223_v4 = vrot.slane %v1037_v43, 3  ;;  %v1248_v56 = vrot.slane %v1037_v43, 2  ;;  %v1249_v33 = vrot.slane %v1041_v29, 2 }
 0x192   : > { %1161 = vst [vmem:[#allocation2 + $0x80] sm:$0xfe] %v1146_v7  ;;  %v1172_v53 = vsel %vm1169_vm6, %v1170_v22, %v1171_v2  ;;  %v1198_v12 = vsel %vm1195_vm7, %v1196_v6, %v1197_v58  ;;  %v1274_v61 = vrot.slane %v1041_v29, 1  ;;  %v1275_v35 = vrot.slane %v1045_v41, 1  ;;  %v1365_v2 = vld [vmem:[#allocation2 + $0x230] sm:$0x1] }
 0x193   : > { %1187 = vst [vmem:[#allocation2 + $0xc0] sm:$0xfe] %v1172_v53  ;;  %1213 = vst [vmem:[#allocation2 + $0x100] sm:$0xfe] %v1198_v12  ;;  %v1224_v3 = vsel %vm1221_vm8, %v1222_v9, %v1223_v4  ;;  %v1250_v1 = vsel %vm1247_vm3, %v1248_v56, %v1249_v33  ;;  %v4626_v49 = vrot.slane %v3158_v40, %v6297_v57  ;;  %v6310_v53 = vld [vmem:[#allocation32_spill] sm:$0xff] }
 0x194   : > { %1239 = vst [vmem:[#allocation2 + $0x140] sm:$0xfe] %v1224_v3  ;;  %1265 = vst [vmem:[#allocation2 + $0x180] sm:$0xfe] %v1250_v1  ;;  %v1276_v43 = vsel %vm1273_vm9, %v1274_v61, %v1275_v35  ;;  %v4629_v29 = vrot.slane %v3158_v40, %v4100_v31  ;;  %v949_v41 = vmul.f32 %v938_v37, %v4292_v38  ;;  %v4644_v38 = vmul.f32 0.0, %v4505_v34  ;;  %v6311_v61 = vld [vmem:[#allocation26_spill] sm:$0xff] }
 0x195   : > { %6308 = vst [vmem:[#allocation34_spill] sm:$0xff] %v4626_v49  ;;  %1291 = vst [vmem:[#allocation2 + $0x1c0] sm:$0xfe] %v1276_v43  ;;  %v953_v28 = vmul.f32 %v938_v37, %v4295_v26  ;;  %v957_v56 = vmul.f32 %v938_v37, %v4298_v27  ;;  %v961_v33 = vmul.f32 %v938_v37, %v4301_v18  ;;  %v6312_v3 = vld [vmem:[#allocation28_spill] sm:$0xff] }
 0x196   : > { %6309 = vst [vmem:[#allocation88_spill] sm:$0xff] %v4629_v29  ;;  %v965_v22 = vmul.f32 %v938_v37, %v4308_v8  ;;  %v969_v6 = vmul.f32 %v938_v37, %v4311_v20  ;;  %v4638_v58 = vadd.f32 %v4451_v10, %v945_v30  ;;  %v4641_v9 = vadd.f32 %v4451_v10, %v949_v41 }
 0x197   : > { %v4647_v26 = vadd.f32 %v4451_v10, %v953_v28  ;;  %v4650_v27 = vadd.f32 %v4451_v10, %v957_v56  ;;  %v4653_v18 = vadd.f32 %v4451_v10, %v961_v33  ;;  %v4666_v4 = vmul.f32 %v4505_v34, %v1365_v2 }
 0x198   : > { %v4656_v8 = vadd.f32 %v4451_v10, %v965_v22  ;;  %v4658_v20 = vld [vmem:[#allocation2 + $0x40] sm:$0xff]  ;;  %v4661_v37 = vadd.f32 %v4451_v10, %v969_v6  ;;  %v6313_v10 = vld [vmem:[#allocation44_spill] sm:$0xff] }
 0x199   : > { %v4668_v40 = vld [vmem:[#allocation2 + $0x80] sm:$0xff]  ;;  %v1395_v12 = vmul.f32 %v6310_v53, %v4658_v20  ;;  %v1467_v35 = vmul.f32 %v6311_v61, %v4658_v20  ;;  %v1627_v1 = vmul.f32 %v6312_v3, %v4658_v20  ;;  %v1887_v43 = vmul.f32 %v6313_v10, %v4658_v20 }
 0x19a   : > { %v4678_v41 = vld [vmem:[#allocation2 + $0xc0] sm:$0xff]  ;;  %v1399_v34 = vmul.f32 %v6310_v53, %v4668_v40  ;;  %v1471_v56 = vmul.f32 %v6311_v61, %v4668_v40  ;;  %v1635_v33 = vmul.f32 %v6312_v3, %v4668_v40  ;;  %v1891_v22 = vmul.f32 %v6313_v10, %v4668_v40 }
 0x19b   : > { %v4680_v28 = vld [vmem:[#allocation2 + $0x100] sm:$0xff]  ;;  %v1403_v52 = vmul.f32 %v6310_v53, %v4678_v41  ;;  %v1475_v7 = vmul.f32 %v6311_v61, %v4678_v41  ;;  %v1523_v57 = vrot.slane %v1467_v35, 1  ;;  %v1643_v23 = vmul.f32 %v6312_v3, %v4678_v41 }
 0x19c   : > { %v4690_v2 = vld [vmem:[#allocation2 + $0x140] sm:$0xff]  ;;  %v1407_v5 = vmul.f32 %v6310_v53, %v4680_v28  ;;  %v1479_v30 = vmul.f32 %v6311_v61, %v4680_v28  ;;  %v1527_v51 = vrot.slane %v1471_v56, 1  ;;  %v1651_v16 = vmul.f32 %v6312_v3, %v4680_v28 }
 0x19d   : > { %v4692_v6 = vld [vmem:[#allocation2 + $0x180] sm:$0xff]  ;;  %v1411_v11 = vmul.f32 %v6310_v53, %v4690_v2  ;;  %v1483_v31 = vmul.f32 %v6311_v61, %v4690_v2  ;;  %v1531_v62 = vrot.slane %v1475_v7, 1  ;;  %v1579_v32 = vadd.f32 %v1523_v57, %v1395_v12 }
 0x19e   : > { %v1415_v29 = vmul.f32 %v6310_v53, %v4692_v6  ;;  %v1487_v49 = vmul.f32 %v6311_v61, %v4692_v6  ;;  %v1535_v42 = vrot.slane %v1479_v30, 1  ;;  %v1583_v53 = vadd.f32 %v1527_v51, %v1399_v34  ;;  %v6319_v12 = vld [vmem:[#allocation42_spill] sm:$0xff]  ;;  %v6321_v34 = vld [vmem:[#allocation43_spill] sm:$0xff] }
 0x19f   : > { %v1539_v55 = vrot.slane %v1483_v31, 1  ;;  %v1587_v46 = vadd.f32 %v1531_v62, %v1403_v52  ;;  %v1659_v61 = vmul.f32 %v6312_v3, %v4690_v2  ;;  %v1667_v30 = vmul.f32 %v6312_v3, %v4692_v6 }
 0x1a0   : > { %v1543_v15 = vrot.slane %v1487_v49, 1  ;;  %v1591_v60 = vadd.f32 %v1535_v42, %v1407_v5  ;;  %v1743_v31 = vrot.slane %v1627_v1, 2  ;;  %v1755_v49 = vrot.slane %v1635_v33, 2  ;;  %v6317_v5 = vld [vmem:[#allocation41_spill] sm:$0xff] }
 0x1a1   : > { %v1595_v44 = vadd.f32 %v1539_v55, %v1411_v11  ;;  %v1767_v7 = vrot.slane %v1643_v23, 2  ;;  %v1779_v35 = vrot.slane %v1651_v16, 2  ;;  %v1791_v56 = vrot.slane %v1659_v61, 2  ;;  %v4722_v55 = vld [vmem:[#allocation2 + $0x1c0] sm:$0xff] }
 0x1a2   : > { %v1599_v59 = vadd.f32 %v1543_v15, %v1415_v29  ;;  %v1803_v14 = vrot.slane %v1667_v30, 2  ;;  %v1895_v57 = vmul.f32 %v6313_v10, %v4678_v41  ;;  %v1899_v51 = vmul.f32 %v6313_v10, %v4680_v28 }
 0x1a3   : > { %v6314_v15 = vrot.slane %v4199_v36, 2  ;;  %v6315_v42 = vrot.slane %v4203_v25, 2  ;;  %v6316_v16 = vrot.slane %v4207_v45, 2  ;;  %v6318_v52 = vrot.slane %v6317_v5, 2 }
 0x1a4   : > { %v6320_v3 = vrot.slane %v6319_v12, 2  ;;  %v6322_v36 = vrot.slane %v6321_v34, 2 }
 0x1a5   : > { %v1745_v11 = vsel %vm1247_vm3, %v1743_v31, %v6314_v15  ;;  %v1757_v62 = vsel %vm1247_vm3, %v1755_v49, %v6315_v42  ;;  %v1769_v23 = vsel %vm1247_vm3, %v1767_v7, %v6316_v16  ;;  %v1781_v29 = vsel %vm1247_vm3, %v1779_v35, %v6318_v52 }
 0x1a6   : > { %v1793_v1 = vsel %vm1247_vm3, %v1791_v56, %v6320_v3  ;;  %v1805_v33 = vsel %vm1247_vm3, %v1803_v14, %v6322_v36  ;;  %v1847_v61 = vadd.f32 %v1745_v11, %v1579_v32  ;;  %v1851_v25 = vadd.f32 %v1757_v62, %v1583_v53  ;;  %v6323_v56 = vld [vmem:[#allocation47_spill] sm:$0xff]  ;;  %v6324_v32 = vld [vmem:[#allocation49_spill] sm:$0xff] }
 0x1a7   : > { %v1855_v30 = vadd.f32 %v1769_v23, %v1587_v46  ;;  %v1859_v31 = vadd.f32 %v1781_v29, %v1591_v60  ;;  %v1863_v49 = vadd.f32 %v1793_v1, %v1595_v44  ;;  %v1867_v45 = vadd.f32 %v1805_v33, %v1599_v59  ;;  %v6325_v23 = vld [vmem:[#allocation48_spill] sm:$0xff] }
 0x1a8   : > { %v1903_v7 = vmul.f32 %v6313_v10, %v4690_v2  ;;  %v1907_v35 = vmul.f32 %v6313_v10, %v4692_v6  ;;  %v1911_v15 = vmul.f32 %v6313_v10, %v4722_v55  ;;  %v1915_v42 = vadd.f32 %v1887_v43, %v6323_v56 }
 0x1a9   : > { %v1919_v16 = vadd.f32 %v1891_v22, %v1847_v61  ;;  %v1923_v5 = vadd.f32 %v1895_v57, %v1851_v25  ;;  %v1927_v14 = vadd.f32 %v1899_v51, %v1855_v30  ;;  %v1959_v46 = vmul.f32 %v6324_v32, %v4658_v20 }
 0x1aa   : > { %v1931_v60 = vadd.f32 %v1903_v7, %v1859_v31  ;;  %v1935_v44 = vadd.f32 %v1907_v35, %v1863_v49  ;;  %v1939_v59 = vadd.f32 %v1911_v15, %v1867_v45  ;;  %v1963_v53 = vmul.f32 %v6324_v32, %v4668_v40 }
 0x1ab   : > { %v1967_v11 = vmul.f32 %v6324_v32, %v4678_v41  ;;  %v1971_v10 = vmul.f32 %v6324_v32, %v4680_v28  ;;  %v1975_v43 = vmul.f32 %v6324_v32, %v4690_v2  ;;  %v1979_v22 = vmul.f32 %v6324_v32, %v4692_v6 }
 0x1ac   : > { %v1983_v57 = vmul.f32 %v6324_v32, %v4722_v55  ;;  %v2015_v51 = vrot.slane %v1959_v46, 1  ;;  %v2019_v62 = vrot.slane %v1963_v53, 1  ;;  %v2115_v52 = vmul.f32 %v6325_v23, %v4658_v20 }
 0x1ad   : > { %v2023_v29 = vrot.slane %v1967_v11, 1  ;;  %v2027_v12 = vrot.slane %v1971_v10, 1  ;;  %v2031_v3 = vrot.slane %v1975_v43, 1  ;;  %v2035_v1 = vrot.slane %v1979_v22, 1 }
 0x1ae   : > { %v2039_v34 = vrot.slane %v1983_v57, 1  ;;  %v2071_v36 = vadd.f32 %v2015_v51, %v1915_v42  ;;  %v2075_v33 = vadd.f32 %v2019_v62, %v1919_v16  ;;  %v2123_v61 = vmul.f32 %v6325_v23, %v4668_v40 }
 0x1af   : > { %v2079_v25 = vadd.f32 %v2023_v29, %v1923_v5  ;;  %v2083_v30 = vadd.f32 %v2027_v12, %v1927_v14  ;;  %v2087_v31 = vadd.f32 %v2031_v3, %v1931_v60  ;;  %v2091_v49 = vadd.f32 %v2035_v1, %v1935_v44 }
 0x1b0   : > { %v2095_v45 = vadd.f32 %v2039_v34, %v1939_v59  ;;  %v2131_v7 = vmul.f32 %v6325_v23, %v4678_v41  ;;  %v2139_v20 = vmul.f32 %v6325_v23, %v4680_v28  ;;  %v2147_v35 = vmul.f32 %v6325_v23, %v4690_v2 }
 0x1b1   : > { %v2155_v15 = vmul.f32 %v6325_v23, %v4692_v6  ;;  %v2163_v56 = vmul.f32 %v6325_v23, %v4722_v55  ;;  %v2227_v42 = vrot.slane %v2115_v52, 2  ;;  %v2239_v16 = vrot.slane %v2123_v61, 2 }
 0x1b2   : > { %v2251_v5 = vrot.slane %v2131_v7, 2  ;;  %v2263_v14 = vrot.slane %v2139_v20, 2  ;;  %v2275_v32 = vrot.slane %v2147_v35, 2  ;;  %v2383_v46 = vmul.f32 %v4289_v13, %v4668_v40 }
 0x1b3   : > { %v6326_v60 = vrot.slane %v4279_v39, 2  ;;  %v6327_v59 = vrot.slane %v4283_v48, 2  ;;  %v2287_v11 = vrot.slane %v2155_v15, 2  ;;  %v2299_v10 = vrot.slane %v2163_v56, 2 }
 0x1b4   : > { %v6328_v43 = vrot.slane %v4305_v0, 2  ;;  %v6329_v57 = vrot.slane %v4321_v50, 2  ;;  %v6330_v62 = vrot.slane %v4327_v47, 2  ;;  %v6331_v52 = vrot.slane %v4331_v54, 2 }
 0x1b5   : > { %v2229_v44 = vsel %vm1247_vm3, %v2227_v42, %v6326_v60  ;;  %v2241_v53 = vsel %vm1247_vm3, %v2239_v16, %v6327_v59  ;;  %v6332_v29 = vrot.slane %v4343_v24, 2  ;;  %v2387_v47 = vmul.f32 %v4289_v13, %v4678_v41 }
 0x1b6   : > { %v2253_v22 = vsel %vm1247_vm3, %v2251_v5, %v6328_v43  ;;  %v2265_v51 = vsel %vm1247_vm3, %v2263_v14, %v6329_v57  ;;  %v2277_v39 = vsel %vm1247_vm3, %v2275_v32, %v6330_v62  ;;  %v2339_v23 = vadd.f32 %v2229_v44, %v2071_v36  ;;  %v6334_v44 = vld [vmem:[#allocation50_spill] sm:$0xff] }
 0x1b7   : > { %v2289_v48 = vsel %vm1247_vm3, %v2287_v11, %v6331_v52  ;;  %v2301_v12 = vsel %vm1247_vm3, %v2299_v10, %v6332_v29  ;;  %v2343_v0 = vadd.f32 %v2241_v53, %v2075_v33  ;;  %v2347_v3 = vadd.f32 %v2253_v22, %v2079_v25 }
 0x1b8   : > { %v2351_v1 = vadd.f32 %v2265_v51, %v2083_v30  ;;  %v2355_v34 = vadd.f32 %v2277_v39, %v2087_v31  ;;  %v2359_v50 = vadd.f32 %v2289_v48, %v2091_v49  ;;  %v2363_v61 = vadd.f32 %v2301_v12, %v2095_v45 }
 0x1b9   : > { %v2391_v36 = vmul.f32 %v4289_v13, %v4680_v28  ;;  %v2395_v54 = vmul.f32 %v4289_v13, %v4690_v2  ;;  %v2399_v24 = vmul.f32 %v4289_v13, %v4692_v6  ;;  %v2403_v33 = vmul.f32 %v4289_v13, %v4722_v55 }
 0x1ba   : > { %v2411_v25 = vadd.f32 %v2383_v46, %v2339_v23  ;;  %v2435_v30 = vadd.f32 %v4447_v21, %v2363_v61  ;;  %v2455_v31 = vmul.f32 %v4356_v17, %v4668_v40  ;;  %v2415_v49 = vadd.f32 %v2387_v47, %v2343_v0  ;;  %v6335_v0 = vld [vmem:[#allocation64_spill] sm:$0xff] }
 0x1bb   : > { %v2419_v45 = vadd.f32 %v2391_v36, %v2347_v3  ;;  %v2423_v7 = vadd.f32 %v2395_v54, %v2351_v1  ;;  %v2427_v20 = vadd.f32 %v2399_v24, %v2355_v34  ;;  %v2431_v35 = vadd.f32 %v2403_v33, %v2359_v50  ;;  %v6336_v1 = vld [vmem:[#allocation58_spill] sm:$0xff]  ;;  %v6338_v50 = vld [vmem:[#allocation59_spill] sm:$0xff]  ;;  %v6340_v47 = vld [vmem:[#allocation60_spill] sm:$0xff] }
 0x1bc   : > { %v2459_v15 = vmul.f32 %v4356_v17, %v4678_v41  ;;  %v2463_v56 = vmul.f32 %v4356_v17, %v4680_v28  ;;  %v2467_v13 = vmul.f32 %v4356_v17, %v4690_v2  ;;  %v2471_v21 = vmul.f32 %v4356_v17, %v4692_v6  ;;  %v6342_v24 = vld [vmem:[#allocation61_spill] sm:$0xff] }
 0x1bd   : > { %v2475_v42 = vmul.f32 %v4356_v17, %v4722_v55  ;;  %v2511_v16 = vrot.slane %v2455_v31, 1  ;;  %v6333_v5 = vrot.slane %v4364_v63, 1  ;;  %v2611_v59 = vmul.f32 %v6334_v44, %v4668_v40 }
 0x1be   : > { %v2515_v32 = vrot.slane %v2459_v15, 1  ;;  %v2519_v46 = vrot.slane %v2463_v56, 1  ;;  %v2523_v60 = vrot.slane %v2467_v13, 1  ;;  %v2527_v53 = vrot.slane %v2471_v21, 1 }
 0x1bf   : > { %v2591_v14 = vadd.f32 %v6333_v5, %v2435_v30  ;;  %v2531_v11 = vrot.slane %v2475_v42, 1  ;;  %v2567_v10 = vadd.f32 %v2511_v16, %v2411_v25  ;;  %v2619_v43 = vmul.f32 %v6334_v44, %v4678_v41  ;;  %v6344_v30 = vld [vmem:[#allocation62_spill] sm:$0xff] }
 0x1c0   : > { %v2571_v22 = vadd.f32 %v2515_v32, %v2415_v49  ;;  %v2575_v57 = vadd.f32 %v2519_v46, %v2419_v45  ;;  %v2579_v51 = vadd.f32 %v2523_v60, %v2423_v7  ;;  %v2627_v17 = vmul.f32 %v6334_v44, %v4680_v28  ;;  %v6346_v7 = vld [vmem:[#allocation63_spill] sm:$0xff] }
 0x1c1   : > { %v2583_v63 = vadd.f32 %v2527_v53, %v2427_v20  ;;  %v2587_v62 = vadd.f32 %v2531_v11, %v2431_v35  ;;  %v2635_v39 = vmul.f32 %v6334_v44, %v4690_v2  ;;  %v2643_v40 = vmul.f32 %v6334_v44, %v4692_v6 }
 0x1c2   : > { %v2651_v23 = vmul.f32 %v6334_v44, %v4722_v55  ;;  %v2723_v52 = vrot.slane %v2611_v59, 2  ;;  %v2735_v48 = vrot.slane %v2619_v43, 2  ;;  %v2747_v41 = vrot.slane %v2627_v17, 2 }
 0x1c3   : > { %v2759_v29 = vrot.slane %v2635_v39, 2  ;;  %v2771_v12 = vrot.slane %v2643_v40, 2  ;;  %v4838_v3 = vadd.f32 %v6335_v0, %v2591_v14  ;;  %v1031_v28 = vmax.f32 %v4647_v26, 0.0 }
 0x1c4   : > { %v6337_v34 = vrot.slane %v6336_v1, 2  ;;  %v6339_v61 = vrot.slane %v6338_v50, 2  ;;  %v6341_v55 = vrot.slane %v6340_v47, 2  ;;  %v2783_v54 = vrot.slane %v2651_v23, 2  ;;  %v1300_v1 = vld [vmem:[#allocation2 + $0x28] sm:$0x1] }
 0x1c5   : > { %v6343_v33 = vrot.slane %v6342_v24, 2  ;;  %v6345_v31 = vrot.slane %v6344_v30, 2  ;;  %v6347_v20 = vrot.slane %v6346_v7, 2  ;;  %v2874_v5 = vsel %vm1273_vm9, %v4838_v3, 0.0  ;;  %v4906_v47 = vld [vmem:[#allocation2 + $0xa8] sm:$0x1] }
 0x1c6   : > { %v2725_v2 = vsel %vm1247_vm3, %v2723_v52, %v6337_v34  ;;  %v2737_v6 = vsel %vm1247_vm3, %v2735_v48, %v6339_v61  ;;  %v2749_v36 = vsel %vm1247_vm3, %v2747_v41, %v6341_v55  ;;  %v1035_v59 = vmax.f32 %v4650_v27, 0.0  ;;  %v4901_v34 = vld [vmem:[#allocation2 + $0x68] sm:$0x1] }
 0x1c7   : > { %v2761_v25 = vsel %vm1247_vm3, %v2759_v29, %v6343_v33  ;;  %v2773_v26 = vsel %vm1247_vm3, %v2771_v12, %v6345_v31  ;;  %v4856_v49 = vadd.f32 %v2725_v2, %v2567_v10  ;;  %v4858_v45 = vadd.f32 %v2737_v6, %v2571_v22  ;;  %v6352_v24 = vld [vmem:[#allocation23_spill] sm:$0xff]  ;;  %v3531_v31 = vld [vmem:[#allocation2] sm:$0xff] }
 0x1c8   : > { %v2785_v35 = vsel %vm1247_vm3, %v2783_v54, %v6347_v20  ;;  %v4863_v15 = vadd.f32 %v2749_v36, %v2575_v57  ;;  %v4865_v56 = vadd.f32 %v2761_v25, %v2579_v51  ;;  %v4867_v13 = vadd.f32 %v2773_v26, %v2583_v63  ;;  %v3530_v54 = vld [vmem:[%s4120_s14] sm:$0xf]  ;;  %v4913_v25 = vld [vmem:[#allocation2 + $0xe8] sm:$0x1]  ;;  %v6356_v20 = vld [vmem:[#allocation36_spill] sm:$0xff] }
 0x1c9   : > { %v4869_v21 = vadd.f32 %v2785_v35, %v2587_v62  ;;  %v2863_v42 = vsel %vm1273_vm9, %v4856_v49, 0.0  ;;  %v2864_v16 = vsel %vm1273_vm9, %v4858_v45, 0.0  ;;  %v1039_v53 = vmax.f32 %v4653_v18, 0.0  ;;  %6353 = vst [vmem:[#allocation32_spill] sm:$0xff] %v4913_v25  ;;  %v4915_v30 = vld [vmem:[#allocation2 + $0x128] sm:$0x1] }
 0x1ca   : > { %v2865_v14 = vadd.f32 %v2864_v16, %v2863_v42  ;;  %v2866_v32 = vsel %vm1273_vm9, %v4863_v15, 0.0  ;;  %v2868_v46 = vsel %vm1273_vm9, %v4865_v56, 0.0  ;;  %v2870_v60 = vsel %vm1273_vm9, %v4867_v13, 0.0  ;;  %6354 = vst [vmem:[#allocation26_spill] sm:$0xff] %v4915_v30  ;;  %v6355_v26 = vld [vmem:[#allocation39_spill] sm:$0xff]  ;;  %v6357_v42 = vld [vmem:[#allocation40_spill] sm:$0xff] }
 0x1cb   : > { %v2872_v44 = vsel %vm1273_vm9, %v4869_v21, 0.0  ;;  %v1043_v11 = vmax.f32 %v4656_v8, 0.0  ;;  %v1047_v43 = vmax.f32 %v4661_v37, 0.0  ;;  %v6348_v22 = vmax.f32 %v4638_v58, 0.0 }
 0x1cc   : > { %v2867_v10 = vadd.f32 %v2866_v32, %v2865_v14  ;;  %v6350_v63 = vmax.f32 %v4641_v9, 0.0  ;;  %v1177_v27 = vrot.slane %v1031_v28, 5  ;;  %v1202_v23 = vrot.slane %v1031_v28, 4 }
 0x1cd   : > { %v1127_v57 = vrot.slane %v6348_v22, 7  ;;  %v6349_v51 = vmov %v6348_v22  ;;  %v1203_v8 = vrot.slane %v1035_v59, 4  ;;  %v1228_v52 = vrot.slane %v1035_v59, 3 }
 0x1ce   : > { %v1150_v17 = vrot.slane %v6349_v51, 6  ;;  %v1151_v62 = vrot.slane %v6350_v63, 6  ;;  %v6351_v39 = vmov %v6350_v63  ;;  %v2869_v18 = vadd.f32 %v2868_v46, %v2867_v10 }
 0x1cf   : > { %v1176_v40 = vrot.slane %v6351_v39, 5  ;;  %1136 = vst [vmem:[#allocation2 + $0x50] sm:$0xfe] %v1127_v57  ;;  %v1229_v48 = vrot.slane %v1039_v53, 3  ;;  %v1254_v29 = vrot.slane %v1039_v53, 2  ;;  %v1255_v58 = vrot.slane %v1043_v11, 2 }
 0x1d0   : > { %v1152_v37 = vsel %vm1143_vm5, %v1150_v17, %v1151_v62  ;;  %v2871_v12 = vadd.f32 %v2870_v60, %v2869_v18  ;;  %v1204_v9 = vsel %vm1195_vm7, %v1202_v23, %v1203_v8  ;;  %v1280_v28 = vrot.slane %v1043_v11, 1  ;;  %v6358_v11 = vld [vmem:[#allocation37_spill] sm:$0xff]  ;;  %v6360_v57 = vld [vmem:[#allocation38_spill] sm:$0xff] }
 0x1d1   : > { %v1178_v41 = vsel %vm1169_vm6, %v1176_v40, %v1177_v27  ;;  %1163 = vst [vmem:[#allocation2 + $0x90] sm:$0xfe] %v1152_v37  ;;  %v1230_v0 = vsel %vm1221_vm8, %v1228_v52, %v1229_v48  ;;  %1215 = vst [vmem:[#allocation2 + $0x110] sm:$0xfe] %v1204_v9  ;;  %v1256_v2 = vsel %vm1247_vm3, %v1254_v29, %v1255_v58  ;;  %v1281_v50 = vrot.slane %v1047_v43, 1  ;;  %v6359_v43 = vld [vmem:[#allocation35_spill] sm:$0xff] }
 0x1d2   : > { %1189 = vst [vmem:[#allocation2 + $0xd0] sm:$0xfe] %v1178_v41  ;;  %1241 = vst [vmem:[#allocation2 + $0x150] sm:$0xfe] %v1230_v0  ;;  %v2801_v61 = vrot.slane %v4644_v38, 2  ;;  %v2802_v6 = vrot.slane %v4666_v4, 2  ;;  %v2873_v55 = vadd.f32 %v2872_v44, %v2871_v12  ;;  %v4911_v33 = vrot.slane %v3530_v54, %v6352_v24 }
 0x1d3   : > { %1267 = vst [vmem:[#allocation2 + $0x190] sm:$0xfe] %v1256_v2  ;;  %v894_v36 = vadd.f32 1e-05, %v4589_v19  ;;  %v1392_v7 = vmul.f32 %v3531_v31, %v6355_v26  ;;  %v1282_v38 = vsel %vm1273_vm9, %v1280_v28, %v1281_v50  ;;  %v1464_v35 = vmul.f32 %v3531_v31, %v6356_v20  ;;  %v6361_v62 = vld [vmem:[#allocation46_spill] sm:$0xff]  ;;  %v6363_v23 = vld [vmem:[#allocation9_spill] sm:$0xff] }
 0x1d4   : > { %v4920_v4 = vsel %vm1247_vm3, %v2801_v61, %v2802_v6  ;;  %v4924_v19 = vmul.f32 %v3531_v31, %v6357_v42  ;;  %v2875_v16 = vadd.f32 %v2874_v5, %v2873_v55  ;;  %1293 = vst [vmem:[#allocation2 + $0x1d0] sm:$0xfe] %v1282_v38  ;;  %v4927_v14 = vmul.f32 %v6357_v42, %v1300_v1  ;;  %v6362_v40 = vld [vmem:[#allocation6_spill] sm:$0xff] }
 0x1d5   : > { %3518 = vrsqrt.f32 %v894_v36  ;;  %v4931_v32 = vmul.f32 %v6357_v42, %v4901_v34  ;;  %v1520_v60 = vrot.slane %v1464_v35, 1  ;;  %v4935_v44 = vmul.f32 %v6357_v42, %v4906_v47 }
 0x1d6   : > { %v1305_v46 = vld [vmem:[#allocation2 + $0x50] sm:$0xff]  ;;  %v4939_v59 = vmul.f32 %v6357_v42, %v4913_v25  ;;  %v4943_v5 = vmul.f32 %v6357_v42, %v4915_v30  ;;  %v2876_v53 = vrot.slane %v2875_v16, 4 }
 0x1d7   : > { %v1397_v10 = vmul.f32 %v6358_v11, %v1305_v46  ;;  %v1469_v22 = vmul.f32 %v6359_v43, %v1305_v46  ;;  %v1629_v51 = vmul.f32 %v6360_v57, %v1305_v46  ;;  %v4953_v39 = vmul.f32 %v6361_v62, %v1305_v46 }
 0x1d8   : > { %v4948_v17 = vld [vmem:[#allocation2 + $0x90] sm:$0xff]  ;;  %v4956_v27 = vmul.f32 %v6362_v40, %v1305_v46  ;;  %v4959_v18 = vmul.f32 %v6363_v23, %v1305_v46  ;;  %v4961_v8 = vadd.f32 %v1520_v60, %v1392_v7  ;;  %v2877_v52 = vadd.f32 %v2876_v53, %v2875_v16 }
 0x1d9   : > { %v4950_v63 = vld [vmem:[#allocation2 + $0xd0] sm:$0xff]  ;;  %v1401_v41 = vmul.f32 %v6358_v11, %v4948_v17  ;;  %v1473_v58 = vmul.f32 %v6359_v43, %v4948_v17  ;;  %v1525_v55 = vrot.slane %v1469_v22, 1  ;;  %v1637_v16 = vmul.f32 %v6360_v57, %v4948_v17 }
 0x1da   : > { %v4963_v48 = vld [vmem:[#allocation2 + $0x110] sm:$0xff]  ;;  %v1405_v29 = vmul.f32 %v6358_v11, %v4950_v63  ;;  %v1477_v28 = vmul.f32 %v6359_v43, %v4950_v63  ;;  %v2878_v2 = vrot.slane %v2877_v52, 2 }
 0x1db   : > { %v4965_v37 = vld [vmem:[#allocation2 + $0x150] sm:$0xff]  ;;  %v1409_v9 = vmul.f32 %v6358_v11, %v4963_v48  ;;  %v1481_v1 = vmul.f32 %v6359_v43, %v4963_v48  ;;  %v1529_v36 = vrot.slane %v1473_v58, 1  ;;  %v1581_v46 = vadd.f32 %v1525_v55, %v1397_v10 }
 0x1dc   : > { %v4973_v12 = vld [vmem:[#allocation2 + $0x190] sm:$0xff]  ;;  %v1413_v0 = vmul.f32 %v6358_v11, %v4965_v37  ;;  %v1485_v61 = vmul.f32 %v6359_v43, %v4965_v37  ;;  %v1533_v54 = vrot.slane %v1477_v28, 1  ;;  %v2879_v7 = vadd.f32 %v2878_v2, %v2877_v52  ;;  %v6364_v28 = vld [vmem:[#allocation31_spill] sm:$0xff] }
 0x1dd   : > { %v1417_v50 = vmul.f32 %v6358_v11, %v4973_v12  ;;  %v1489_v6 = vmul.f32 %v6359_v43, %v4973_v12  ;;  %v1537_v31 = vrot.slane %v1481_v1, 1  ;;  %v1585_v60 = vadd.f32 %v1529_v36, %v1401_v41  ;;  %v6366_v36 = vld [vmem:[#allocation65_spill] sm:$0xff] }
 0x1de   : > { %v1541_v38 = vrot.slane %v1485_v61, 1  ;;  %v1589_v53 = vadd.f32 %v1533_v54, %v1405_v29  ;;  %v2880_v26 = vrot.slane %v2879_v7, 1  ;;  %v1645_v43 = vmul.f32 %v6360_v57, %v4950_v63 }
 0x1df   : > { %v1545_v35 = vrot.slane %v1489_v6, 1  ;;  %v1593_v11 = vadd.f32 %v1537_v31, %v1409_v9  ;;  %v4991_v20 = vpop.eup %3518  ;;  %v1653_v22 = vmul.f32 %v6360_v57, %v4963_v48  ;;  %v1661_v52 = vmul.f32 %v6360_v57, %v4965_v37 }
 0x1e0   : > { %v1597_v30 = vadd.f32 %v1541_v38, %v1413_v0  ;;  %v1669_v10 = vmul.f32 %v6360_v57, %v4973_v12  ;;  %v1749_v41 = vrot.slane %v1629_v51, 2  ;;  %v2881_v29 = vadd.f32 %v2880_v26, %v2879_v7  ;;  %v6368_v57 = vld [vmem:[#allocation66_spill] sm:$0xff]  ;;  %v6370_v38 = vld [vmem:[#allocation67_spill] sm:$0xff] }
 0x1e1   : > { %v1601_v25 = vadd.f32 %v1545_v35, %v1417_v50  ;;  %v1761_v58 = vrot.slane %v1637_v16, 2  ;;  %v1773_v9 = vrot.slane %v1645_v43, 2  ;;  %v1893_v0 = vmul.f32 %v6361_v62, %v4948_v17  ;;  %v6372_v43 = vld [vmem:[#allocation68_spill] sm:$0xff] }
 0x1e2   : > { %v6365_v1 = vrot.slane %v6364_v28, 2  ;;  %v1785_v50 = vrot.slane %v1653_v22, 2  ;;  %v1797_v61 = vrot.slane %v1661_v52, 2  ;;  %v1809_v6 = vrot.slane %v1669_v10, 2  ;;  %v6374_v52 = vld [vmem:[#allocation69_spill] sm:$0xff] }
 0x1e3   : > { %v2940_v55 = vmul.f32 0.020408163, %v2881_v29  ;;  %v6367_v54 = vrot.slane %v6366_v36, 2  ;;  %v6369_v51 = vrot.slane %v6368_v57, 2  ;;  %v6371_v35 = vrot.slane %v6370_v38, 2 }
 0x1e4   : > { %v1751_v2 = vsel %vm1247_vm3, %v1749_v41, %v6365_v1  ;;  %v6373_v28 = vrot.slane %v6372_v43, 2  ;;  %v6375_v10 = vrot.slane %v6374_v52, 2  ;;  %v1905_v52 = vmul.f32 %v6361_v62, %v4965_v37 }
 0x1e5   : > { %v1763_v31 = vsel %vm1247_vm3, %v1761_v58, %v6367_v54  ;;  %v1775_v26 = vsel %vm1247_vm3, %v1773_v9, %v6369_v51  ;;  %v1849_v7 = vadd.f32 %v1751_v2, %v1581_v46  ;;  %v1787_v16 = vsel %vm1247_vm3, %v1785_v50, %v6371_v35 }
 0x1e6   : > { %v1799_v22 = vsel %vm1247_vm3, %v1797_v61, %v6373_v28  ;;  %v1811_v41 = vsel %vm1247_vm3, %v1809_v6, %v6375_v10  ;;  %v1853_v29 = vadd.f32 %v1763_v31, %v1585_v60  ;;  %v5022_v58 = vsub.f32 %v4856_v49, %v2940_v55  ;;  %v5060_v31 = vld [vmem:[#allocation2 + $0x1d0] sm:$0xff] }
 0x1e7   : > { %v5025_v1 = vsub.f32 %v4858_v45, %v2940_v55  ;;  %v5028_v46 = vsub.f32 %v4863_v15, %v2940_v55  ;;  %v5031_v9 = vsub.f32 %v4865_v56, %v2940_v55  ;;  %v5034_v2 = vsub.f32 %v4867_v13, %v2940_v55 }
 0x1e8   : > { %v5037_v50 = vsub.f32 %v4869_v21, %v2940_v55  ;;  %v5040_v60 = vsub.f32 %v4838_v3, %v2940_v55  ;;  %v1857_v49 = vadd.f32 %v1775_v26, %v1589_v53  ;;  %v2972_v45 = vmul.f32 %v5022_v58, %v5022_v58 }
 0x1e9   : > { %v2976_v15 = vmul.f32 %v5025_v1, %v5025_v1  ;;  %v2980_v56 = vmul.f32 %v5028_v46, %v5028_v46  ;;  %v2984_v13 = vmul.f32 %v5031_v9, %v5031_v9  ;;  %v2988_v21 = vmul.f32 %v5034_v2, %v5034_v2 }
 0x1ea   : > { %v2992_v3 = vmul.f32 %v5037_v50, %v5037_v50  ;;  %v2996_v53 = vmul.f32 %v5040_v60, %v5040_v60  ;;  %v1861_v61 = vadd.f32 %v1787_v16, %v1593_v11  ;;  %v3000_v6 = vsel %vm1273_vm9, %v2972_v45, 0.0 }
 0x1eb   : > { %v3001_v55 = vsel %vm1273_vm9, %v2976_v15, 0.0  ;;  %v3003_v36 = vsel %vm1273_vm9, %v2980_v56, 0.0  ;;  %v3005_v54 = vsel %vm1273_vm9, %v2984_v13, 0.0  ;;  %v3007_v51 = vsel %vm1273_vm9, %v2988_v21, 0.0  ;;  %v6376_v15 = vld [vmem:[#allocation77_spill] sm:$0xff] }
 0x1ec   : > { %v3002_v57 = vadd.f32 %v3001_v55, %v3000_v6  ;;  %v3009_v26 = vsel %vm1273_vm9, %v2992_v3, 0.0  ;;  %v3011_v38 = vsel %vm1273_vm9, %v2996_v53, 0.0  ;;  %v1865_v35 = vadd.f32 %v1799_v22, %v1597_v30 }
 0x1ed   : > { %v1869_v43 = vadd.f32 %v1811_v41, %v1601_v25  ;;  %v1897_v11 = vmul.f32 %v6361_v62, %v4950_v63  ;;  %v1901_v16 = vmul.f32 %v6361_v62, %v4963_v48  ;;  %v1909_v10 = vmul.f32 %v6361_v62, %v4973_v12 }
 0x1ee   : > { %v3004_v28 = vadd.f32 %v3003_v36, %v3002_v57  ;;  %v1913_v45 = vmul.f32 %v6361_v62, %v5060_v31  ;;  %v1917_v30 = vadd.f32 %v4953_v39, %v6376_v15  ;;  %v1921_v25 = vadd.f32 %v1893_v0, %v1849_v7 }
 0x1ef   : > { %v1925_v22 = vadd.f32 %v1897_v11, %v1853_v29  ;;  %v1929_v41 = vadd.f32 %v1901_v16, %v1857_v49  ;;  %v1933_v13 = vadd.f32 %v1905_v52, %v1861_v61  ;;  %v1937_v21 = vadd.f32 %v1909_v10, %v1865_v35 }
 0x1f0   : > { %v3006_v56 = vadd.f32 %v3005_v54, %v3004_v28  ;;  %v1941_v3 = vadd.f32 %v1913_v45, %v1869_v43  ;;  %v1965_v53 = vmul.f32 %v6362_v40, %v4948_v17  ;;  %v1969_v6 = vmul.f32 %v6362_v40, %v4950_v63 }
 0x1f1   : > { %v1973_v55 = vmul.f32 %v6362_v40, %v4963_v48  ;;  %v1977_v62 = vmul.f32 %v6362_v40, %v4965_v37  ;;  %v1981_v0 = vmul.f32 %v6362_v40, %v4973_v12  ;;  %v1985_v7 = vmul.f32 %v6362_v40, %v5060_v31 }
 0x1f2   : > { %v3008_v39 = vadd.f32 %v3007_v51, %v3006_v56  ;;  %v2017_v29 = vrot.slane %v4956_v27, 1  ;;  %v2021_v49 = vrot.slane %v1965_v53, 1  ;;  %v2025_v61 = vrot.slane %v1969_v6, 1 }
 0x1f3   : > { %v2029_v36 = vrot.slane %v1973_v55, 1  ;;  %v2033_v54 = vrot.slane %v1977_v62, 1  ;;  %v2037_v35 = vrot.slane %v1981_v0, 1  ;;  %v2041_v43 = vrot.slane %v1985_v7, 1  ;;  %v6377_v55 = vld [vmem:[#allocation70_spill] sm:$0xff]  ;;  %v6379_v0 = vld [vmem:[#allocation71_spill] sm:$0xff] }
 0x1f4   : > { %v3010_v57 = vadd.f32 %v3009_v26, %v3008_v39  ;;  %v2073_v11 = vadd.f32 %v2017_v29, %v1917_v30  ;;  %v2077_v16 = vadd.f32 %v2021_v49, %v1921_v25  ;;  %v2081_v28 = vadd.f32 %v2025_v61, %v1925_v22  ;;  %v6381_v61 = vld [vmem:[#allocation72_spill] sm:$0xff] }
 0x1f5   : > { %v2085_v52 = vadd.f32 %v2029_v36, %v1929_v41  ;;  %v2089_v51 = vadd.f32 %v2033_v54, %v1933_v13  ;;  %v2093_v45 = vadd.f32 %v2037_v35, %v1937_v21  ;;  %v2097_v15 = vadd.f32 %v2041_v43, %v1941_v3  ;;  %v6385_v35 = vld [vmem:[#allocation74_spill] sm:$0xff] }
 0x1f6   : > { %v3012_v10 = vadd.f32 %v3011_v38, %v3010_v57  ;;  %v2125_v40 = vmul.f32 %v6363_v23, %v4948_v17  ;;  %v2133_v27 = vmul.f32 %v6363_v23, %v4950_v63  ;;  %v2141_v56 = vmul.f32 %v6363_v23, %v4963_v48 }
 0x1f7   : > { %v2149_v26 = vmul.f32 %v6363_v23, %v4965_v37  ;;  %v2157_v30 = vmul.f32 %v6363_v23, %v4973_v12  ;;  %v2165_v38 = vmul.f32 %v6363_v23, %v5060_v31  ;;  %v2233_v22 = vrot.slane %v4959_v18, 2  ;;  %v6383_v18 = vld [vmem:[#allocation73_spill] sm:$0xff] }
 0x1f8   : > { %v3013_v25 = vrot.slane %v3012_v10, 4  ;;  %v2245_v41 = vrot.slane %v2125_v40, 2  ;;  %v2257_v13 = vrot.slane %v2133_v27, 2  ;;  %v2269_v21 = vrot.slane %v2141_v56, 2  ;;  %v6387_v40 = vld [vmem:[#allocation75_spill] sm:$0xff] }
 0x1f9   : > { %v2281_v3 = vrot.slane %v2149_v26, 2  ;;  %v2293_v53 = vrot.slane %v2157_v30, 2  ;;  %v6378_v62 = vrot.slane %v6377_v55, 2  ;;  %v6380_v7 = vrot.slane %v6379_v0, 2  ;;  %v6389_v30 = vld [vmem:[#allocation76_spill] sm:$0xff] }
 0x1fa   : > { %v3014_v6 = vadd.f32 %v3013_v25, %v3012_v10  ;;  %v2305_v49 = vrot.slane %v2165_v38, 2  ;;  %v6382_v36 = vrot.slane %v6381_v61, 2  ;;  %v6384_v54 = vrot.slane %v6383_v18, 2  ;;  %v6391_v61 = vld [vmem:[#allocation12_spill] sm:$0xff] }
 0x1fb   : > { %v2235_v39 = vsel %vm1247_vm3, %v2233_v22, %v6378_v62  ;;  %v2247_v29 = vsel %vm1247_vm3, %v2245_v41, %v6380_v7  ;;  %v6386_v43 = vrot.slane %v6385_v35, 2  ;;  %v6388_v27 = vrot.slane %v6387_v40, 2 }
 0x1fc   : > { %v2259_v23 = vsel %vm1247_vm3, %v2257_v13, %v6382_v36  ;;  %v2271_v57 = vsel %vm1247_vm3, %v2269_v21, %v6384_v54  ;;  %v3015_v26 = vrot.slane %v3014_v6, 2  ;;  %v6390_v25 = vrot.slane %v6389_v30, 2  ;;  %v6393_v54 = vld [vmem:[#allocation16_spill] sm:$0xff] }
 0x1fd   : > { %v2283_v10 = vsel %vm1247_vm3, %v2281_v3, %v6386_v43  ;;  %v2295_v56 = vsel %vm1247_vm3, %v2293_v53, %v6388_v27  ;;  %v2341_v22 = vadd.f32 %v2235_v39, %v2073_v11  ;;  %v2345_v41 = vadd.f32 %v2247_v29, %v2077_v16 }
 0x1fe   : > { %v2307_v38 = vsel %vm1247_vm3, %v2305_v49, %v6390_v25  ;;  %v2349_v13 = vadd.f32 %v2259_v23, %v2081_v28  ;;  %v2353_v55 = vadd.f32 %v2271_v57, %v2085_v52  ;;  %v2357_v62 = vadd.f32 %v2283_v10, %v2089_v51 }
 0x1ff   : > { %v2361_v0 = vadd.f32 %v2295_v56, %v2093_v45  ;;  %v3016_v21 = vadd.f32 %v3015_v26, %v3014_v6  ;;  %v2365_v7 = vadd.f32 %v2307_v38, %v2097_v15  ;;  %v2385_v3 = vmul.f32 %v6391_v61, %v4948_v17  ;;  %v6392_v45 = vld [vmem:[#allocation86_spill] sm:$0xff]  ;;  %v6394_v56 = vld [vmem:[#allocation87_spill] sm:$0xff] }
 0x200   : > { %v2389_v36 = vmul.f32 %v6391_v61, %v4950_v63  ;;  %v2393_v53 = vmul.f32 %v6391_v61, %v4963_v48  ;;  %v2397_v49 = vmul.f32 %v6391_v61, %v4965_v37  ;;  %v2401_v11 = vmul.f32 %v6391_v61, %v4973_v12 }
 0x201   : > { %v2405_v16 = vmul.f32 %v6391_v61, %v5060_v31  ;;  %v3017_v28 = vrot.slane %v3016_v21, 1  ;;  %v2413_v52 = vadd.f32 %v2385_v3, %v2341_v22  ;;  %v2437_v15 = vadd.f32 %v6392_v45, %v2365_v7 }
 0x202   : > { %v2417_v51 = vadd.f32 %v2389_v36, %v2345_v41  ;;  %v2421_v6 = vadd.f32 %v2393_v53, %v2349_v13  ;;  %v2425_v39 = vadd.f32 %v2397_v49, %v2353_v55  ;;  %v2429_v29 = vadd.f32 %v2401_v11, %v2357_v62 }
 0x203   : > { %v2433_v23 = vadd.f32 %v2405_v16, %v2361_v0  ;;  %v3018_v18 = vadd.f32 %v3017_v28, %v3016_v21  ;;  %v2457_v57 = vmul.f32 %v6393_v54, %v4948_v17  ;;  %v2461_v35 = vmul.f32 %v6393_v54, %v4950_v63  ;;  %v3532_v0 = vld [vmem:[%s3947_s18 + $0x30] ss:$0 sm:$0xff] }
 0x204   : > { %v2465_v43 = vmul.f32 %v6393_v54, %v4963_v48  ;;  %v2469_v10 = vmul.f32 %v6393_v54, %v4965_v37  ;;  %v2473_v40 = vmul.f32 %v6393_v54, %v4973_v12  ;;  %v2477_v27 = vmul.f32 %v6393_v54, %v5060_v31 }
 0x205   : > { %v6395_v26 = vrot.slane %v6394_v56, 1  ;;  %v3076_v25 = vmul.f32 0.020408163, %v3018_v18  ;;  %v2513_v38 = vrot.slane %v2457_v57, 1  ;;  %v2517_v22 = vrot.slane %v2461_v35, 1  ;;  %v6404_v56 = vld [vmem:[#allocation82_spill] sm:$0xff] }
 0x206   : > { %v2521_v41 = vrot.slane %v2465_v43, 1  ;;  %v2525_v13 = vrot.slane %v2469_v10, 1  ;;  %v2529_v55 = vrot.slane %v2473_v40, 1  ;;  %v2533_v62 = vrot.slane %v2477_v27, 1  ;;  %v6402_v10 = vld [vmem:[#allocation81_spill] sm:$0xff] }
 0x207   : > { %v2593_v30 = vadd.f32 %v6395_v26, %v2437_v15  ;;  %v2613_v21 = vmul.f32 %v3532_v0, %v4948_v17  ;;  %v3080_v7 = vadd.f32 1e-05, %v3076_v25  ;;  %v2569_v61 = vadd.f32 %v2513_v38, %v2413_v52 }
 0x208   : > { %v2573_v3 = vadd.f32 %v2517_v22, %v2417_v51  ;;  %v2577_v36 = vadd.f32 %v2521_v41, %v2421_v6  ;;  %v2581_v53 = vadd.f32 %v2525_v13, %v2425_v39  ;;  %v2585_v49 = vadd.f32 %v2529_v55, %v2429_v29  ;;  %v6396_v29 = vld [vmem:[#allocation30_spill] sm:$0xff]  ;;  %v5186_v41 = vld [vmem:[#allocation2 + $0x168] sm:$0x1]  ;;  %v6408_v13 = vld [vmem:[#allocation85_spill] sm:$0xff] }
 0x209   : > { %v2589_v11 = vadd.f32 %v2533_v62, %v2433_v23  ;;  %v2621_v16 = vmul.f32 %v3532_v0, %v4950_v63  ;;  %3520 = vrsqrt.f32 %v3080_v7  ;;  %v2629_v28 = vmul.f32 %v3532_v0, %v4963_v48  ;;  %v6398_v48 = vld [vmem:[#allocation79_spill] sm:$0xff] }
 0x20a   : > { %v2637_v45 = vmul.f32 %v3532_v0, %v4965_v37  ;;  %v2645_v15 = vmul.f32 %v3532_v0, %v4973_v12  ;;  %v2653_v18 = vmul.f32 %v3532_v0, %v5060_v31  ;;  %v2729_v54 = vrot.slane %v2613_v21, 2  ;;  %v6400_v12 = vld [vmem:[#allocation80_spill] sm:$0xff] }
 0x20b   : > { %v2741_v17 = vrot.slane %v2621_v16, 2  ;;  %v5159_v52 = vadd.f32 %v4920_v4, %v2593_v30  ;;  %v2753_v51 = vrot.slane %v2629_v28, 2  ;;  %v6397_v63 = vrot.slane %v6396_v29, %v6352_v24  ;;  %v6406_v30 = vld [vmem:[#allocation84_spill] sm:$0xff]  ;;  %v6413_v29 = vld [vmem:[#allocation53_spill] sm:$0xff] }
 0x20c   : > { %v2765_v6 = vrot.slane %v2637_v45, 2  ;;  %v2777_v39 = vrot.slane %v2645_v15, 2  ;;  %v6399_v57 = vrot.slane %v6398_v48, 2  ;;  %v6401_v35 = vrot.slane %v6400_v12, 2  ;;  %v6410_v45 = vld [vmem:[#allocation29_spill] sm:$0xff] }
 0x20d   : > { %v924_v23 = vmul.f32 %v4991_v20, %v6397_v63  ;;  %v2789_v43 = vrot.slane %v2653_v18, 2  ;;  %v5173_v4 = vsel %vm1273_vm9, %v5159_v52, 0.0  ;;  %v6403_v40 = vrot.slane %v6402_v10, 2  ;;  %v6417_v10 = vld [vmem:[#allocation57_spill] sm:$0xff] }
 0x20e   : > { %v2731_v37 = vsel %vm1247_vm3, %v2729_v54, %v6399_v57  ;;  %v2743_v31 = vsel %vm1247_vm3, %v2741_v17, %v6401_v35  ;;  %v6405_v26 = vrot.slane %v6404_v56, 2  ;;  %v6407_v25 = vrot.slane %v6406_v30, 2  ;;  %v6411_v17 = vld [vmem:[#allocation51_spill] sm:$0xff]  ;;  %v6418_v56 = vld [vmem:[#allocation78_spill] sm:$0xff] }
 0x20f   : > { %v2755_v27 = vsel %vm1247_vm3, %v2753_v51, %v6403_v40  ;;  %v5184_v22 = vadd.f32 %v2731_v37, %v2569_v61  ;;  %v6409_v55 = vrot.slane %v6408_v13, 2  ;;  %v5191_v0 = vadd.f32 %v2743_v31, %v2573_v3  ;;  %v6415_v57 = vld [vmem:[#allocation55_spill] sm:$0xff]  ;;  %v6416_v31 = vld [vmem:[#allocation56_spill] sm:$0xff] }
 0x210   : > { %v2767_v20 = vsel %vm1247_vm3, %v2765_v6, %v6405_v26  ;;  %v2779_v38 = vsel %vm1247_vm3, %v2777_v39, %v6407_v25  ;;  %v5193_v21 = vadd.f32 %v2755_v27, %v2577_v36  ;;  %v934_v15 = vrot.slane %v924_v23, %v6410_v45  ;;  %v6412_v6 = vld [vmem:[#allocation52_spill] sm:$0xff]  ;;  %v6414_v23 = vld [vmem:[#allocation54_spill] sm:$0xff] }
 0x211   : > { %v2791_v62 = vsel %vm1247_vm3, %v2789_v43, %v6409_v55  ;;  %v5195_v7 = vadd.f32 %v2767_v20, %v2581_v53  ;;  %v5197_v16 = vadd.f32 %v2779_v38, %v2585_v49  ;;  %v2901_v61 = vsel %vm1273_vm9, %v5184_v22, 0.0 }
 0x212   : > { %v5199_v28 = vadd.f32 %v2791_v62, %v2589_v11  ;;  %v2902_v18 = vsel %vm1273_vm9, %v5191_v0, 0.0  ;;  %v2904_v3 = vsel %vm1273_vm9, %v5193_v21, 0.0  ;;  %v5212_v53 = vmul.f32 %v6357_v42, %v5186_v41 }
 0x213   : > { %v2906_v36 = vsel %vm1273_vm9, %v5195_v7, 0.0  ;;  %v2903_v49 = vadd.f32 %v2902_v18, %v2901_v61  ;;  %v2908_v11 = vsel %vm1273_vm9, %v5197_v16, 0.0  ;;  %v944_v51 = vmul.f32 %v934_v15, %v6411_v17  ;;  %v3521_v12 = vpop.eup %3520 }
 0x214   : > { %v2910_v54 = vsel %vm1273_vm9, %v5199_v28, 0.0  ;;  %v948_v39 = vmul.f32 %v934_v15, %v6412_v6  ;;  %v952_v63 = vmul.f32 %v934_v15, %v6413_v29  ;;  %v956_v48 = vmul.f32 %v934_v15, %v6414_v23 }
 0x215   : > { %v960_v37 = vmul.f32 %v934_v15, %v6415_v57  ;;  %v2905_v35 = vadd.f32 %v2904_v3, %v2903_v49  ;;  %v964_v43 = vmul.f32 %v934_v15, %v6416_v31  ;;  %v968_v40 = vmul.f32 %v934_v15, %v6417_v10 }
 0x216   : > { %v994_v27 = vadd.f32 %v4911_v33, %v944_v51  ;;  %v6419_v26 = vrot.slane %v6418_v56, %v6410_v45  ;;  %v998_v30 = vadd.f32 %v4911_v33, %v948_v39  ;;  %v1002_v25 = vadd.f32 %v4911_v33, %v952_v63 }
 0x217   : > { %v1006_v38 = vadd.f32 %v4911_v33, %v956_v48  ;;  %v2907_v13 = vadd.f32 %v2906_v36, %v2905_v35  ;;  %v1010_v55 = vadd.f32 %v4911_v33, %v960_v37  ;;  %v1014_v62 = vadd.f32 %v4911_v33, %v964_v43  ;;  %v6420_v48 = vld [vmem:[#allocation34_spill] sm:$0xff] }
 0x218   : > { %v3110_v20 = vmul.f32 %v3521_v12, %v6419_v26  ;;  %v1018_v61 = vadd.f32 %v4911_v33, %v968_v40  ;;  %v1022_v18 = vmax.f32 %v994_v27, 0.0  ;;  %v1026_v3 = vmax.f32 %v998_v30, 0.0 }
 0x219   : > { %v1030_v49 = vmax.f32 %v1002_v25, 0.0  ;;  %v2909_v17 = vadd.f32 %v2908_v11, %v2907_v13  ;;  %v1034_v51 = vmax.f32 %v1006_v38, 0.0  ;;  %v1038_v6 = vmax.f32 %v1010_v55, 0.0  ;;  %v5265_v38 = vld [vmem:[#allocation2 + $0x1a8] sm:$0x1] }
 0x21a   : > { %v3117_v15 = vrot.slane %v3110_v20, %v6410_v45  ;;  %v1042_v39 = vmax.f32 %v1014_v62, 0.0  ;;  %v1126_v35 = vrot.slane %v1022_v18, 7  ;;  %v1147_v31 = vrot.slane %v1022_v18, 6 }
 0x21b   : > { %v1148_v43 = vrot.slane %v1026_v3, 6  ;;  %v1173_v40 = vrot.slane %v1026_v3, 5  ;;  %v1174_v27 = vrot.slane %v1030_v49, 5  ;;  %v1199_v26 = vrot.slane %v1030_v49, 4 }
 0x21c   : > { %v3130_v29 = vmul.f32 %v3117_v15, %v5022_v58  ;;  %v3134_v63 = vmul.f32 %v3117_v15, %v5025_v1  ;;  %v3138_v36 = vmul.f32 %v3117_v15, %v5028_v46  ;;  %v3142_v23 = vmul.f32 %v3117_v15, %v5031_v9  ;;  %1135 = vst [vmem:[#allocation2 + $0x48] sm:$0xfe] %v1126_v35  ;;  %v6424_v35 = vld [vmem:[#allocation39_spill] sm:$0xff] }
 0x21d   : > { %v3146_v33 = vmul.f32 %v3117_v15, %v5034_v2  ;;  %v3150_v11 = vmul.f32 %v3117_v15, %v5037_v50  ;;  %v3154_v58 = vmul.f32 %v3117_v15, %v5040_v60  ;;  %v2911_v1 = vadd.f32 %v2910_v54, %v2909_v17 }
 0x21e   : > { %v3180_v46 = vadd.f32 %v6420_v48, %v3130_v29  ;;  %v3184_v9 = vadd.f32 %v6420_v48, %v3134_v63  ;;  %v3188_v57 = vadd.f32 %v6420_v48, %v3138_v36  ;;  %v3192_v37 = vadd.f32 %v6420_v48, %v3142_v23 }
 0x21f   : > { %v3196_v12 = vadd.f32 %v6420_v48, %v3146_v33  ;;  %v3200_v2 = vadd.f32 %v6420_v48, %v3150_v11  ;;  %v3204_v50 = vadd.f32 %v6420_v48, %v3154_v58  ;;  %v2913_v60 = vadd.f32 %v5173_v4, %v2911_v1 }
 0x220   : > { %3208 = vst [vmem:[%s5244_s15] sm:$0x7f] %v3180_v46  ;;  %3212 = vst [vmem:[%s5244_s15 + $0x20] sm:$0x7f] %v3184_v9  ;;  %v1046_v54 = vmax.f32 %v1018_v61, 0.0  ;;  %v1149_v20 = vsel %vm1143_vm5, %v1147_v31, %v1148_v43  ;;  %v1200_v30 = vrot.slane %v1034_v51, 4  ;;  %v1225_v4 = vrot.slane %v1034_v51, 3 }
 0x221   : > { %3216 = vst [vmem:[%s5244_s15 + $0x40] sm:$0x7f] %v3188_v57  ;;  %3220 = vst [vmem:[%s5244_s15 + $0x60] sm:$0x7f] %v3192_v37  ;;  %v2914_v10 = vrot.slane %v2913_v60, 4  ;;  %v1226_v25 = vrot.slane %v1038_v6, 3  ;;  %v1175_v55 = vsel %vm1169_vm6, %v1173_v40, %v1174_v27  ;;  %v5273_v29 = vmul.f32 %v6357_v42, %v5265_v38 }
 0x222   : > { %3224 = vst [vmem:[%s5244_s15 + $0x80] sm:$0x7f] %v3196_v12  ;;  %3228 = vst [vmem:[%s5244_s15 + $0xa0] sm:$0x7f] %v3200_v2  ;;  %v1251_v62 = vrot.slane %v1038_v6, 2  ;;  %v1252_v61 = vrot.slane %v1042_v39, 2  ;;  %v1201_v15 = vsel %vm1195_vm7, %v1199_v26, %v1200_v30 }
 0x223   : > { %3232 = vst [vmem:[%s5244_s15 + $0xc0] sm:$0x7f] %v3204_v50  ;;  %v2915_v13 = vadd.f32 %v2914_v10, %v2913_v60  ;;  %1162 = vst [vmem:[#allocation2 + $0x88] sm:$0xfe] %v1149_v20  ;;  %v1227_v18 = vsel %vm1221_vm8, %v1225_v4, %v1226_v25  ;;  %v1277_v3 = vrot.slane %v1042_v39, 1  ;;  %v1278_v49 = vrot.slane %v1046_v54, 1 }
 0x224   : > { %1188 = vst [vmem:[#allocation2 + $0xc8] sm:$0xfe] %v1175_v55  ;;  %1214 = vst [vmem:[#allocation2 + $0x108] sm:$0xfe] %v1201_v15  ;;  %v1253_v51 = vsel %vm1247_vm3, %v1251_v62, %v1252_v61  ;;  %v1734_v63 = vrot.slane %v4924_v19, 2  ;;  %v1735_v36 = vrot.slane %v4927_v14, 2 }
 0x225   : > { %v2916_v17 = vrot.slane %v2915_v13, 2  ;;  %1240 = vst [vmem:[#allocation2 + $0x148] sm:$0xfe] %v1227_v18  ;;  %1266 = vst [vmem:[#allocation2 + $0x188] sm:$0xfe] %v1253_v51  ;;  %v1279_v6 = vsel %vm1273_vm9, %v1277_v3, %v1278_v49  ;;  %v6421_v46 = vld [vmem:[#allocation10_spill] sm:$0xff] }
 0x226   : > { %1292 = vst [vmem:[#allocation2 + $0x1c8] sm:$0xfe] %v1279_v6  ;;  %v1736_v48 = vsel %vm1247_vm3, %v1734_v63, %v1735_v36  ;;  %v5287_v9 = vmul.f32 %v6421_v46, %v4901_v34  ;;  %v5291_v14 = vmul.f32 %v6421_v46, %v4906_v47  ;;  %v5293_v37 = vld [vmem:[#allocation2 + $0x48] sm:$0xff]  ;;  %v6422_v2 = vld [vmem:[#allocation32_spill] sm:$0xff]  ;;  %v6423_v60 = vld [vmem:[#allocation26_spill] sm:$0xff] }
 0x227   : > { %v2917_v33 = vadd.f32 %v2916_v17, %v2915_v13  ;;  %v5296_v12 = vadd.f32 %v1736_v48, %v4961_v8  ;;  %v5300_v50 = vmul.f32 %v6421_v46, %v6422_v2  ;;  %v5304_v54 = vmul.f32 %v6421_v46, %v6423_v60  ;;  %v6425_v31 = vld [vmem:[#allocation36_spill] sm:$0xff]  ;;  %v6426_v10 = vld [vmem:[#allocation45_spill] sm:$0xff] }
 0x228   : > { %v1396_v47 = vmul.f32 %v6424_v35, %v5293_v37  ;;  %v1468_v43 = vmul.f32 %v6425_v31, %v5293_v37  ;;  %v5314_v8 = vmul.f32 %v6357_v42, %v5293_v37  ;;  %v5318_v40 = vmul.f32 %v6426_v10, %v5293_v37 }
 0x229   : > { %v2918_v57 = vrot.slane %v2917_v33, 1 }
 0x22a   : > { %v5306_v34 = vld [vmem:[#allocation2 + $0x88] sm:$0xff]  ;;  %v1524_v61 = vrot.slane %v1468_v43, 1 }
 0x22b   : > { %v2919_v27 = vadd.f32 %v2918_v57, %v2917_v33  ;;  %v5320_v26 = vld [vmem:[#allocation2 + $0xc8] sm:$0xff]  ;;  %v1400_v20 = vmul.f32 %v6424_v35, %v5306_v34  ;;  %v1472_v30 = vmul.f32 %v6425_v31, %v5306_v34  ;;  %v5328_v4 = vmul.f32 %v6357_v42, %v5306_v34 }
 0x22c   : > { %v5330_v25 = vld [vmem:[#allocation2 + $0x108] sm:$0xff]  ;;  %v1404_v55 = vmul.f32 %v6424_v35, %v5320_v26  ;;  %v1476_v62 = vmul.f32 %v6425_v31, %v5320_v26  ;;  %v1644_v15 = vmul.f32 %v6357_v42, %v5320_v26 }
 0x22d   : > { %v5332_v13 = vld [vmem:[#allocation2 + $0x148] sm:$0xff]  ;;  %v2942_v18 = vmul.f32 0.020408163, %v2919_v27  ;;  %v1408_v49 = vmul.f32 %v6424_v35, %v5330_v25  ;;  %v1480_v51 = vmul.f32 %v6425_v31, %v5330_v25  ;;  %v1528_v33 = vrot.slane %v1472_v30, 1 }
 0x22e   : > { %v5340_v3 = vld [vmem:[#allocation2 + $0x188] sm:$0xff]  ;;  %v1412_v17 = vmul.f32 %v6424_v35, %v5332_v13  ;;  %v1484_v6 = vmul.f32 %v6425_v31, %v5332_v13 }
 0x22f   : > { %v1416_v63 = vmul.f32 %v6424_v35, %v5340_v3  ;;  %v1488_v36 = vmul.f32 %v6425_v31, %v5340_v3  ;;  %v5355_v48 = vsub.f32 %v5184_v22, %v2942_v18  ;;  %v5358_v57 = vsub.f32 %v5191_v0, %v2942_v18 }
 0x230   : > { %v5361_v2 = vsub.f32 %v5193_v21, %v2942_v18  ;;  %v5364_v60 = vsub.f32 %v5195_v7, %v2942_v18  ;;  %v5367_v35 = vsub.f32 %v5197_v16, %v2942_v18  ;;  %v5370_v43 = vsub.f32 %v5199_v28, %v2942_v18 }
 0x231   : > { %v5373_v31 = vsub.f32 %v5159_v52, %v2942_v18  ;;  %v1532_v22 = vrot.slane %v1476_v62, 1  ;;  %v2974_v0 = vmul.f32 %v5355_v48, %v5355_v48  ;;  %v2978_v21 = vmul.f32 %v5358_v57, %v5358_v57 }
 0x232   : > { %6427 = vst [vmem:[#allocation28_spill] sm:$0xff] %v5361_v2  ;;  %6428 = vst [vmem:[#allocation44_spill] sm:$0xff] %v5364_v60  ;;  %v2982_v7 = vmul.f32 %v5361_v2, %v5361_v2  ;;  %v2986_v16 = vmul.f32 %v5364_v60, %v5364_v60  ;;  %v2990_v28 = vmul.f32 %v5367_v35, %v5367_v35  ;;  %v1536_v30 = vrot.slane %v1480_v51, 1 }
 0x233   : > { %6429 = vst [vmem:[#allocation41_spill] sm:$0xff] %v5367_v35  ;;  %6430 = vst [vmem:[#allocation42_spill] sm:$0xff] %v5370_v43  ;;  %v2994_v52 = vmul.f32 %v5370_v43, %v5370_v43  ;;  %v2998_v27 = vmul.f32 %v5373_v31, %v5373_v31  ;;  %v3038_v62 = vsel %vm1273_vm9, %v2974_v0, 0.0  ;;  %v3039_v18 = vsel %vm1273_vm9, %v2978_v21, 0.0 }
 0x234   : > { %6431 = vst [vmem:[#allocation43_spill] sm:$0xff] %v5373_v31  ;;  %v3041_v19 = vsel %vm1273_vm9, %v2982_v7, 0.0  ;;  %v3043_v1 = vsel %vm1273_vm9, %v2986_v16, 0.0  ;;  %v3040_v58 = vadd.f32 %v3039_v18, %v3038_v62  ;;  %v3045_v11 = vsel %vm1273_vm9, %v2990_v28, 0.0 }
 0x235   : > { %v3047_v39 = vsel %vm1273_vm9, %v2994_v52, 0.0  ;;  %v3049_v23 = vsel %vm1273_vm9, %v2998_v27, 0.0  ;;  %v1540_v24 = vrot.slane %v1484_v6, 1  ;;  %v1544_v43 = vrot.slane %v1488_v36, 1 }
 0x236   : > { %v1580_v35 = vadd.f32 %v1524_v61, %v1396_v47  ;;  %v1584_v31 = vadd.f32 %v1528_v33, %v1400_v20  ;;  %v3042_v51 = vadd.f32 %v3041_v19, %v3040_v58  ;;  %v1588_v60 = vadd.f32 %v1532_v22, %v1404_v55 }
 0x237   : > { %v1592_v0 = vadd.f32 %v1536_v30, %v1408_v49  ;;  %v1652_v21 = vmul.f32 %v6357_v42, %v5330_v25  ;;  %v1596_v7 = vadd.f32 %v1540_v24, %v1412_v17  ;;  %v1600_v2 = vadd.f32 %v1544_v43, %v1416_v63 }
 0x238   : > { %v1660_v16 = vmul.f32 %v6357_v42, %v5332_v13  ;;  %v1668_v28 = vmul.f32 %v6357_v42, %v5340_v3  ;;  %v3044_v52 = vadd.f32 %v3043_v1, %v3042_v51  ;;  %v1746_v6 = vrot.slane %v5314_v8, 2 }
 0x239   : > { %v1758_v47 = vrot.slane %v5328_v4, 2  ;;  %v1770_v20 = vrot.slane %v1644_v15, 2  ;;  %v1782_v58 = vrot.slane %v1652_v21, 2  ;;  %v1892_v61 = vmul.f32 %v6426_v10, %v5306_v34  ;;  %v5415_v4 = vld [vmem:[#allocation2 + $0x1c8] sm:$0xff] }
 0x23a   : > { %v1794_v19 = vrot.slane %v1660_v16, 2  ;;  %v1806_v55 = vrot.slane %v1668_v28, 2  ;;  %v3046_v24 = vadd.f32 %v3045_v11, %v3044_v52  ;;  %v6432_v49 = vrot.slane %v4931_v32, 2 }
 0x23b   : > { %v6433_v63 = vrot.slane %v4935_v44, 2  ;;  %v6434_v1 = vrot.slane %v4939_v59, 2  ;;  %v6435_v15 = vrot.slane %v4943_v5, 2  ;;  %v6436_v11 = vrot.slane %v5212_v53, 2 }
 0x23c   : > { %v1748_v17 = vsel %vm1247_vm3, %v1746_v6, %v6432_v49  ;;  %v6437_v33 = vrot.slane %v5273_v29, 2  ;;  %v3048_v22 = vadd.f32 %v3047_v39, %v3046_v24  ;;  %v1896_v5 = vmul.f32 %v6426_v10, %v5320_v26 }
 0x23d   : > { %v1760_v42 = vsel %vm1247_vm3, %v1758_v47, %v6433_v63  ;;  %v1772_v8 = vsel %vm1247_vm3, %v1770_v20, %v6434_v1  ;;  %v1784_v36 = vsel %vm1247_vm3, %v1782_v58, %v6435_v15  ;;  %v1796_v32 = vsel %vm1247_vm3, %v1794_v19, %v6436_v11 }
 0x23e   : > { %v1808_v44 = vsel %vm1247_vm3, %v1806_v55, %v6437_v33  ;;  %v1848_v43 = vadd.f32 %v1748_v17, %v1580_v35  ;;  %v1852_v27 = vadd.f32 %v1760_v42, %v1584_v31  ;;  %v1856_v59 = vadd.f32 %v1772_v8, %v1588_v60 }
 0x23f   : > { %v1860_v30 = vadd.f32 %v1784_v36, %v1592_v0  ;;  %v1864_v62 = vadd.f32 %v1796_v32, %v1596_v7  ;;  %v1868_v18 = vadd.f32 %v1808_v44, %v1600_v2  ;;  %v1900_v51 = vmul.f32 %v6426_v10, %v5330_v25  ;;  %v5452_v32 = vld [vmem:[#allocation2 + $0x1e8] sm:$0x1] }
 0x240   : > { %v3050_v53 = vadd.f32 %v3049_v23, %v3048_v22  ;;  %v1904_v21 = vmul.f32 %v6426_v10, %v5332_v13  ;;  %v1908_v29 = vmul.f32 %v6426_v10, %v5340_v3  ;;  %v1912_v39 = vmul.f32 %v6426_v10, %v5415_v4  ;;  %v6438_v23 = vld [vmem:[#allocation7_spill] sm:$0xff] }
 0x241   : > { %v1916_v60 = vadd.f32 %v5318_v40, %v5296_v12  ;;  %v1920_v2 = vadd.f32 %v1892_v61, %v1848_v43  ;;  %v1924_v35 = vadd.f32 %v1896_v5, %v1852_v27  ;;  %v1928_v31 = vadd.f32 %v1900_v51, %v1856_v59 }
 0x242   : > { %v3051_v0 = vrot.slane %v3050_v53, 4  ;;  %v1932_v7 = vadd.f32 %v1904_v21, %v1860_v30  ;;  %v1936_v16 = vadd.f32 %v1908_v29, %v1864_v62  ;;  %v1940_v28 = vadd.f32 %v1912_v39, %v1868_v18 }
 0x243   : > { %v1960_v52 = vmul.f32 %v6438_v23, %v5293_v37  ;;  %v1964_v6 = vmul.f32 %v6438_v23, %v5306_v34  ;;  %v1968_v47 = vmul.f32 %v6438_v23, %v5320_v26  ;;  %v1972_v10 = vmul.f32 %v6438_v23, %v5330_v25 }
 0x244   : > { %v3052_v12 = vadd.f32 %v3051_v0, %v3050_v53  ;;  %v1976_v40 = vmul.f32 %v6438_v23, %v5332_v13  ;;  %v1980_v20 = vmul.f32 %v6438_v23, %v5340_v3  ;;  %v1984_v58 = vmul.f32 %v6438_v23, %v5415_v4 }
 0x245   : > { %v2016_v19 = vrot.slane %v1960_v52, 1  ;;  %v2020_v55 = vrot.slane %v1964_v6, 1  ;;  %v2024_v61 = vrot.slane %v1968_v47, 1  ;;  %v2028_v24 = vrot.slane %v1972_v10, 1 }
 0x246   : > { %v3053_v49 = vrot.slane %v3052_v12, 2  ;;  %v2032_v17 = vrot.slane %v1976_v40, 1  ;;  %v2036_v63 = vrot.slane %v1980_v20, 1  ;;  %v2040_v42 = vrot.slane %v1984_v58, 1 }
 0x247   : > { %v2072_v1 = vadd.f32 %v2016_v19, %v1916_v60  ;;  %v2076_v8 = vadd.f32 %v2020_v55, %v1920_v2  ;;  %v2080_v15 = vadd.f32 %v2024_v61, %v1924_v35  ;;  %v2084_v36 = vadd.f32 %v2028_v24, %v1928_v31 }
 0x248   : > { %v3054_v11 = vadd.f32 %v3053_v49, %v3052_v12  ;;  %v2088_v33 = vadd.f32 %v2032_v17, %v1932_v7  ;;  %v2092_v44 = vadd.f32 %v2036_v63, %v1936_v16  ;;  %v2096_v43 = vadd.f32 %v2040_v42, %v1940_v28  ;;  %v6439_v42 = vld [vmem:[#allocation13_spill] sm:$0xff] }
 0x249   : > { %v2116_v22 = vmul.f32 %v6421_v46, %v5293_v37  ;;  %v2124_v27 = vmul.f32 %v6421_v46, %v5306_v34  ;;  %v2132_v59 = vmul.f32 %v6421_v46, %v5320_v26  ;;  %v2140_v30 = vmul.f32 %v6421_v46, %v5330_v25 }
 0x24a   : > { %v3055_v62 = vrot.slane %v3054_v11, 1  ;;  %v2148_v18 = vmul.f32 %v6421_v46, %v5332_v13  ;;  %v2152_v5 = vmul.f32 %v6421_v46, %v5186_v41  ;;  %v2156_v51 = vmul.f32 %v6421_v46, %v5340_v3 }
 0x24b   : > { %v2160_v37 = vmul.f32 %v6421_v46, %v5265_v38  ;;  %v2164_v53 = vmul.f32 %v6421_v46, %v5415_v4  ;;  %v2168_v21 = vmul.f32 %v6421_v46, %v5452_v32  ;;  %v2230_v29 = vrot.slane %v2116_v22, 2 }
 0x24c   : > { %v3056_v39 = vadd.f32 %v3055_v62, %v3054_v11  ;;  %v2231_v60 = vrot.slane %v5287_v9, 2  ;;  %v2242_v2 = vrot.slane %v2124_v27, 2  ;;  %v2243_v35 = vrot.slane %v5291_v14, 2  ;;  %v6440_v27 = vld [vmem:[#allocation17_spill] sm:$0xff] }
 0x24d   : > { %v2254_v31 = vrot.slane %v2132_v59, 2  ;;  %v2255_v0 = vrot.slane %v5300_v50, 2  ;;  %v2266_v7 = vrot.slane %v2140_v30, 2  ;;  %v2267_v16 = vrot.slane %v5304_v54, 2  ;;  %v3390_v30 = vld [vmem:[%s3947_s18 + $0x28] ss:$0 sm:$0xff] }
 0x24e   : > { %v3078_v28 = vmul.f32 0.020408163, %v3056_v39  ;;  %v2232_v23 = vsel %vm1247_vm3, %v2230_v29, %v2231_v60  ;;  %v2244_v52 = vsel %vm1247_vm3, %v2242_v2, %v2243_v35  ;;  %v2278_v6 = vrot.slane %v2148_v18, 2 }
 0x24f   : > { %v2256_v46 = vsel %vm1247_vm3, %v2254_v31, %v2255_v0  ;;  %v2268_v47 = vsel %vm1247_vm3, %v2266_v7, %v2267_v16  ;;  %v2279_v9 = vrot.slane %v2152_v5, 2  ;;  %v2290_v10 = vrot.slane %v2156_v51, 2 }
 0x250   : > { %v3082_v12 = vadd.f32 1e-05, %v3078_v28  ;;  %v2291_v14 = vrot.slane %v2160_v37, 2  ;;  %v2302_v40 = vrot.slane %v2164_v53, 2  ;;  %v2303_v20 = vrot.slane %v2168_v21, 2 }
 0x251   : > { %v2280_v50 = vsel %vm1247_vm3, %v2278_v6, %v2279_v9  ;;  %v2340_v58 = vadd.f32 %v2232_v23, %v2072_v1  ;;  %v2344_v54 = vadd.f32 %v2244_v52, %v2076_v8  ;;  %v2348_v19 = vadd.f32 %v2256_v46, %v2080_v15 }
 0x252   : > { %3522 = vrsqrt.f32 %v3082_v12  ;;  %v2292_v55 = vsel %vm1247_vm3, %v2290_v10, %v2291_v14  ;;  %v2304_v61 = vsel %vm1247_vm3, %v2302_v40, %v2303_v20  ;;  %v2352_v24 = vadd.f32 %v2268_v47, %v2084_v36  ;;  %v3534_v10 = vld [vmem:[#allocation2 + $0xa8] sm:$0x1] }
 0x253   : > { %v2356_v49 = vadd.f32 %v2280_v50, %v2088_v33  ;;  %v2360_v17 = vadd.f32 %v2292_v55, %v2092_v44  ;;  %v2364_v63 = vadd.f32 %v2304_v61, %v2096_v43  ;;  %v2384_v11 = vmul.f32 %v6439_v42, %v5306_v34  ;;  %v3533_v33 = vld [vmem:[#allocation2] sm:$0xff]  ;;  %v1364_v55 = vld [vmem:[#allocation2 + $0x228] sm:$0x1] }
 0x254   : > { %v2388_v22 = vmul.f32 %v6439_v42, %v5320_v26  ;;  %v2392_v1 = vmul.f32 %v6439_v42, %v5330_v25  ;;  %v2396_v8 = vmul.f32 %v6439_v42, %v5332_v13  ;;  %v2400_v15 = vmul.f32 %v6439_v42, %v5340_v3 }
 0x255   : > { %v2404_v36 = vmul.f32 %v6439_v42, %v5415_v4  ;;  %v2408_v44 = vmul.f32 %v3533_v33, %v6439_v42  ;;  %v2412_v43 = vadd.f32 %v2384_v11, %v2340_v58  ;;  %v2456_v59 = vmul.f32 %v6440_v27, %v5306_v34  ;;  %v6441_v58 = vld [vmem:[#allocation25_spill] sm:$0xff] }
 0x256   : > { %v2416_v62 = vadd.f32 %v2388_v22, %v2344_v54  ;;  %v2420_v18 = vadd.f32 %v2392_v1, %v2348_v19  ;;  %v2424_v5 = vadd.f32 %v2396_v8, %v2352_v24  ;;  %v2428_v51 = vadd.f32 %v2400_v15, %v2356_v49  ;;  %v3535_v24 = vld [vmem:[#allocation2 + $0xe8] sm:$0x1] }
 0x257   : > { %v2432_v37 = vadd.f32 %v2404_v36, %v2360_v17  ;;  %v2436_v53 = vadd.f32 %v2408_v44, %v2364_v63  ;;  %v2460_v21 = vmul.f32 %v6440_v27, %v5320_v26  ;;  %v2464_v29 = vmul.f32 %v6440_v27, %v5330_v25  ;;  %v3536_v63 = vld [vmem:[#allocation2 + $0x128] sm:$0x1] }
 0x258   : > { %v2468_v39 = vmul.f32 %v6440_v27, %v5332_v13  ;;  %v2472_v60 = vmul.f32 %v6440_v27, %v5340_v3  ;;  %v2476_v2 = vmul.f32 %v6440_v27, %v5415_v4  ;;  %v2480_v35 = vmul.f32 %v3533_v33, %v6440_v27 }
 0x259   : > { %v2512_v31 = vrot.slane %v2456_v59, 1  ;;  %v2516_v0 = vrot.slane %v2460_v21, 1  ;;  %v2520_v7 = vrot.slane %v2464_v29, 1  ;;  %v2612_v16 = vmul.f32 %v3390_v30, %v5306_v34  ;;  %v6444_v59 = vld [vmem:[#allocation44_spill] sm:$0xff] }
 0x25a   : > { %v2524_v28 = vrot.slane %v2468_v39, 1  ;;  %v2528_v23 = vrot.slane %v2472_v60, 1  ;;  %v2532_v52 = vrot.slane %v2476_v2, 1  ;;  %v2536_v6 = vrot.slane %v2480_v35, 1 }
 0x25b   : > { %v5513_v46 = vadd.f32 %v2512_v31, %v2412_v43  ;;  %v5515_v47 = vadd.f32 %v2516_v0, %v2416_v62  ;;  %v5517_v9 = vadd.f32 %v2520_v7, %v2420_v18  ;;  %v2616_v12 = vmul.f32 %v3534_v10, %v3390_v30  ;;  %v6446_v18 = vld [vmem:[#allocation42_spill] sm:$0xff] }
 0x25c   : > { %v3523_v14 = vpop.eup %3522  ;;  %v5519_v40 = vadd.f32 %v2524_v28, %v2424_v5  ;;  %v5521_v20 = vadd.f32 %v2528_v23, %v2428_v51  ;;  %v5523_v50 = vadd.f32 %v2532_v52, %v2432_v37  ;;  %v5525_v34 = vadd.f32 %v2536_v6, %v2436_v53  ;;  %v6448_v51 = vld [vmem:[#allocation88_spill] sm:$0xff] }
 0x25d   : > { %v6442_v54 = vrot.slane %v6418_v56, %v6441_v58  ;;  %v2620_v61 = vmul.f32 %v3390_v30, %v5320_v26  ;;  %v2624_v49 = vmul.f32 %v3535_v24, %v3390_v30  ;;  %v2628_v17 = vmul.f32 %v3390_v30, %v5330_v25 }
 0x25e   : > { %v2632_v42 = vmul.f32 %v3536_v63, %v3390_v30  ;;  %v2636_v11 = vmul.f32 %v3390_v30, %v5332_v13  ;;  %v2640_v22 = vmul.f32 %v3390_v30, %v5186_v41  ;;  %v2644_v1 = vmul.f32 %v3390_v30, %v5340_v3  ;;  %v6443_v41 = vld [vmem:[#allocation28_spill] sm:$0xff] }
 0x25f   : > { %v3112_v19 = vmul.f32 %v3523_v14, %v6442_v54  ;;  %v2648_v56 = vmul.f32 %v3390_v30, %v5265_v38  ;;  %v2652_v15 = vmul.f32 %v3390_v30, %v5415_v4  ;;  %v2656_v26 = vmul.f32 %v3390_v30, %v5452_v32  ;;  %v6445_v38 = vld [vmem:[#allocation41_spill] sm:$0xff] }
 0x260   : > { %v2660_v36 = vmul.f32 %v3533_v33, %v3390_v30  ;;  %v2664_v44 = vmul.f32 %v3390_v30, %v1364_v55  ;;  %v2726_v43 = vrot.slane %v2612_v16, 2  ;;  %v2727_v25 = vrot.slane %v2616_v12, 2  ;;  %v6447_v33 = vld [vmem:[#allocation43_spill] sm:$0xff] }
 0x261   : > { %v3125_v8 = vrot.slane %v3112_v19, %v6410_v45  ;;  %v2738_v60 = vrot.slane %v2620_v61, 2  ;;  %v2739_v2 = vrot.slane %v2624_v49, 2  ;;  %v2750_v35 = vrot.slane %v2628_v17, 2 }
 0x262   : > { %v2728_v5 = vsel %vm1247_vm3, %v2726_v43, %v2727_v25  ;;  %v2751_v31 = vrot.slane %v2632_v42, 2  ;;  %v2762_v0 = vrot.slane %v2636_v11, 2  ;;  %v2763_v7 = vrot.slane %v2640_v22, 2 }
 0x263   : > { %v3132_v27 = vmul.f32 %v3125_v8, %v5355_v48  ;;  %v3136_v13 = vmul.f32 %v3125_v8, %v5358_v57  ;;  %v3140_v3 = vmul.f32 %v3125_v8, %v6443_v41  ;;  %v3144_v62 = vmul.f32 %v3125_v8, %v6444_v59 }
 0x264   : > { %v3148_v4 = vmul.f32 %v3125_v8, %v6445_v38  ;;  %v3152_v32 = vmul.f32 %v3125_v8, %v6446_v18  ;;  %v3156_v30 = vmul.f32 %v3125_v8, %v6447_v33  ;;  %v2774_v16 = vrot.slane %v2644_v1, 2  ;;  %v6451_v38 = vld [vmem:[#allocation15_spill] sm:$0xff]  ;;  %v6452_v18 = vld [vmem:[#allocation18_spill] sm:$0xff]  ;;  %v6453_v33 = vld [vmem:[#allocation20_spill] sm:$0xff] }
 0x265   : > { %v3182_v48 = vadd.f32 %v6448_v51, %v3132_v27  ;;  %v3186_v57 = vadd.f32 %v6448_v51, %v3136_v13  ;;  %v3190_v37 = vadd.f32 %v6448_v51, %v3140_v3  ;;  %v3194_v53 = vadd.f32 %v6448_v51, %v3144_v62 }
 0x266   : > { %v3198_v21 = vadd.f32 %v6448_v51, %v3148_v4  ;;  %v3202_v29 = vadd.f32 %v6448_v51, %v3152_v32  ;;  %v3206_v39 = vadd.f32 %v6448_v51, %v3156_v30  ;;  %v2775_v28 = vrot.slane %v2648_v56, 2 }
 0x267   : > { %3210 = vst [vmem:[%s5244_s15 + $0x10] sm:$0x7f] %v3182_v48  ;;  %3214 = vst [vmem:[%s5244_s15 + $0x30] sm:$0x7f] %v3186_v57  ;;  %v2786_v23 = vrot.slane %v2652_v15, 2  ;;  %v2740_v52 = vsel %vm1247_vm3, %v2738_v60, %v2739_v2  ;;  %v2752_v6 = vsel %vm1247_vm3, %v2750_v35, %v2751_v31  ;;  %v2787_v10 = vrot.slane %v2656_v26, 2 }
 0x268   : > { %3218 = vst [vmem:[%s5244_s15 + $0x50] sm:$0x7f] %v3190_v37  ;;  %3222 = vst [vmem:[%s5244_s15 + $0x70] sm:$0x7f] %v3194_v53  ;;  %v2798_v12 = vrot.slane %v2660_v36, 2  ;;  %v2764_v14 = vsel %vm1247_vm3, %v2762_v0, %v2763_v7  ;;  %v2776_v54 = vsel %vm1247_vm3, %v2774_v16, %v2775_v28  ;;  %v2799_v19 = vrot.slane %v2664_v44, 2 }
 0x269   : > { %3226 = vst [vmem:[%s5244_s15 + $0x90] sm:$0x7f] %v3198_v21  ;;  %3230 = vst [vmem:[%s5244_s15 + $0xb0] sm:$0x7f] %v3202_v29  ;;  %v2836_v55 = vadd.f32 %v2728_v5, %v5513_v46  ;;  %v2788_v61 = vsel %vm1247_vm3, %v2786_v23, %v2787_v10  ;;  %v2840_v24 = vadd.f32 %v2740_v52, %v5515_v47  ;;  %v6449_v47 = vld [vmem:[#allocation27_spill] sm:$0xff]  ;;  %v6454_v5 = vld [vmem:[#allocation21_spill] sm:$0xff] }
 0x26a   : > { %3234 = vst [vmem:[%s5244_s15 + $0xd0] sm:$0x7f] %v3206_v39  ;;  %v2844_v49 = vadd.f32 %v2752_v6, %v5517_v9  ;;  %v2848_v17 = vadd.f32 %v2764_v14, %v5519_v40  ;;  %v2800_v63 = vsel %vm1247_vm3, %v2798_v12, %v2799_v19  ;;  %v2852_v42 = vadd.f32 %v2776_v54, %v5521_v20  ;;  %v6455_v48 = vld [vmem:[#allocation22_spill] sm:$0xff]  ;;  %v6456_v37 = vld [vmem:[#allocation24_spill] sm:$0xff]  ;;  %v6457_v21 = vld [vmem:[#allocation83_spill] sm:$0xff] }
 0x26b   : > { %v2856_v11 = vadd.f32 %v2788_v61, %v5523_v50  ;;  %v2860_v22 = vadd.f32 %v2800_v63, %v5525_v34  ;;  %v2882_v1 = vsel %vm1273_vm9, %v2836_v55, 0.0  ;;  %v2883_v46 = vsel %vm1273_vm9, %v2840_v24, 0.0 }
 0x26c   : > { %v2885_v8 = vsel %vm1273_vm9, %v2844_v49, 0.0  ;;  %v2884_v56 = vadd.f32 %v2883_v46, %v2882_v1  ;;  %v6450_v9 = vrot.slane %v6449_v47, 4  ;;  %v2887_v36 = vsel %vm1273_vm9, %v2848_v17, 0.0 }
 0x26d   : > { %v2889_v50 = vsel %vm1273_vm9, %v2852_v42, 0.0  ;;  %v2891_v25 = vsel %vm1273_vm9, %v2856_v11, 0.0  ;;  %v2893_v41 = vsel %vm1273_vm9, %v2860_v22, 0.0 }
 0x26e   : > { %v765_v15 = vadd.f32 %v6450_v9, %v6449_v47  ;;  %v2886_v40 = vadd.f32 %v2885_v8, %v2884_v56 }
 0x270   : > { %v766_v26 = vrot.slane %v765_v15, 2  ;;  %v2888_v20 = vadd.f32 %v2887_v36, %v2886_v40 }
 0x272   : > { %v767_v44 = vadd.f32 %v766_v26, %v765_v15  ;;  %v2890_v34 = vadd.f32 %v2889_v50, %v2888_v20 }
 0x274   : > { %v768_v43 = vrot.slane %v767_v44, 1  ;;  %v2892_v27 = vadd.f32 %v2891_v25, %v2890_v34 }
 0x276   : > { %v769_v13 = vadd.f32 %v768_v43, %v767_v44  ;;  %v2894_v3 = vadd.f32 %v2893_v41, %v2892_v27 }
 0x278   : > { %v774_v59 = vmul.f32 0.020408163, %v769_v13  ;;  %v2895_v62 = vrot.slane %v2894_v3, 4 }
 0x27a   : > { %v5585_v4 = vsub.f32 %v6451_v38, %v774_v59  ;;  %v5588_v32 = vsub.f32 %v6452_v18, %v774_v59  ;;  %v5591_v30 = vsub.f32 %v6453_v33, %v774_v59  ;;  %v5594_v51 = vsub.f32 %v6454_v5, %v774_v59 }
 0x27b   : > { %v5597_v57 = vsub.f32 %v6455_v48, %v774_v59  ;;  %v5600_v53 = vsub.f32 %v6456_v37, %v774_v59  ;;  %v5603_v29 = vsub.f32 %v6457_v21, %v774_v59  ;;  %v2896_v39 = vadd.f32 %v2895_v62, %v2894_v3 }
 0x27c   : > { %v806_v60 = vmul.f32 %v5585_v4, %v5585_v4  ;;  %v810_v2 = vmul.f32 %v5588_v32, %v5588_v32  ;;  %v814_v35 = vmul.f32 %v5591_v30, %v5591_v30  ;;  %v818_v0 = vmul.f32 %v5594_v51, %v5594_v51 }
 0x27d   : > { %v2897_v31 = vrot.slane %v2896_v39, 2  ;;  %v822_v52 = vmul.f32 %v5597_v57, %v5597_v57  ;;  %v826_v14 = vmul.f32 %v5600_v53, %v5600_v53  ;;  %v830_v19 = vmul.f32 %v5603_v29, %v5603_v29 }
 0x27e   : > { %v870_v7 = vsel %vm749_vm1, %v806_v60, 0.0  ;;  %v871_v16 = vsel %vm749_vm1, %v810_v2, 0.0  ;;  %v873_v6 = vsel %vm749_vm1, %v814_v35, 0.0  ;;  %v875_v54 = vsel %vm749_vm1, %v818_v0, 0.0  ;;  %v6458_v60 = vld [vmem:[#allocation23_spill] sm:$0xff] }
 0x27f   : > { %v872_v28 = vadd.f32 %v871_v16, %v870_v7  ;;  %v2898_v23 = vadd.f32 %v2897_v31, %v2896_v39  ;;  %v877_v1 = vsel %vm749_vm1, %v822_v52, 0.0  ;;  %v879_v56 = vsel %vm749_vm1, %v826_v14, 0.0  ;;  %v3537_v39 = vld [vmem:[%s3947_s18 + $0x18] sm:$0xff] }
 0x280   : > { %v881_v9 = vsel %vm761_vm4, %v830_v19, 0.0  ;;  %v5662_v2 = vrot.slane %v3537_v39, %v6458_v60  ;;  %v5665_v31 = vrot.slane %v3537_v39, %v6441_v58  ;;  %v1298_v16 = vld [vmem:[#allocation2 + $0x18] sm:$0xff] }
 0x281   : > { %v874_v10 = vadd.f32 %v873_v6, %v872_v28  ;;  %v2899_v12 = vrot.slane %v2898_v23, 1  ;;  %v5669_v6 = vrot.slane %v3537_v39, %v6410_v45 }
 0x282   : > { %v1622_v19 = vmul.f32 %v5665_v31, %v1298_v16 }
 0x283   : > { %v876_v61 = vadd.f32 %v875_v54, %v874_v10  ;;  %v2900_v63 = vadd.f32 %v2899_v12, %v2898_v23  ;;  %v1302_v23 = vld [vmem:[#allocation2 + $0x38] sm:$0x1]  ;;  %v1466_v12 = vmul.f32 %v5662_v2, %v1298_v16 }
 0x284   : > { %v1310_v54 = vld [vmem:[#allocation2 + $0x78] sm:$0x1]  ;;  %v1626_v58 = vmul.f32 %v5665_v31, %v1302_v23 }
 0x285   : > { %v878_v46 = vadd.f32 %v877_v1, %v876_v61  ;;  %v2941_v8 = vmul.f32 0.020408163, %v2900_v63  ;;  %v1318_v63 = vld [vmem:[#allocation2 + $0xb8] sm:$0x1] }
 0x286   : > { %v5674_v1 = vld [vmem:[#allocation2 + $0xf8] sm:$0x1] }
 0x287   : > { %v880_v47 = vadd.f32 %v879_v56, %v878_v46  ;;  %v5626_v15 = vsub.f32 %v2836_v55, %v2941_v8  ;;  %v5628_v40 = vsub.f32 %v2840_v24, %v2941_v8  ;;  %v5630_v26 = vsub.f32 %v2844_v49, %v2941_v8  ;;  %v5676_v56 = vld [vmem:[#allocation2 + $0x178] sm:$0x1] }
 0x288   : > { %v5632_v36 = vsub.f32 %v2848_v17, %v2941_v8  ;;  %v5634_v20 = vsub.f32 %v2852_v42, %v2941_v8  ;;  %v5636_v44 = vsub.f32 %v2856_v11, %v2941_v8  ;;  %v5638_v50 = vsub.f32 %v2860_v22, %v2941_v8  ;;  %v1334_v8 = vld [vmem:[#allocation2 + $0x138] sm:$0x1] }
 0x289   : > { %v882_v34 = vadd.f32 %v881_v9, %v880_v47  ;;  %v2973_v43 = vmul.f32 %v5626_v15, %v5626_v15  ;;  %v2977_v55 = vmul.f32 %v5628_v40, %v5628_v40  ;;  %v2981_v24 = vmul.f32 %v5630_v26, %v5630_v26 }
 0x28a   : > { %v2985_v17 = vmul.f32 %v5632_v36, %v5632_v36  ;;  %v2989_v25 = vmul.f32 %v5634_v20, %v5634_v20  ;;  %v2993_v3 = vmul.f32 %v5636_v44, %v5636_v44  ;;  %v2997_v18 = vmul.f32 %v5638_v50, %v5638_v50 }
 0x28b   : > { %v883_v49 = vrot.slane %v882_v34, 4  ;;  %v3019_v42 = vsel %vm1273_vm9, %v2973_v43, 0.0  ;;  %v3020_v11 = vsel %vm1273_vm9, %v2977_v55, 0.0  ;;  %v3022_v27 = vsel %vm1273_vm9, %v2981_v24, 0.0  ;;  %v6459_v43 = vld [vmem:[#allocation33_spill] sm:$0xff] }
 0x28c   : > { %v3021_v22 = vadd.f32 %v3020_v11, %v3019_v42  ;;  %v3024_v59 = vsel %vm1273_vm9, %v2985_v17, 0.0  ;;  %v3026_v33 = vsel %vm1273_vm9, %v2989_v25, 0.0  ;;  %v3028_v37 = vsel %vm1273_vm9, %v2993_v3, 0.0  ;;  %v5686_v24 = vld [vmem:[%s4502_s20] sm:$0xf] }
 0x28d   : > { %v884_v13 = vadd.f32 %v883_v49, %v882_v34  ;;  %v3030_v0 = vsel %vm1273_vm9, %v2997_v18, 0.0  ;;  %v1394_v47 = vmul.f32 %v5669_v6, %v1298_v16  ;;  %v1522_v9 = vrot.slane %v1466_v12, 1  ;;  %v1350_v17 = vld [vmem:[#allocation2 + $0x1b8] sm:$0x1] }
 0x28e   : > { %v3023_v41 = vadd.f32 %v3022_v27, %v3021_v22  ;;  %v5680_v34 = vmul.f32 %v5665_v31, %v1310_v54  ;;  %v5683_v55 = vrot.slane %v3537_v39, %v6459_v43  ;;  %v1740_v42 = vrot.slane %v1622_v19, 2  ;;  %v5691_v22 = vld [vmem:[%s4613_s11] sm:$0xf]  ;;  %v6465_v19 = vld [vmem:[#allocation19_spill] sm:$0xff] }
 0x28f   : > { %v885_v62 = vrot.slane %v884_v13, 2  ;;  %v1741_v11 = vrot.slane %v1626_v58, 2  ;;  %6460 = vst [vmem:[#allocation47_spill] sm:$0xff] %v5691_v22  ;;  %v5695_v25 = vrot.slane %v5691_v22, %v6458_v60  ;;  %v5700_v3 = vmul.f32 %v5665_v31, %v1318_v63 }
 0x290   : > { %v3025_v38 = vadd.f32 %v3024_v59, %v3023_v41  ;;  %v3541_v59 = vld [vmem:[%s4120_s14] sm:$0xf]  ;;  %v5711_v18 = vmul.f32 %v5665_v31, %v1334_v8 }
 0x291   : > { %v886_v5 = vadd.f32 %v885_v62, %v884_v13  ;;  %v3540_v13 = vld [vmem:[%s4114_s24] sm:$0xf]  ;;  %v5704_v62 = vrot.slane %v3541_v59, %v6459_v43 }
 0x292   : > { %v3027_v48 = vadd.f32 %v3026_v33, %v3025_v38  ;;  %v918_v41 = vrot.slane %v3540_v13, %v6459_v43  ;;  %v5708_v38 = vmul.f32 %v5665_v31, %v5674_v1  ;;  %v5715_v33 = vmul.f32 %v5665_v31, %v5676_v56 }
 0x293   : > { %v887_v21 = vrot.slane %v886_v5, 1 }
 0x294   : > { %v3029_v35 = vadd.f32 %v3028_v37, %v3027_v48  ;;  %v1358_v48 = vld [vmem:[#allocation2 + $0x1f8] sm:$0x1]  ;;  %v1578_v37 = vadd.f32 %v1522_v9, %v1394_v47 }
 0x295   : > { %v888_v7 = vadd.f32 %v887_v21, %v886_v5  ;;  %v5718_v21 = vmul.f32 %v5665_v31, %v1350_v17  ;;  %v1366_v9 = vld [vmem:[#allocation2 + $0x238] sm:$0x1] }
 0x296   : > { %v3031_v28 = vadd.f32 %v3030_v0, %v3029_v35  ;;  %v1742_v35 = vsel %vm1247_vm3, %v1740_v42, %v1741_v11  ;;  %v6461_v0 = vld [vmem:[#allocation11_spill] sm:$0xff]  ;;  %v6467_v42 = vld [vmem:[#allocation14_spill] sm:$0xff] }
 0x297   : > { %v892_v52 = vmul.f32 0.020408163, %v888_v7  ;;  %v5723_v7 = vmul.f32 %v6461_v0, %v1310_v54  ;;  %v5726_v16 = vmul.f32 %v6461_v0, %v1318_v63  ;;  %v5734_v12 = vmul.f32 %v6461_v0, %v1334_v8 }
 0x298   : > { %v3032_v10 = vrot.slane %v3031_v28, 4  ;;  %v5743_v58 = vmul.f32 %v6461_v0, %v1350_v17  ;;  %v5753_v11 = vadd.f32 %v1742_v35, %v1578_v37 }
 0x299   : > { %v896_v14 = vadd.f32 1e-05, %v892_v52  ;;  %v1362_v52 = vld [vmem:[#allocation2 + $0x218] sm:$0xff] }
 0x29a   : > { %v3033_v61 = vadd.f32 %v3032_v10, %v3031_v28  ;;  %v5730_v28 = vmul.f32 %v6461_v0, %v5674_v1  ;;  %6463 = vst [vmem:[#allocation48_spill] sm:$0xff] %v5743_v58  ;;  %v5759_v54 = vmul.f32 %v6465_v19, %v1362_v52  ;;  %v5766_v13 = vmul.f32 %v6467_v42, %v1362_v52 }
 0x29b   : > { %3524 = vrsqrt.f32 %v896_v14  ;;  %v5738_v14 = vmul.f32 %v6461_v0, %v5676_v56 }
 0x29c   : > { %v3034_v46 = vrot.slane %v3033_v61, 2  ;;  %6466 = vst [vmem:[#allocation64_spill] sm:$0xff] %v5759_v54  ;;  %6468 = vst [vmem:[#allocation58_spill] sm:$0xff] %v5766_v13 }
 0x29d   : > { %6462 = vst [vmem:[#allocation49_spill] sm:$0xff] %v5738_v14 }
 0x29e   : > { %v3035_v27 = vadd.f32 %v3034_v46, %v3033_v61  ;;  %v5746_v61 = vmul.f32 %v6461_v0, %v1358_v48  ;;  %v5749_v46 = vld [vmem:[%s3947_s18 + $0x38] ss:$0 sm:$0xff] }
 0x29f   : > { %v5769_v59 = vmul.f32 %v5749_v46, %v1318_v63  ;;  %v5782_v35 = vmul.f32 %v5749_v46, %v5676_v56  ;;  %v5785_v37 = vmul.f32 %v5749_v46, %v1350_v17  ;;  %v5788_v63 = vmul.f32 %v5749_v46, %v1358_v48 }
 0x2a0   : > { %v3036_v5 = vrot.slane %v3035_v27, 1  ;;  %6464 = vst [vmem:[#allocation50_spill] sm:$0xff] %v5746_v61  ;;  %v2662_v17 = vmul.f32 %v5749_v46, %v1362_v52 }
 0x2a2   : > { %v3037_v23 = vadd.f32 %v3036_v5, %v3035_v27 }
 0x2a4   : > { %v3077_v47 = vmul.f32 0.020408163, %v3037_v23 }
 0x2a5   : > { %v3525_v27 = vpop.eup %3524 }
 0x2a6   : > { %v3081_v10 = vadd.f32 1e-05, %v3077_v47  ;;  %v926_v39 = vmul.f32 %v3525_v27, %v918_v41  ;;  %v5774_v41 = vmul.f32 %v5749_v46, %v5674_v1  ;;  %v5777_v47 = vmul.f32 %v5749_v46, %v1334_v8 }
 0x2a8   : > { %3526 = vrsqrt.f32 %v3081_v10  ;;  %v942_v5 = vrot.slane %v926_v39, %v6410_v45 }
 0x2aa   : > { %v946_v39 = vmul.f32 %v942_v5, %v5585_v4  ;;  %v950_v1 = vmul.f32 %v942_v5, %v5588_v32  ;;  %v954_v10 = vmul.f32 %v942_v5, %v5591_v30  ;;  %v958_v8 = vmul.f32 %v942_v5, %v5594_v51 }
 0x2ab   : > { %v962_v27 = vmul.f32 %v942_v5, %v5597_v57  ;;  %v966_v56 = vmul.f32 %v942_v5, %v5600_v53  ;;  %v970_v23 = vmul.f32 %v942_v5, %v5603_v29  ;;  %v2666_v53 = vmul.f32 %v5749_v46, %v1366_v9 }
 0x2ac   : > { %v996_v48 = vadd.f32 %v5704_v62, %v946_v39  ;;  %v1000_v49 = vadd.f32 %v5704_v62, %v950_v1  ;;  %v1004_v4 = vadd.f32 %v5704_v62, %v954_v10  ;;  %v1008_v32 = vadd.f32 %v5704_v62, %v958_v8 }
 0x2ad   : > { %v1012_v30 = vadd.f32 %v5704_v62, %v962_v27  ;;  %v1016_v51 = vadd.f32 %v5704_v62, %v966_v56  ;;  %v1020_v57 = vadd.f32 %v5704_v62, %v970_v23  ;;  %v2804_v1 = vrot.slane %v2662_v17, 2 }
 0x2ae   : > { %v1024_v22 = vmax.f32 %v996_v48, 0.0  ;;  %v1028_v29 = vmax.f32 %v1000_v49, 0.0  ;;  %v1032_v5 = vmax.f32 %v1004_v4, 0.0  ;;  %v1036_v52 = vmax.f32 %v1008_v32, 0.0 }
 0x2af   : > { %v1040_v43 = vmax.f32 %v1012_v30, 0.0  ;;  %v1044_v39 = vmax.f32 %v1016_v51, 0.0  ;;  %v1048_v54 = vmax.f32 %v1020_v57, 0.0  ;;  %v6469_v48 = vrot.slane %v5686_v24, %v6458_v60 }
 0x2b0   : > { %v1128_v19 = vrot.slane %v1024_v22, 7  ;;  %v1153_v10 = vrot.slane %v1024_v22, 6  ;;  %v1154_v13 = vrot.slane %v1028_v29, 6  ;;  %v1179_v8 = vrot.slane %v1028_v29, 5 }
 0x2b1   : > { %v1180_v61 = vrot.slane %v1032_v5, 5  ;;  %v1205_v27 = vrot.slane %v1032_v5, 4  ;;  %v1206_v58 = vrot.slane %v1036_v52, 4  ;;  %v1231_v56 = vrot.slane %v1036_v52, 3 }
 0x2b2   : > { %v3527_v14 = vpop.eup %3526  ;;  %1138 = vst.msk [vmem:[#allocation2 + $0x58] sm:$0xfe] %vm1137_vm10, %v1128_v19  ;;  %v1155_v62 = vsel %vm1143_vm5, %v1153_v10, %v1154_v13  ;;  %v1232_v49 = vrot.slane %v1040_v43, 3  ;;  %v1257_v9 = vrot.slane %v1040_v43, 2  ;;  %v1258_v23 = vrot.slane %v1044_v39, 2 }
 0x2b3   : > { %v3111_v17 = vmul.f32 %v3527_v14, %v6469_v48  ;;  %1164 = vst.msk [vmem:[#allocation2 + $0x98] sm:$0xfe] %vm1137_vm10, %v1155_v62  ;;  %v1181_v22 = vsel %vm1169_vm6, %v1179_v8, %v1180_v61  ;;  %v1207_v4 = vsel %vm1195_vm7, %v1205_v27, %v1206_v58  ;;  %v1283_v32 = vrot.slane %v1044_v39, 1 }
 0x2b4   : > { %1190 = vst.msk [vmem:[#allocation2 + $0xd8] sm:$0xfe] %vm1137_vm10, %v1181_v22  ;;  %1216 = vst.msk [vmem:[#allocation2 + $0x118] sm:$0xfe] %vm1137_vm10, %v1207_v4  ;;  %v1233_v19 = vsel %vm1221_vm8, %v1231_v56, %v1232_v49  ;;  %v1259_v43 = vsel %vm1247_vm3, %v1257_v9, %v1258_v23  ;;  %v1284_v13 = vrot.slane %v1048_v54, 1  ;;  %v2805_v30 = vrot.slane %v2666_v53, 2 }
 0x2b5   : > { %v3121_v60 = vrot.slane %v3111_v17, %v6410_v45  ;;  %1242 = vst.msk [vmem:[#allocation2 + $0x158] sm:$0xfe] %vm1137_vm10, %v1233_v19  ;;  %1268 = vst.msk [vmem:[#allocation2 + $0x198] sm:$0xfe] %vm1137_vm10, %v1259_v43  ;;  %v2733_v14 = vrot.slane %v5769_v59, 2  ;;  %v2745_v58 = vrot.slane %v5774_v41, 2 }
 0x2b6   : > { %v2757_v61 = vrot.slane %v5777_v47, 2  ;;  %v1285_v51 = vsel %vm1273_vm9, %v1283_v32, %v1284_v13  ;;  %v2769_v57 = vrot.slane %v5782_v35, 2  ;;  %v6492_v59 = vrot.slane %v5788_v63, 2 }
 0x2b7   : > { %v3131_v53 = vmul.f32 %v3121_v60, %v5626_v15  ;;  %v3135_v5 = vmul.f32 %v3121_v60, %v5628_v40  ;;  %v3139_v52 = vmul.f32 %v3121_v60, %v5630_v26  ;;  %v3143_v39 = vmul.f32 %v3121_v60, %v5632_v36  ;;  %1294 = vst.msk [vmem:[#allocation2 + $0x1d8] sm:$0xfe] %vm1137_vm10, %v1285_v51 }
 0x2b8   : > { %v3147_v10 = vmul.f32 %v3121_v60, %v5634_v20  ;;  %v3151_v8 = vmul.f32 %v3121_v60, %v5636_v44  ;;  %v3155_v27 = vmul.f32 %v3121_v60, %v5638_v50  ;;  %v5837_v15 = vsel %vm1247_vm3, %v2804_v1, %v2805_v30 }
 0x2b9   : > { %v3181_v40 = vadd.f32 %v5695_v25, %v3131_v53  ;;  %v3185_v26 = vadd.f32 %v5695_v25, %v3135_v5  ;;  %v3189_v36 = vadd.f32 %v5695_v25, %v3139_v52  ;;  %v3193_v56 = vadd.f32 %v5695_v25, %v3143_v39  ;;  %v5843_v62 = vld [vmem:[#allocation2 + $0x58] sm:$0xff] }
 0x2ba   : > { %v3197_v20 = vadd.f32 %v5695_v25, %v3147_v10  ;;  %v3201_v44 = vadd.f32 %v5695_v25, %v3151_v8  ;;  %v3205_v50 = vadd.f32 %v5695_v25, %v3155_v27  ;;  %v5848_v1 = vld [vmem:[#allocation2 + $0x98] sm:$0xff]  ;;  %v1398_v49 = vmul.f32 %v5669_v6, %v5843_v62 }
 0x2bb   : > { %3209 = vst [vmem:[%s5244_s15 + $0x8] sm:$0x7f] %v3181_v40  ;;  %3213 = vst [vmem:[%s5244_s15 + $0x28] sm:$0x7f] %v3185_v26  ;;  %v5856_v9 = vld [vmem:[#allocation2 + $0xd8] sm:$0xff]  ;;  %v1402_v48 = vmul.f32 %v5669_v6, %v5848_v1  ;;  %v1470_v17 = vmul.f32 %v5662_v2, %v5843_v62  ;;  %v1474_v25 = vmul.f32 %v5662_v2, %v5848_v1 }
 0x2bc   : > { %3217 = vst [vmem:[%s5244_s15 + $0x48] sm:$0x7f] %v3189_v36  ;;  %3221 = vst [vmem:[%s5244_s15 + $0x68] sm:$0x7f] %v3193_v56  ;;  %v5858_v23 = vld [vmem:[#allocation2 + $0x118] sm:$0xff]  ;;  %v1630_v22 = vmul.f32 %v5665_v31, %v5843_v62  ;;  %v1406_v19 = vmul.f32 %v5669_v6, %v5856_v9  ;;  %v1478_v13 = vmul.f32 %v5662_v2, %v5856_v9 }
 0x2bd   : > { %3225 = vst [vmem:[%s5244_s15 + $0x88] sm:$0x7f] %v3197_v20  ;;  %3229 = vst [vmem:[%s5244_s15 + $0xa8] sm:$0x7f] %v3201_v44  ;;  %v5871_v4 = vld [vmem:[#allocation2 + $0x158] sm:$0xff]  ;;  %v1410_v43 = vmul.f32 %v5669_v6, %v5858_v23  ;;  %v1482_v30 = vmul.f32 %v5662_v2, %v5858_v23  ;;  %v1526_v52 = vrot.slane %v1470_v17, 1  ;;  %v1638_v26 = vmul.f32 %v5665_v31, %v5848_v1 }
 0x2be   : > { %3233 = vst [vmem:[%s5244_s15 + $0xc8] sm:$0x7f] %v3205_v50  ;;  %v5873_v32 = vld [vmem:[#allocation2 + $0x198] sm:$0xff]  ;;  %v1414_v60 = vmul.f32 %v5669_v6, %v5871_v4  ;;  %v1486_v53 = vmul.f32 %v5662_v2, %v5871_v4  ;;  %v1530_v39 = vrot.slane %v1474_v25, 1  ;;  %v1534_v10 = vrot.slane %v1478_v13, 1 }
 0x2bf   : > { %v1418_v51 = vmul.f32 %v5669_v6, %v5873_v32  ;;  %v1490_v5 = vmul.f32 %v5662_v2, %v5873_v32  ;;  %v1538_v8 = vrot.slane %v1482_v30, 1  ;;  %v1646_v36 = vmul.f32 %v5665_v31, %v5856_v9 }
 0x2c0   : > { %v1542_v27 = vrot.slane %v1486_v53, 1  ;;  %v1582_v56 = vadd.f32 %v1526_v52, %v1398_v49  ;;  %v1586_v6 = vadd.f32 %v1530_v39, %v1402_v48  ;;  %v1590_v20 = vadd.f32 %v1534_v10, %v1406_v19  ;;  %v5914_v39 = vld [vmem:[#allocation2 + $0x1d8] sm:$0xff] }
 0x2c1   : > { %v1546_v40 = vrot.slane %v1490_v5, 1  ;;  %v1594_v44 = vadd.f32 %v1538_v8, %v1410_v43  ;;  %v1654_v2 = vmul.f32 %v5665_v31, %v5858_v23  ;;  %v1662_v17 = vmul.f32 %v5665_v31, %v5871_v4 }
 0x2c2   : > { %v1598_v50 = vadd.f32 %v1542_v27, %v1414_v60  ;;  %v1670_v25 = vmul.f32 %v5665_v31, %v5873_v32  ;;  %v1752_v13 = vrot.slane %v1630_v22, 2  ;;  %v1764_v30 = vrot.slane %v1638_v26, 2 }
 0x2c3   : > { %v1602_v54 = vadd.f32 %v1546_v40, %v1418_v51  ;;  %v1776_v53 = vrot.slane %v1646_v36, 2  ;;  %v1788_v5 = vrot.slane %v1654_v2, 2  ;;  %v1800_v29 = vrot.slane %v1662_v17, 2 }
 0x2c4   : > { %v1890_v49 = vmul.f32 %v5683_v55, %v5843_v62  ;;  %v1894_v48 = vmul.f32 %v5683_v55, %v5848_v1  ;;  %v6470_v19 = vrot.slane %v5680_v34, 2  ;;  %v6471_v60 = vrot.slane %v5700_v3, 2 }
 0x2c5   : > { %v6472_v31 = vrot.slane %v5708_v38, 2  ;;  %v1812_v52 = vrot.slane %v1670_v25, 2  ;;  %v6473_v10 = vrot.slane %v5711_v18, 2  ;;  %v6474_v27 = vrot.slane %v5715_v33, 2 }
 0x2c6   : > { %v1754_v43 = vsel %vm1247_vm3, %v1752_v13, %v6470_v19  ;;  %v1766_v51 = vsel %vm1247_vm3, %v1764_v30, %v6471_v60  ;;  %v6475_v3 = vrot.slane %v5718_v21, 2  ;;  %v1898_v13 = vmul.f32 %v5683_v55, %v5856_v9 }
 0x2c7   : > { %v1778_v22 = vsel %vm1247_vm3, %v1776_v53, %v6472_v31  ;;  %v1790_v8 = vsel %vm1247_vm3, %v1788_v5, %v6473_v10  ;;  %v1802_v34 = vsel %vm1247_vm3, %v1800_v29, %v6474_v27  ;;  %v1850_v40 = vadd.f32 %v1754_v43, %v1582_v56 }
 0x2c8   : > { %v1854_v26 = vadd.f32 %v1766_v51, %v1586_v6  ;;  %v1814_v36 = vsel %vm1247_vm3, %v1812_v52, %v6475_v3  ;;  %v1858_v38 = vadd.f32 %v1778_v22, %v1590_v20  ;;  %v1862_v2 = vadd.f32 %v1790_v8, %v1594_v44 }
 0x2c9   : > { %v1866_v17 = vadd.f32 %v1802_v34, %v1598_v50  ;;  %v1870_v25 = vadd.f32 %v1814_v36, %v1602_v54  ;;  %v1902_v18 = vmul.f32 %v5683_v55, %v5858_v23  ;;  %v1906_v33 = vmul.f32 %v5683_v55, %v5871_v4  ;;  %v6476_v50 = vld [vmem:[#allocation8_spill] sm:$0xff] }
 0x2ca   : > { %v1910_v29 = vmul.f32 %v5683_v55, %v5873_v32  ;;  %v1914_v21 = vmul.f32 %v5683_v55, %v5914_v39  ;;  %v1918_v56 = vadd.f32 %v1890_v49, %v5753_v11  ;;  %v1922_v6 = vadd.f32 %v1894_v48, %v1850_v40 }
 0x2cb   : > { %v1926_v20 = vadd.f32 %v1898_v13, %v1854_v26  ;;  %v1930_v54 = vadd.f32 %v1902_v18, %v1858_v38  ;;  %v1934_v44 = vadd.f32 %v1906_v33, %v1862_v2  ;;  %v1962_v30 = vmul.f32 %v6476_v50, %v5843_v62 }
 0x2cc   : > { %v1938_v53 = vadd.f32 %v1910_v29, %v1866_v17  ;;  %v1942_v5 = vadd.f32 %v1914_v21, %v1870_v25  ;;  %v1966_v19 = vmul.f32 %v6476_v50, %v5848_v1  ;;  %v1970_v43 = vmul.f32 %v6476_v50, %v5856_v9 }
 0x2cd   : > { %v1974_v55 = vmul.f32 %v6476_v50, %v5858_v23  ;;  %v1978_v11 = vmul.f32 %v6476_v50, %v5871_v4  ;;  %v1982_v49 = vmul.f32 %v6476_v50, %v5873_v32  ;;  %v1986_v48 = vmul.f32 %v6476_v50, %v5914_v39 }
 0x2ce   : > { %v2018_v60 = vrot.slane %v1962_v30, 1  ;;  %v2022_v51 = vrot.slane %v1966_v19, 1  ;;  %v2026_v31 = vrot.slane %v1970_v43, 1  ;;  %v2118_v22 = vmul.f32 %v6461_v0, %v5843_v62 }
 0x2cf   : > { %v2030_v52 = vrot.slane %v1974_v55, 1  ;;  %v2034_v10 = vrot.slane %v1978_v11, 1  ;;  %v2038_v8 = vrot.slane %v1982_v49, 1  ;;  %v2042_v27 = vrot.slane %v1986_v48, 1  ;;  %v6481_v48 = vld [vmem:[#allocation49_spill] sm:$0xff] }
 0x2d0   : > { %v2074_v34 = vadd.f32 %v2018_v60, %v1918_v56  ;;  %v2078_v40 = vadd.f32 %v2022_v51, %v1922_v6  ;;  %v2082_v26 = vadd.f32 %v2026_v31, %v1926_v20  ;;  %v2126_v3 = vmul.f32 %v6461_v0, %v5848_v1  ;;  %v6483_v51 = vld [vmem:[#allocation48_spill] sm:$0xff] }
 0x2d1   : > { %v2086_v36 = vadd.f32 %v2030_v52, %v1930_v54  ;;  %v2090_v38 = vadd.f32 %v2034_v10, %v1934_v44  ;;  %v2094_v2 = vadd.f32 %v2038_v8, %v1938_v53  ;;  %v2098_v17 = vadd.f32 %v2042_v27, %v1942_v5 }
 0x2d2   : > { %v2134_v25 = vmul.f32 %v6461_v0, %v5856_v9  ;;  %v2142_v62 = vmul.f32 %v6461_v0, %v5858_v23  ;;  %v2150_v13 = vmul.f32 %v6461_v0, %v5871_v4  ;;  %v2158_v18 = vmul.f32 %v6461_v0, %v5873_v32 }
 0x2d3   : > { %v2166_v33 = vmul.f32 %v6461_v0, %v5914_v39  ;;  %v2236_v29 = vrot.slane %v2118_v22, 2  ;;  %v2248_v21 = vrot.slane %v2126_v3, 2  ;;  %v2386_v56 = vmul.f32 %v6467_v42, %v5848_v1  ;;  %v6485_v22 = vld [vmem:[#allocation50_spill] sm:$0xff] }
 0x2d4   : > { %v2260_v6 = vrot.slane %v2134_v25, 2  ;;  %v2272_v20 = vrot.slane %v2142_v62, 2  ;;  %v2284_v54 = vrot.slane %v2150_v13, 2  ;;  %v2296_v44 = vrot.slane %v2158_v18, 2 }
 0x2d5   : > { %v6477_v50 = vrot.slane %v5723_v7, 2  ;;  %v6478_v53 = vrot.slane %v5726_v16, 2  ;;  %v2308_v19 = vrot.slane %v2166_v33, 2  ;;  %v2390_v0 = vmul.f32 %v6467_v42, %v5856_v9 }
 0x2d6   : > { %v6479_v43 = vrot.slane %v5730_v28, 2  ;;  %v6480_v11 = vrot.slane %v5734_v12, 2  ;;  %v6482_v7 = vrot.slane %v6481_v48, 2  ;;  %v6484_v16 = vrot.slane %v6483_v51, 2 }
 0x2d7   : > { %v2238_v30 = vsel %vm1247_vm3, %v2236_v29, %v6477_v50  ;;  %v2250_v5 = vsel %vm1247_vm3, %v2248_v21, %v6478_v53  ;;  %v6486_v52 = vrot.slane %v6485_v22, 2  ;;  %v2394_v13 = vmul.f32 %v6467_v42, %v5858_v23  ;;  %v6489_v53 = vld [vmem:[#allocation64_spill] sm:$0xff] }
 0x2d8   : > { %v2262_v55 = vsel %vm1247_vm3, %v2260_v6, %v6479_v43  ;;  %v2274_v49 = vsel %vm1247_vm3, %v2272_v20, %v6480_v11  ;;  %v2286_v60 = vsel %vm1247_vm3, %v2284_v54, %v6482_v7  ;;  %v2298_v31 = vsel %vm1247_vm3, %v2296_v44, %v6484_v16 }
 0x2d9   : > { %v2310_v10 = vsel %vm1247_vm3, %v2308_v19, %v6486_v52  ;;  %v2342_v8 = vadd.f32 %v2238_v30, %v2074_v34  ;;  %v2346_v28 = vadd.f32 %v2250_v5, %v2078_v40  ;;  %v2350_v27 = vadd.f32 %v2262_v55, %v2082_v26  ;;  %v6487_v40 = vld [vmem:[#allocation58_spill] sm:$0xff] }
 0x2da   : > { %v2354_v3 = vadd.f32 %v2274_v49, %v2086_v36  ;;  %v2358_v25 = vadd.f32 %v2286_v60, %v2090_v38  ;;  %v2362_v12 = vadd.f32 %v2298_v31, %v2094_v2  ;;  %v2366_v62 = vadd.f32 %v2310_v10, %v2098_v17  ;;  %v6488_v36 = vld [vmem:[#allocation19_spill] sm:$0xff] }
 0x2db   : > { %v2398_v18 = vmul.f32 %v6467_v42, %v5871_v4  ;;  %v2402_v33 = vmul.f32 %v6467_v42, %v5873_v32  ;;  %v2406_v29 = vmul.f32 %v6467_v42, %v5914_v39  ;;  %v2414_v21 = vadd.f32 %v2386_v56, %v2342_v8 }
 0x2dc   : > { %v2418_v34 = vadd.f32 %v2390_v0, %v2346_v28  ;;  %v2438_v26 = vadd.f32 %v6487_v40, %v2366_v62  ;;  %v2458_v38 = vmul.f32 %v6488_v36, %v5848_v1  ;;  %v2422_v2 = vadd.f32 %v2394_v13, %v2350_v27 }
 0x2dd   : > { %v2426_v17 = vadd.f32 %v2398_v18, %v2354_v3  ;;  %v2430_v6 = vadd.f32 %v2402_v33, %v2358_v25  ;;  %v2434_v20 = vadd.f32 %v2406_v29, %v2362_v12  ;;  %v2462_v54 = vmul.f32 %v6488_v36, %v5856_v9 }
 0x2de   : > { %v2466_v44 = vmul.f32 %v6488_v36, %v5858_v23  ;;  %v2470_v42 = vmul.f32 %v6488_v36, %v5871_v4  ;;  %v2474_v56 = vmul.f32 %v6488_v36, %v5873_v32  ;;  %v2478_v50 = vmul.f32 %v6488_v36, %v5914_v39 }
 0x2df   : > { %v2514_v30 = vrot.slane %v2458_v38, 1  ;;  %v6490_v5 = vrot.slane %v6489_v53, 1  ;;  %v2614_v0 = vmul.f32 %v5749_v46, %v5848_v1  ;;  %v2518_v43 = vrot.slane %v2462_v54, 1 }
 0x2e0   : > { %v2522_v55 = vrot.slane %v2466_v44, 1  ;;  %v2526_v11 = vrot.slane %v2470_v42, 1  ;;  %v2530_v49 = vrot.slane %v2474_v56, 1  ;;  %v2534_v48 = vrot.slane %v2478_v50, 1 }
 0x2e1   : > { %v2594_v19 = vadd.f32 %v6490_v5, %v2438_v26  ;;  %v2570_v7 = vadd.f32 %v2514_v30, %v2414_v21  ;;  %v2622_v60 = vmul.f32 %v5749_v46, %v5856_v9  ;;  %v2630_v51 = vmul.f32 %v5749_v46, %v5858_v23 }
 0x2e2   : > { %v2574_v16 = vadd.f32 %v2518_v43, %v2418_v34  ;;  %v2578_v31 = vadd.f32 %v2522_v55, %v2422_v2  ;;  %v2582_v22 = vadd.f32 %v2526_v11, %v2426_v17  ;;  %v2586_v52 = vadd.f32 %v2530_v49, %v2430_v6 }
 0x2e3   : > { %v2590_v10 = vadd.f32 %v2534_v48, %v2434_v20  ;;  %v2638_v1 = vmul.f32 %v5749_v46, %v5871_v4  ;;  %v2646_v8 = vmul.f32 %v5749_v46, %v5873_v32  ;;  %v2654_v28 = vmul.f32 %v5749_v46, %v5914_v39 }
 0x2e4   : > { %v2732_v27 = vrot.slane %v2614_v0, 2  ;;  %v2744_v3 = vrot.slane %v2622_v60, 2  ;;  %v2756_v9 = vrot.slane %v2630_v51, 2  ;;  %v2862_v25 = vadd.f32 %v5837_v15, %v2594_v19 }
 0x2e5   : > { %v2768_v23 = vrot.slane %v2638_v1, 2  ;;  %v2780_v12 = vrot.slane %v2646_v8, 2  ;;  %v2792_v62 = vrot.slane %v2654_v28, 2  ;;  %v6491_v32 = vrot.slane %v5785_v37, 2 }
 0x2e6   : > { %v2734_v13 = vsel %vm1247_vm3, %v2732_v27, %v2733_v14  ;;  %v2746_v4 = vsel %vm1247_vm3, %v2744_v3, %v2745_v58  ;;  %v2758_v46 = vsel %vm1247_vm3, %v2756_v9, %v2757_v61  ;;  %v2932_v2 = vsel %vm2920_vm11, %v2862_v25, 0.0 }
 0x2e7   : > { %v2770_v15 = vsel %vm1247_vm3, %v2768_v23, %v2769_v57  ;;  %v2782_v39 = vsel %vm1247_vm3, %v2780_v12, %v6491_v32  ;;  %v2794_v14 = vsel %vm1247_vm3, %v2792_v62, %v6492_v59  ;;  %v2838_v41 = vadd.f32 %v2734_v13, %v2570_v7 }
 0x2e8   : > { %v2842_v18 = vadd.f32 %v2746_v4, %v2574_v16  ;;  %v2846_v58 = vadd.f32 %v2758_v46, %v2578_v31  ;;  %v2850_v33 = vadd.f32 %v2770_v15, %v2582_v22  ;;  %v2854_v47 = vadd.f32 %v2782_v39, %v2586_v52 }
 0x2e9   : > { %v2858_v29 = vadd.f32 %v2794_v14, %v2590_v10  ;;  %v2921_v61 = vsel %vm2920_vm11, %v2838_v41, 0.0  ;;  %v6493_v14 = vld [vmem:[#allocation33_spill] sm:$0xff] }
 0x2ea   : > { %v2922_v35 = vsel %vm2920_vm11, %v2842_v18, 0.0  ;;  %v2924_v57 = vsel %vm2920_vm11, %v2846_v58, 0.0  ;;  %v2926_v34 = vsel %vm2920_vm11, %v2850_v33, 0.0  ;;  %v2928_v63 = vsel %vm2920_vm11, %v2854_v47, 0.0 }
 0x2eb   : > { %v2923_v21 = vadd.f32 %v2922_v35, %v2921_v61  ;;  %v2930_v36 = vsel %vm2920_vm11, %v2858_v29, 0.0 }
 0x2ed   : > { %v2925_v37 = vadd.f32 %v2924_v57, %v2923_v21 }
 0x2ef   : > { %v2927_v40 = vadd.f32 %v2926_v34, %v2925_v37 }
 0x2f1   : > { %v2929_v26 = vadd.f32 %v2928_v63, %v2927_v40 }
 0x2f3   : > { %v2931_v38 = vadd.f32 %v2930_v36, %v2929_v26 }
 0x2f5   : > { %v2933_v17 = vadd.f32 %v2932_v2, %v2931_v38 }
 0x2f7   : > { %v2934_v6 = vrot.slane %v2933_v17, 4 }
 0x2f9   : > { %v2935_v20 = vadd.f32 %v2934_v6, %v2933_v17 }
 0x2fb   : > { %v2936_v54 = vrot.slane %v2935_v20, 2 }
 0x2fd   : > { %v2937_v44 = vadd.f32 %v2936_v54, %v2935_v20 }
 0x2ff   : > { %v2938_v42 = vrot.slane %v2937_v44, 1 }
 0x301   : > { %v2939_v56 = vadd.f32 %v2938_v42, %v2937_v44 }
 0x303   : > { %v2943_v50 = vmul.f32 0.020408163, %v2939_v56 }
 0x305   : > { %v2947_v30 = vsub.f32 %v2838_v41, %v2943_v50  ;;  %v2951_v53 = vsub.f32 %v2842_v18, %v2943_v50  ;;  %v2955_v5 = vsub.f32 %v2846_v58, %v2943_v50  ;;  %v2959_v19 = vsub.f32 %v2850_v33, %v2943_v50  ;;  %v6494_v33 = vld [vmem:[#allocation47_spill] sm:$0xff] }
 0x306   : > { %v2963_v0 = vsub.f32 %v2854_v47, %v2943_v50  ;;  %v2967_v43 = vsub.f32 %v2858_v29, %v2943_v50  ;;  %v2971_v55 = vsub.f32 %v2862_v25, %v2943_v50  ;;  %v3105_v41 = vrot.slane %v5686_v24, %v6493_v14 }
 0x307   : > { %v2975_v11 = vmul.f32 %v2947_v30, %v2947_v30  ;;  %v2979_v49 = vmul.f32 %v2951_v53, %v2951_v53  ;;  %v2983_v48 = vmul.f32 %v2955_v5, %v2955_v5  ;;  %v2987_v7 = vmul.f32 %v2959_v19, %v2959_v19 }
 0x308   : > { %v2991_v31 = vmul.f32 %v2963_v0, %v2963_v0  ;;  %v2995_v10 = vmul.f32 %v2967_v43, %v2967_v43  ;;  %v2999_v28 = vmul.f32 %v2971_v55, %v2971_v55  ;;  %v3175_v47 = vrot.slane %v6494_v33, %v6493_v14 }
 0x309   : > { %v3057_v60 = vsel %vm2920_vm11, %v2975_v11, 0.0  ;;  %v3058_v51 = vsel %vm2920_vm11, %v2979_v49, 0.0  ;;  %v3060_v22 = vsel %vm2920_vm11, %v2983_v48, 0.0  ;;  %v3062_v1 = vsel %vm2920_vm11, %v2987_v7, 0.0 }
 0x30a   : > { %v3059_v16 = vadd.f32 %v3058_v51, %v3057_v60  ;;  %v3064_v27 = vsel %vm2920_vm11, %v2991_v31, 0.0  ;;  %v3066_v9 = vsel %vm2920_vm11, %v2995_v10, 0.0  ;;  %v3068_v23 = vsel %vm2920_vm11, %v2999_v28, 0.0 }
 0x30c   : > { %v3061_v52 = vadd.f32 %v3060_v22, %v3059_v16 }
 0x30e   : > { %v3063_v8 = vadd.f32 %v3062_v1, %v3061_v52 }
 0x310   : > { %v3065_v3 = vadd.f32 %v3064_v27, %v3063_v8 }
 0x312   : > { %v3067_v25 = vadd.f32 %v3066_v9, %v3065_v3 }
 0x314   : > { %v3069_v12 = vadd.f32 %v3068_v23, %v3067_v25 }
 0x316   : > { %v3070_v62 = vrot.slane %v3069_v12, 4 }
 0x318   : > { %v3071_v13 = vadd.f32 %v3070_v62, %v3069_v12 }
 0x31a   : > { %v3072_v4 = vrot.slane %v3071_v13, 2 }
 0x31c   : > { %v3073_v46 = vadd.f32 %v3072_v4, %v3071_v13 }
 0x31e   : > { %v3074_v15 = vrot.slane %v3073_v46, 1 }
 0x320   : > { %v3075_v32 = vadd.f32 %v3074_v15, %v3073_v46 }
 0x322   : > { %v3079_v39 = vmul.f32 0.020408163, %v3075_v32 }
 0x324   : > { %v3083_v59 = vadd.f32 1e-05, %v3079_v39 }
 0x326   : > { %3528 = vrsqrt.f32 %v3083_v59 }
 0x330   : > { %v3529_v18 = vpop.eup %3528 }
 0x331   : > { %v3113_v58 = vmul.f32 %v3529_v18, %v3105_v41 }
 0x333   : > { %v3129_v29 = vrot.slane %v3113_v58, %v6410_v45 }
 0x335   : > { %v3133_v61 = vmul.f32 %v3129_v29, %v2947_v30  ;;  %v3137_v35 = vmul.f32 %v3129_v29, %v2951_v53  ;;  %v3141_v57 = vmul.f32 %v3129_v29, %v2955_v5  ;;  %v3145_v21 = vmul.f32 %v3129_v29, %v2959_v19 }
 0x336   : > { %v3149_v37 = vmul.f32 %v3129_v29, %v2963_v0  ;;  %v3153_v24 = vmul.f32 %v3129_v29, %v2967_v43  ;;  %v3157_v34 = vmul.f32 %v3129_v29, %v2971_v55 }
 0x337   : > { %v3183_v40 = vadd.f32 %v3175_v47, %v3133_v61  ;;  %v3187_v63 = vadd.f32 %v3175_v47, %v3137_v35  ;;  %v3191_v26 = vadd.f32 %v3175_v47, %v3141_v57  ;;  %v3195_v36 = vadd.f32 %v3175_v47, %v3145_v21 }
 0x338   : > { %v3199_v38 = vadd.f32 %v3175_v47, %v3149_v37  ;;  %v3203_v2 = vadd.f32 %v3175_v47, %v3153_v24  ;;  %v3207_v45 = vadd.f32 %v3175_v47, %v3157_v34 }
 0x339   : > { %3211 = vst.msk [vmem:[%s5244_s15 + $0x18] sm:$0x7f] %vm2920_vm11, %v3183_v40  ;;  %3215 = vst.msk [vmem:[%s5244_s15 + $0x38] sm:$0x7f] %vm2920_vm11, %v3187_v63 }
 0x33a   : > { %3219 = vst.msk [vmem:[%s5244_s15 + $0x58] sm:$0x7f] %vm2920_vm11, %v3191_v26  ;;  %3223 = vst.msk [vmem:[%s5244_s15 + $0x78] sm:$0x7f] %vm2920_vm11, %v3195_v36 }
 0x33b   : > { %3227 = vst.msk [vmem:[%s5244_s15 + $0x98] sm:$0x7f] %vm2920_vm11, %v3199_v38  ;;  %3231 = vst.msk [vmem:[%s5244_s15 + $0xb8] sm:$0x7f] %vm2920_vm11, %v3203_v2 }
 0x33c   : > { %3235 = vst.msk [vmem:[%s5244_s15 + $0xd8] sm:$0x7f] %vm2920_vm11, %v3207_v45 }
 0x33d PF: > { %p17_p8 = scmp.ge.s32.totalorder %s3674_s29, 4   ;;  %s6495_s24 = smov %s3598_s25 }
 0x33e   : > { %s6496_s25 = smov %s3602_s26  ;;  %s6497_s26 = smov %s3684_s9 }
 0x33f   : > { %s6498_s27 = smov %s3674_s29  ;;  %19 = sbr.rel (!%p17_p8) target bundleno = 3 (0x3), region = 110 }
 0x346   :  { %3257 = vsyncpa [#allocation4], 1 }
 0x347   :  { %3259 = vsyncpa [#allocation4 + $0x1], 1 }

</bundles_post_ra>
